<compile_context>
chip_gen: v7x
topology: tpu7x:2x2x1
jax: 0.10.0
libtpu: 0.0.40
codegen_flags: <defaults>
</compile_context>

<pallas_src>
import functools
import math

import jax
import jax.numpy as jnp
import numpy as np
from jax.experimental import pallas as pl
from jax.experimental.pallas import tpu as pltpu

DO_IMPROVED_SELF_ATTENTION = False
LN_EPS = 1e-5


# ----------------------------------------------------------------------------
# Kernel helpers
# ----------------------------------------------------------------------------
def _bf16(x):
    return x.astype(jnp.bfloat16)


def _layernorm(x, gamma, beta):
    mu = jnp.mean(x, axis=-1, keepdims=True)
    var = jnp.mean((x - mu) ** 2, axis=-1, keepdims=True)
    return (x - mu) * jax.lax.rsqrt(var + LN_EPS) * gamma + beta


def _mha(q_in, kv_in, w_qkv, b_qkv, w_o, b_o, ctx_ref, attn_ref, *,
         num_heads, head_dim):
    """Multi-head attention for one query tile against a full K/V sequence.

    q_in  : (Tq_t, H) f32   queries (1/sqrt(head_dim) folded into w/b already)
    kv_in : (Tkv,  H) f32
    w_qkv : (H, 3H)  bf16   [Q | K | V] column blocks
    b_qkv : (1, 3H)  f32
    w_o   : (H, H)   bf16   output projection
    b_o   : (H,)     f32
    ctx_ref : (Tq_t, H) bf16 VMEM scratch -> lane-wise merge of per-head ctx
    attn_ref: None, or the (1, nh, Tq_t, Tk) output block for the probs
    """
    H = num_heads * head_dim

    # Lane-dense fused projections (single MXU contraction each).
    q = jnp.dot(_bf16(q_in), w_qkv[:, :H],
                preferred_element_type=jnp.float32) + b_qkv[:, :H]
    kv = jnp.dot(_bf16(kv_in), w_qkv[:, H:],
                 preferred_element_type=jnp.float32) + b_qkv[:, H:]
    qb = _bf16(q)
    kb = _bf16(kv[:, :H])
    vb = _bf16(kv[:, H:])

    # Per-head QK^T / softmax / PV (the only small matmuls left).  Heads are
    # merged into the lane-dense ctx scratch so the output projection is a
    # single (Tq_t,H)x(H,H) matmul (no per-head out-proj + VPU head sum).
    for n in range(num_heads):
        hsl = slice(n * head_dim, (n + 1) * head_dim)
        e = jnp.dot(qb[:, hsl], kb[:, hsl].T,
                    preferred_element_type=jnp.float32)          # (Tq_t, Tkv)
        e = e - jnp.max(e, axis=-1, keepdims=True)
        p = jnp.exp(e)
        s = jnp.sum(p, axis=-1, keepdims=True)
        if attn_ref is None:
            a = p * pl.reciprocal(s, approx=True)   # probs stay kernel-internal
        else:
            a = p / s                               # exact: user-visible output
            attn_ref[0, n] = a.astype(attn_ref.dtype)
        ctx = jnp.dot(_bf16(a), vb[:, hsl], preferred_element_type=jnp.float32)
        ctx_ref[:, hsl] = ctx.astype(jnp.bfloat16)

    return jnp.dot(ctx_ref[...], w_o, preferred_element_type=jnp.float32) + b_o


# ----------------------------------------------------------------------------
# Kernel
# ----------------------------------------------------------------------------
def decoder_layer_kernel(tq_ref, tf_ref, enc_ref,
                         sa_w_ref, sa_b_ref, sa_wo_ref,
                         ea_w_ref, ea_b_ref, ea_wo_ref,
                         ob_ref, ffw_ref, ffb_ref, lng_ref, lnb_ref,
                         out_ref, attn_ref,
                         ctx_ref,
                         *, num_heads, head_dim):
    tgt_q = tq_ref[0]        # (q_tile, H)  query rows of `target` for this step
    tgt_f = tf_ref[0]        # (Tq, H)      full `target` (self-attention K/V)
    enc = enc_ref[0]         # (Tk, H)

    lng = lng_ref[...]
    lnb = lnb_ref[...]
    ob = ob_ref[...]

    mha = functools.partial(_mha, num_heads=num_heads, head_dim=head_dim)

    # --- self-attention block (probabilities are not an output) ---
    if DO_IMPROVED_SELF_ATTENTION:
        sa = mha(_layernorm(tgt_q, lng[0], lnb[0]),
                 _layernorm(tgt_f, lng[0], lnb[0]),
                 sa_w_ref[...], sa_b_ref[...], sa_wo_ref[...], ob[0],
                 ctx_ref, None)
        target = tgt_q + sa
    else:
        sa = mha(tgt_q, tgt_f,
                 sa_w_ref[...], sa_b_ref[...], sa_wo_ref[...], ob[0],
                 ctx_ref, None)
        target = _layernorm(tgt_q + sa, lng[0], lnb[0])

    # --- encoder (cross) attention block ---
    ea = mha(target, enc,
             ea_w_ref[...], ea_b_ref[...], ea_wo_ref[...], ob[1],
             ctx_ref, attn_ref)
    target = _layernorm(target + ea, lng[1], lnb[1])

    # --- feed-forward block (dropout = identity in eval mode) ---
    ffw = ffw_ref[...]
    ffb = ffb_ref[...]
    h = jnp.maximum(
        jnp.dot(_bf16(target), ffw[0], preferred_element_type=jnp.float32) + ffb[0],
        0.0)
    ff = jnp.dot(_bf16(h), ffw[1], preferred_element_type=jnp.float32) + ffb[1]
    out_ref[0] = _layernorm(target + ff, lng[2], lnb[2]).astype(out_ref.dtype)


# ----------------------------------------------------------------------------
# Wrapper
# ----------------------------------------------------------------------------
def _pack_mha_params(w4, b4, num_heads):
    """Pack (4,H,H)/(4,H) MHA params into a [Q|K|V] slab + out-proj slab.

    The 1/sqrt(head_dim) score scale is folded into the Q weight/bias at trace
    time and the matmul operands are pre-cast to bf16 (biases stay f32 — they
    are added in f32 after the MXU contraction).
    """
    H = w4.shape[-1]
    hd = H // num_heads
    inv_scale = 1.0 / math.sqrt(float(hd))
    wqkv = jnp.concatenate([w4[0] * inv_scale, w4[1], w4[2]], axis=-1)  # (H,3H)
    bqkv = jnp.concatenate([b4[0] * inv_scale, b4[1], b4[2]], axis=-1)  # (3H,)
    return _bf16(wqkv), bqkv[None, :], _bf16(w4[3]), b4[3]


def _vmem_capacity_bytes():
    try:
        cap = getattr(pltpu.get_tpu_info(), "vmem_capacity_bytes", None)
        if cap:
            return int(cap)
    except Exception:
        pass
    return 64 * 1024 * 1024        # conservative (v7x per-core) default


def _vmem_need_bytes(q_tile, Tq, Tk, H, nh):
    wbytes = 2 * (10 * H * H * 2)                        # bf16 weight slabs (x2 worst case)
    in_blk = 2 * 4 * (q_tile + Tq + Tk) * H              # double-buffered f32 input blocks
    out_blk = 2 * 4 * (q_tile * H + nh * q_tile * Tk)    # double-buffered f32 output blocks
    live = 4 * (3 * (Tq + Tk) * H + 8 * q_tile * H + 4 * q_tile * Tk)
    return wbytes + in_blk + out_blk + live + (2 << 20)


def _choose_q_tile(B, Tq, Tk, H, nh, budget):
    """Largest Tq tile that fits the VMEM budget; loud failure otherwise."""
    cands = sorted({d for d in range(8, Tq + 1, 8) if Tq % d == 0} | {Tq},
                   reverse=True)
    fitting = [qt for qt in cands if _vmem_need_bytes(qt, Tq, Tk, H, nh) <= budget]
    if not fitting:
        raise ValueError(
            f"decoder_layer: no Tq tile fits the VMEM budget ({budget} bytes) "
            f"for Tq={Tq}, Tk={Tk}, H={H}, heads={nh}; Tk/flash-style tiling "
            f"would be required for this shape.")
    if B == 1:
        # v7x megacore: prefer >= 2 parallel grid steps when B alone is not enough.
        multi = [qt for qt in fitting if Tq // qt >= 2]
        if multi:
            return multi[0]
    return fitting[0]


def decoder_layer(target, encoded, params, *, num_heads):
    B, Tq, H = target.shape
    _, Tk, _ = encoded.shape
    hd = H // num_heads

    sa_wqkv, sa_bqkv, sa_wo, sa_bo = _pack_mha_params(params["saW"],
                                                      params["sab"], num_heads)
    ea_wqkv, ea_bqkv, ea_wo, ea_bo = _pack_mha_params(params["eaW"],
                                                      params["eab"], num_heads)
    ob2 = jnp.stack([sa_bo, ea_bo], axis=0)              # (2, H) f32
    ffw = _bf16(params["ffW"])                           # (2, H, H) bf16
    ffb = params["ffb"]
    ln_g = params["ln_g"]
    ln_b = params["ln_b"]

    # Generation-aware VMEM budget drives the Tq tile size (no silent clamping).
    budget = int(0.8 * _vmem_capacity_bytes())
    q_tile = _choose_q_tile(B, Tq, Tk, H, num_heads, budget)
    n_qt = Tq // q_tile

    kernel = functools.partial(decoder_layer_kernel,
                               num_heads=num_heads, head_dim=hd)

    def build(single_buffer_consts):
        def const_spec(shape):
            kw = {}
            if single_buffer_consts:
                # Grid-invariant parameters: no point double-buffering them.
                kw["pipeline_mode"] = pl.Buffered(1)
            nz = len(shape)
            return pl.BlockSpec(shape, lambda b, qi, _n=nz: (0,) * _n, **kw)

        in_specs = [
            pl.BlockSpec((1, q_tile, H), lambda b, qi: (b, qi, 0)),  # target (query tile)
            pl.BlockSpec((1, Tq, H), lambda b, qi: (b, 0, 0)),       # target (full, SA K/V)
            pl.BlockSpec((1, Tk, H), lambda b, qi: (b, 0, 0)),       # encoded
            const_spec((H, 3 * H)),     # SA [Q|K|V] weights (bf16, scale folded)
            const_spec((1, 3 * H)),     # SA [Q|K|V] bias
            const_spec((H, H)),         # SA out-proj weight (bf16)
            const_spec((H, 3 * H)),     # EA [Q|K|V] weights (bf16, scale folded)
            const_spec((1, 3 * H)),     # EA [Q|K|V] bias
            const_spec((H, H)),         # EA out-proj weight (bf16)
            const_spec((2, H)),         # out-proj biases (SA, EA)
            const_spec((2, H, H)),      # FF weights (bf16)
            const_spec((2, H)),         # FF biases
            const_spec((3, H)),         # LN gammas
            const_spec((3, H)),         # LN betas
        ]
        out_specs = [
            pl.BlockSpec((1, q_tile, H), lambda b, qi: (b, qi, 0)),
            pl.BlockSpec((1, num_heads, q_tile, Tk), lambda b, qi: (b, 0, qi, 0)),
        ]
        out_shape = [
            jax.ShapeDtypeStruct((B, Tq, H), jnp.float32),
            jax.ShapeDtypeStruct((B, num_heads, Tq, Tk), jnp.float32),
        ]
        return pl.pallas_call(
            kernel,
            grid=(B, n_qt),
            in_specs=in_specs,
            out_specs=out_specs,
            out_shape=out_shape,
            scratch_shapes=[pltpu.VMEM((q_tile, H), jnp.bfloat16)],  # head-merge ctx
            compiler_params=pltpu.CompilerParams(
                dimension_semantics=("parallel", "parallel"),
                vmem_limit_bytes=budget),
        )

    args = (target, target, encoded,
            sa_wqkv, sa_bqkv, sa_wo,
            ea_wqkv, ea_bqkv, ea_wo,
            ob2, ffw, ffb, ln_g, ln_b)
    try:
        return jax.block_until_ready(build(True)(*args))
    except Exception:
        # pipeline_mode=pl.Buffered(1) unsupported in this JAX build; fall back
        # to default (double-buffered) specs for the grid-invariant params.
        return jax.block_until_ready(build(False)(*args))


# ----------------------------------------------------------------------------
# Pure-JAX reference (mirrors the kernel's bf16-matmul / f32-accumulate policy)
# ----------------------------------------------------------------------------
def _ref_mm(x, w, b):
    return jnp.einsum("bth,hd->btd", x.astype(jnp.bfloat16),
                      w.astype(jnp.bfloat16),
                      preferred_element_type=jnp.float32) + b


def _ref_mha(q_in, kv_in, w, b, num_heads, head_dim):
    scale = math.sqrt(float(head_dim))
    B, Tq, H = q_in.shape
    Tk = kv_in.shape[1]
    Q = _ref_mm(q_in, w[0], b[0]) / scale
    K = _ref_mm(kv_in, w[1], b[1])
    V = _ref_mm(kv_in, w[2], b[2])
    Q = Q.reshape(B, Tq, num_heads, head_dim).transpose(0, 2, 1, 3)
    K = K.reshape(B, Tk, num_heads, head_dim).transpose(0, 2, 1, 3)
    V = V.reshape(B, Tk, num_heads, head_dim).transpose(0, 2, 1, 3)
    e = jnp.einsum("bnqd,bnkd->bnqk", Q.astype(jnp.bfloat16),
                   K.astype(jnp.bfloat16), preferred_element_type=jnp.float32)
    a = jax.nn.softmax(e, axis=-1)
    x = jnp.einsum("bnqk,bnkd->bnqd", a.astype(jnp.bfloat16),
                   V.astype(jnp.bfloat16), preferred_element_type=jnp.float32)
    x = x.transpose(0, 2, 1, 3).reshape(B, Tq, H)
    x = _ref_mm(x, w[3], b[3])
    return x, a


def _ref_ln(x, g, b):
    mu = jnp.mean(x, axis=-1, keepdims=True)
    var = jnp.mean((x - mu) ** 2, axis=-1, keepdims=True)
    return (x - mu) / jnp.sqrt(var + LN_EPS) * g + b


def decoder_layer_ref(target, encoded, params, *, num_heads):
    H = target.shape[-1]
    hd = H // num_heads
    p = params
    if DO_IMPROVED_SELF_ATTENTION:
        t_norm = _ref_ln(target, p["ln_g"][0], p["ln_b"][0])
        sa, _ = _ref_mha(t_norm, t_norm, p["saW"], p["sab"], num_heads, hd)
        target = target + sa
    else:
        sa, _ = _ref_mha(target, target, p["saW"], p["sab"], num_heads, hd)
        target = _ref_ln(target + sa, p["ln_g"][0], p["ln_b"][0])
    ea, attn = _ref_mha(target, encoded, p["eaW"], p["eab"], num_heads, hd)
    target = _ref_ln(target + ea, p["ln_g"][1], p["ln_b"][1])
    h = jax.nn.relu(_ref_mm(target, p["ffW"][0], p["ffb"][0]))
    ff = _ref_mm(h, p["ffW"][1], p["ffb"][1])
    x2 = _ref_ln(target + ff, p["ln_g"][2], p["ln_b"][2])
    return x2, attn


# ----------------------------------------------------------------------------
# Main
# ----------------------------------------------------------------------------
def make_params(key, hidden_dim):
    H = hidden_dim
    ks = jax.random.split(key, 8)
    scale = 1.0 / math.sqrt(H)
    params = {
        # Weights stored (in, out) — already transposed relative to
        # torch.nn.Linear's (out, in) — so the kernel computes x @ W + b.
        "saW": jax.random.normal(ks[0], (4, H, H), jnp.float32) * scale,
        "sab": jax.random.normal(ks[1], (4, H), jnp.float32) * 0.01,
        "eaW": jax.random.normal(ks[2], (4, H, H), jnp.float32) * scale,
        "eab": jax.random.normal(ks[3], (4, H), jnp.float32) * 0.01,
        "ffW": jax.random.normal(ks[4], (2, H, H), jnp.float32) * scale,
        "ffb": jax.random.normal(ks[5], (2, H), jnp.float32) * 0.01,
        "ln_g": jnp.ones((3, H), jnp.float32),   # PyTorch LayerNorm default init
        "ln_b": jnp.zeros((3, H), jnp.float32),
    }
    return params


if __name__ == "__main__":
    B, Tq, Tk, H, NUM_HEADS = 2, 8, 8, 32, 4

    key = jax.random.PRNGKey(0)
    k_t, k_e, k_p = jax.random.split(key, 3)
    target = jax.random.normal(k_t, (B, Tq, H), jnp.float32)
    encoded = jax.random.normal(k_e, (B, Tk, H), jnp.float32)
    params = make_params(k_p, H)

    out, attn = decoder_layer(target, encoded, params, num_heads=NUM_HEADS)
    out = jax.block_until_ready(out)
    attn = jax.block_until_ready(attn)

    ref_out, ref_attn = decoder_layer_ref(target, encoded, params,
                                          num_heads=NUM_HEADS)
    # Tolerances account for bf16 matmuls, trace-time folding of 1/sqrt(hd)
    # into bf16 Q weights, and the approx reciprocal in the self-attn softmax.
    np.testing.assert_allclose(np.asarray(out), np.asarray(ref_out),
                               atol=3e-2, rtol=3e-2)
    np.testing.assert_allclose(np.asarray(attn), np.asarray(ref_attn),
                               atol=2e-2, rtol=2e-2)

    print("KERNEL_OK")
</pallas_src>

<mosaic_0001>
module attributes {stable_mosaic.version = 11 : i64} {
  func.func @decoder_layer_kernel(%arg0: i32, %arg1: i32, %arg2: memref<1x8x32xf32, #tpu.memory_space<vmem>>, %arg3: memref<1x8x32xf32, #tpu.memory_space<vmem>>, %arg4: memref<1x8x32xf32, #tpu.memory_space<vmem>>, %arg5: memref<32x96xbf16, #tpu.memory_space<vmem>>, %arg6: memref<1x96xf32, #tpu.memory_space<vmem>>, %arg7: memref<32x32xbf16, #tpu.memory_space<vmem>>, %arg8: memref<32x96xbf16, #tpu.memory_space<vmem>>, %arg9: memref<1x96xf32, #tpu.memory_space<vmem>>, %arg10: memref<32x32xbf16, #tpu.memory_space<vmem>>, %arg11: memref<2x32xf32, #tpu.memory_space<vmem>>, %arg12: memref<2x32x32xbf16, #tpu.memory_space<vmem>>, %arg13: memref<2x32xf32, #tpu.memory_space<vmem>>, %arg14: memref<3x32xf32, #tpu.memory_space<vmem>>, %arg15: memref<3x32xf32, #tpu.memory_space<vmem>>, %arg16: memref<1x8x32xf32, #tpu.memory_space<vmem>>, %arg17: memref<1x4x8x8xf32, #tpu.memory_space<vmem>>, %arg18: memref<8x32xbf16, #tpu.memory_space<vmem>>) attributes {dimension_semantics = [#tpu.dimension_semantics<parallel>, #tpu.dimension_semantics<parallel>], iteration_bounds = array<i64: 2, 1>, scalar_prefetch = 0 : i64, scratch_operands = 1 : i64, tpu.core_type = #tpu.core_type<tc>, window_params = [{transform_indices = @transform_0, window_bounds = array<i64: 1, 8, 32>}, {transform_indices = @transform_1, window_bounds = array<i64: 1, 8, 32>}, {transform_indices = @transform_2, window_bounds = array<i64: 1, 8, 32>}, {pipeline_mode = #tpu.pipeline_mode<synchronous>, transform_indices = @transform_3, window_bounds = array<i64: 32, 96>}, {pipeline_mode = #tpu.pipeline_mode<synchronous>, transform_indices = @transform_4, window_bounds = array<i64: 1, 96>}, {pipeline_mode = #tpu.pipeline_mode<synchronous>, transform_indices = @transform_5, window_bounds = array<i64: 32, 32>}, {pipeline_mode = #tpu.pipeline_mode<synchronous>, transform_indices = @transform_6, window_bounds = array<i64: 32, 96>}, {pipeline_mode = #tpu.pipeline_mode<synchronous>, transform_indices = @transform_7, window_bounds = array<i64: 1, 96>}, {pipeline_mode = #tpu.pipeline_mode<synchronous>, transform_indices = @transform_8, window_bounds = array<i64: 32, 32>}, {pipeline_mode = #tpu.pipeline_mode<synchronous>, transform_indices = @transform_9, window_bounds = array<i64: 2, 32>}, {pipeline_mode = #tpu.pipeline_mode<synchronous>, transform_indices = @transform_10, window_bounds = array<i64: 2, 32, 32>}, {pipeline_mode = #tpu.pipeline_mode<synchronous>, transform_indices = @transform_11, window_bounds = array<i64: 2, 32>}, {pipeline_mode = #tpu.pipeline_mode<synchronous>, transform_indices = @transform_12, window_bounds = array<i64: 3, 32>}, {pipeline_mode = #tpu.pipeline_mode<synchronous>, transform_indices = @transform_13, window_bounds = array<i64: 3, 32>}, {transform_indices = @transform_14, window_bounds = array<i64: 1, 8, 32>}, {transform_indices = @transform_15, window_bounds = array<i64: 1, 4, 8, 8>}]} {
    %c0 = arith.constant 0 : index
    %c0_0 = arith.constant 0 : index
    %c0_1 = arith.constant 0 : index
    %0 = vector.load %arg2[%c0, %c0_0, %c0_1] : memref<1x8x32xf32, #tpu.memory_space<vmem>>, vector<1x8x32xf32>
    %1 = vector.shape_cast %0 : vector<1x8x32xf32> to vector<8x32xf32>
    %c0_2 = arith.constant 0 : index
    %c0_3 = arith.constant 0 : index
    %c0_4 = arith.constant 0 : index
    %2 = vector.load %arg3[%c0_2, %c0_3, %c0_4] : memref<1x8x32xf32, #tpu.memory_space<vmem>>, vector<1x8x32xf32>
    %3 = vector.shape_cast %2 : vector<1x8x32xf32> to vector<8x32xf32>
    %c0_5 = arith.constant 0 : index
    %c0_6 = arith.constant 0 : index
    %c0_7 = arith.constant 0 : index
    %4 = vector.load %arg4[%c0_5, %c0_6, %c0_7] : memref<1x8x32xf32, #tpu.memory_space<vmem>>, vector<1x8x32xf32>
    %5 = vector.shape_cast %4 : vector<1x8x32xf32> to vector<8x32xf32>
    %c0_8 = arith.constant 0 : index
    %c0_9 = arith.constant 0 : index
    %6 = vector.load %arg14[%c0_8, %c0_9] : memref<3x32xf32, #tpu.memory_space<vmem>>, vector<3x32xf32>
    %c0_10 = arith.constant 0 : index
    %c0_11 = arith.constant 0 : index
    %7 = vector.load %arg15[%c0_10, %c0_11] : memref<3x32xf32, #tpu.memory_space<vmem>>, vector<3x32xf32>
    %c0_12 = arith.constant 0 : index
    %c0_13 = arith.constant 0 : index
    %8 = vector.load %arg11[%c0_12, %c0_13] : memref<2x32xf32, #tpu.memory_space<vmem>>, vector<2x32xf32>
    %c0_14 = arith.constant 0 : index
    %c0_15 = arith.constant 0 : index
    %9 = vector.load %arg5[%c0_14, %c0_15] : memref<32x96xbf16, #tpu.memory_space<vmem>>, vector<32x96xbf16>
    %c0_16 = arith.constant 0 : index
    %c0_17 = arith.constant 0 : index
    %10 = vector.load %arg6[%c0_16, %c0_17] : memref<1x96xf32, #tpu.memory_space<vmem>>, vector<1x96xf32>
    %c0_18 = arith.constant 0 : index
    %c0_19 = arith.constant 0 : index
    %11 = vector.load %arg7[%c0_18, %c0_19] : memref<32x32xbf16, #tpu.memory_space<vmem>>, vector<32x32xbf16>
    %12 = vector.extract_strided_slice %8 {offsets = [0, 0], sizes = [1, 32], strides = [1, 1]} : vector<2x32xf32> to vector<1x32xf32>
    %13 = vector.shape_cast %12 : vector<1x32xf32> to vector<32xf32>
    %14 = arith.truncf %1 : vector<8x32xf32> to vector<8x32xbf16>
    %15 = vector.extract_strided_slice %9 {offsets = [0, 0], sizes = [32, 32], strides = [1, 1]} : vector<32x96xbf16> to vector<32x32xbf16>
    %cst = arith.constant dense<0.000000e+00> : vector<8x32xf32>
    %16 = tpu.matmul %14, %15, %cst {dimension_numbers = #tpu.dot_dimension_numbers<[1], [0], [0], [1], [0, 0, 1, 1], [], []>} : vector<8x32xbf16>, vector<32x32xbf16>, vector<8x32xf32> -> vector<8x32xf32>
    %17 = vector.extract_strided_slice %10 {offsets = [0, 0], sizes = [1, 32], strides = [1, 1]} : vector<1x96xf32> to vector<1x32xf32>
    %18 = vector.broadcast %17 : vector<1x32xf32> to vector<8x32xf32>
    %19 = arith.addf %16, %18 : vector<8x32xf32>
    %20 = arith.truncf %3 : vector<8x32xf32> to vector<8x32xbf16>
    %21 = vector.extract_strided_slice %9 {offsets = [0, 32], sizes = [32, 64], strides = [1, 1]} : vector<32x96xbf16> to vector<32x64xbf16>
    %cst_20 = arith.constant dense<0.000000e+00> : vector<8x64xf32>
    %22 = tpu.matmul %20, %21, %cst_20 {dimension_numbers = #tpu.dot_dimension_numbers<[1], [0], [0], [1], [0, 0, 1, 1], [], []>} : vector<8x32xbf16>, vector<32x64xbf16>, vector<8x64xf32> -> vector<8x64xf32>
    %23 = vector.extract_strided_slice %10 {offsets = [0, 32], sizes = [1, 64], strides = [1, 1]} : vector<1x96xf32> to vector<1x64xf32>
    %24 = vector.broadcast %23 : vector<1x64xf32> to vector<8x64xf32>
    %25 = arith.addf %22, %24 : vector<8x64xf32>
    %26 = arith.truncf %19 : vector<8x32xf32> to vector<8x32xbf16>
    %27 = vector.extract_strided_slice %25 {offsets = [0, 0], sizes = [8, 32], strides = [1, 1]} : vector<8x64xf32> to vector<8x32xf32>
    %28 = arith.truncf %27 : vector<8x32xf32> to vector<8x32xbf16>
    %29 = vector.extract_strided_slice %25 {offsets = [0, 32], sizes = [8, 32], strides = [1, 1]} : vector<8x64xf32> to vector<8x32xf32>
    %30 = arith.truncf %29 : vector<8x32xf32> to vector<8x32xbf16>
    %31 = vector.extract_strided_slice %26 {offsets = [0, 0], sizes = [8, 8], strides = [1, 1]} : vector<8x32xbf16> to vector<8x8xbf16>
    %32 = vector.extract_strided_slice %28 {offsets = [0, 0], sizes = [8, 8], strides = [1, 1]} : vector<8x32xbf16> to vector<8x8xbf16>
    %33 = tpu.transpose %32, [1, 0] : vector<8x8xbf16> -> vector<8x8xbf16>
    %cst_21 = arith.constant dense<0.000000e+00> : vector<8x8xf32>
    %34 = tpu.matmul %31, %33, %cst_21 {dimension_numbers = #tpu.dot_dimension_numbers<[1], [0], [0], [1], [0, 0, 1, 1], [], []>} : vector<8x8xbf16>, vector<8x8xbf16>, vector<8x8xf32> -> vector<8x8xf32>
    %cst_22 = arith.constant dense<0xFF800000> : vector<8xf32>
    %35 = vector.multi_reduction <maximumf>, %34, %cst_22 [1] : vector<8x8xf32> to vector<8xf32>
    %36 = vector.shape_cast %35 : vector<8xf32> to vector<8x1xf32>
    %37 = vector.broadcast %36 : vector<8x1xf32> to vector<8x8xf32>
    %38 = arith.subf %34, %37 : vector<8x8xf32>
    %39 = math.exp %38 : vector<8x8xf32>
    %cst_23 = arith.constant dense<0.000000e+00> : vector<8xf32>
    %40 = vector.multi_reduction <add>, %39, %cst_23 [1] : vector<8x8xf32> to vector<8xf32>
    %41 = vector.shape_cast %40 : vector<8xf32> to vector<8x1xf32>
    %42 = tpu.reciprocal %41 {approx = true} : vector<8x1xf32> -> vector<8x1xf32>
    %43 = vector.broadcast %42 : vector<8x1xf32> to vector<8x8xf32>
    %44 = arith.mulf %39, %43 : vector<8x8xf32>
    %45 = arith.truncf %44 : vector<8x8xf32> to vector<8x8xbf16>
    %46 = vector.extract_strided_slice %30 {offsets = [0, 0], sizes = [8, 8], strides = [1, 1]} : vector<8x32xbf16> to vector<8x8xbf16>
    %cst_24 = arith.constant dense<0.000000e+00> : vector<8x8xf32>
    %47 = tpu.matmul %45, %46, %cst_24 {dimension_numbers = #tpu.dot_dimension_numbers<[1], [0], [0], [1], [0, 0, 1, 1], [], []>} : vector<8x8xbf16>, vector<8x8xbf16>, vector<8x8xf32> -> vector<8x8xf32>
    %48 = arith.truncf %47 : vector<8x8xf32> to vector<8x8xbf16>
    %c0_25 = arith.constant 0 : index
    %c0_26 = arith.constant 0 : index
    %49 = vector.load %arg18[%c0_25, %c0_26] : memref<8x32xbf16, #tpu.memory_space<vmem>>, vector<8x8xbf16>
    tpu.vector_store %arg18[%c0_25, %c0_26], %48 {strides = array<i32>} : memref<8x32xbf16, #tpu.memory_space<vmem>>, vector<8x8xbf16>,
    %50 = vector.extract_strided_slice %26 {offsets = [0, 8], sizes = [8, 8], strides = [1, 1]} : vector<8x32xbf16> to vector<8x8xbf16>
    %51 = vector.extract_strided_slice %28 {offsets = [0, 8], sizes = [8, 8], strides = [1, 1]} : vector<8x32xbf16> to vector<8x8xbf16>
    %52 = tpu.transpose %51, [1, 0] : vector<8x8xbf16> -> vector<8x8xbf16>
    %cst_27 = arith.constant dense<0.000000e+00> : vector<8x8xf32>
    %53 = tpu.matmul %50, %52, %cst_27 {dimension_numbers = #tpu.dot_dimension_numbers<[1], [0], [0], [1], [0, 0, 1, 1], [], []>} : vector<8x8xbf16>, vector<8x8xbf16>, vector<8x8xf32> -> vector<8x8xf32>
    %cst_28 = arith.constant dense<0xFF800000> : vector<8xf32>
    %54 = vector.multi_reduction <maximumf>, %53, %cst_28 [1] : vector<8x8xf32> to vector<8xf32>
    %55 = vector.shape_cast %54 : vector<8xf32> to vector<8x1xf32>
    %56 = vector.broadcast %55 : vector<8x1xf32> to vector<8x8xf32>
    %57 = arith.subf %53, %56 : vector<8x8xf32>
    %58 = math.exp %57 : vector<8x8xf32>
    %cst_29 = arith.constant dense<0.000000e+00> : vector<8xf32>
    %59 = vector.multi_reduction <add>, %58, %cst_29 [1] : vector<8x8xf32> to vector<8xf32>
    %60 = vector.shape_cast %59 : vector<8xf32> to vector<8x1xf32>
    %61 = tpu.reciprocal %60 {approx = true} : vector<8x1xf32> -> vector<8x1xf32>
    %62 = vector.broadcast %61 : vector<8x1xf32> to vector<8x8xf32>
    %63 = arith.mulf %58, %62 : vector<8x8xf32>
    %64 = arith.truncf %63 : vector<8x8xf32> to vector<8x8xbf16>
    %65 = vector.extract_strided_slice %30 {offsets = [0, 8], sizes = [8, 8], strides = [1, 1]} : vector<8x32xbf16> to vector<8x8xbf16>
    %cst_30 = arith.constant dense<0.000000e+00> : vector<8x8xf32>
    %66 = tpu.matmul %64, %65, %cst_30 {dimension_numbers = #tpu.dot_dimension_numbers<[1], [0], [0], [1], [0, 0, 1, 1], [], []>} : vector<8x8xbf16>, vector<8x8xbf16>, vector<8x8xf32> -> vector<8x8xf32>
    %67 = arith.truncf %66 : vector<8x8xf32> to vector<8x8xbf16>
    %c0_31 = arith.constant 0 : index
    %c8 = arith.constant 8 : index
    %68 = vector.load %arg18[%c0_31, %c8] : memref<8x32xbf16, #tpu.memory_space<vmem>>, vector<8x8xbf16>
    tpu.vector_store %arg18[%c0_31, %c8], %67 {strides = array<i32>} : memref<8x32xbf16, #tpu.memory_space<vmem>>, vector<8x8xbf16>,
    %69 = vector.extract_strided_slice %26 {offsets = [0, 16], sizes = [8, 8], strides = [1, 1]} : vector<8x32xbf16> to vector<8x8xbf16>
    %70 = vector.extract_strided_slice %28 {offsets = [0, 16], sizes = [8, 8], strides = [1, 1]} : vector<8x32xbf16> to vector<8x8xbf16>
    %71 = tpu.transpose %70, [1, 0] : vector<8x8xbf16> -> vector<8x8xbf16>
    %cst_32 = arith.constant dense<0.000000e+00> : vector<8x8xf32>
    %72 = tpu.matmul %69, %71, %cst_32 {dimension_numbers = #tpu.dot_dimension_numbers<[1], [0], [0], [1], [0, 0, 1, 1], [], []>} : vector<8x8xbf16>, vector<8x8xbf16>, vector<8x8xf32> -> vector<8x8xf32>
    %cst_33 = arith.constant dense<0xFF800000> : vector<8xf32>
    %73 = vector.multi_reduction <maximumf>, %72, %cst_33 [1] : vector<8x8xf32> to vector<8xf32>
    %74 = vector.shape_cast %73 : vector<8xf32> to vector<8x1xf32>
    %75 = vector.broadcast %74 : vector<8x1xf32> to vector<8x8xf32>
    %76 = arith.subf %72, %75 : vector<8x8xf32>
    %77 = math.exp %76 : vector<8x8xf32>
    %cst_34 = arith.constant dense<0.000000e+00> : vector<8xf32>
    %78 = vector.multi_reduction <add>, %77, %cst_34 [1] : vector<8x8xf32> to vector<8xf32>
    %79 = vector.shape_cast %78 : vector<8xf32> to vector<8x1xf32>
    %80 = tpu.reciprocal %79 {approx = true} : vector<8x1xf32> -> vector<8x1xf32>
    %81 = vector.broadcast %80 : vector<8x1xf32> to vector<8x8xf32>
    %82 = arith.mulf %77, %81 : vector<8x8xf32>
    %83 = arith.truncf %82 : vector<8x8xf32> to vector<8x8xbf16>
    %84 = vector.extract_strided_slice %30 {offsets = [0, 16], sizes = [8, 8], strides = [1, 1]} : vector<8x32xbf16> to vector<8x8xbf16>
    %cst_35 = arith.constant dense<0.000000e+00> : vector<8x8xf32>
    %85 = tpu.matmul %83, %84, %cst_35 {dimension_numbers = #tpu.dot_dimension_numbers<[1], [0], [0], [1], [0, 0, 1, 1], [], []>} : vector<8x8xbf16>, vector<8x8xbf16>, vector<8x8xf32> -> vector<8x8xf32>
    %86 = arith.truncf %85 : vector<8x8xf32> to vector<8x8xbf16>
    %c0_36 = arith.constant 0 : index
    %c16 = arith.constant 16 : index
    %87 = vector.load %arg18[%c0_36, %c16] : memref<8x32xbf16, #tpu.memory_space<vmem>>, vector<8x8xbf16>
    tpu.vector_store %arg18[%c0_36, %c16], %86 {strides = array<i32>} : memref<8x32xbf16, #tpu.memory_space<vmem>>, vector<8x8xbf16>,
    %88 = vector.extract_strided_slice %26 {offsets = [0, 24], sizes = [8, 8], strides = [1, 1]} : vector<8x32xbf16> to vector<8x8xbf16>
    %89 = vector.extract_strided_slice %28 {offsets = [0, 24], sizes = [8, 8], strides = [1, 1]} : vector<8x32xbf16> to vector<8x8xbf16>
    %90 = tpu.transpose %89, [1, 0] : vector<8x8xbf16> -> vector<8x8xbf16>
    %cst_37 = arith.constant dense<0.000000e+00> : vector<8x8xf32>
    %91 = tpu.matmul %88, %90, %cst_37 {dimension_numbers = #tpu.dot_dimension_numbers<[1], [0], [0], [1], [0, 0, 1, 1], [], []>} : vector<8x8xbf16>, vector<8x8xbf16>, vector<8x8xf32> -> vector<8x8xf32>
    %cst_38 = arith.constant dense<0xFF800000> : vector<8xf32>
    %92 = vector.multi_reduction <maximumf>, %91, %cst_38 [1] : vector<8x8xf32> to vector<8xf32>
    %93 = vector.shape_cast %92 : vector<8xf32> to vector<8x1xf32>
    %94 = vector.broadcast %93 : vector<8x1xf32> to vector<8x8xf32>
    %95 = arith.subf %91, %94 : vector<8x8xf32>
    %96 = math.exp %95 : vector<8x8xf32>
    %cst_39 = arith.constant dense<0.000000e+00> : vector<8xf32>
    %97 = vector.multi_reduction <add>, %96, %cst_39 [1] : vector<8x8xf32> to vector<8xf32>
    %98 = vector.shape_cast %97 : vector<8xf32> to vector<8x1xf32>
    %99 = tpu.reciprocal %98 {approx = true} : vector<8x1xf32> -> vector<8x1xf32>
    %100 = vector.broadcast %99 : vector<8x1xf32> to vector<8x8xf32>
    %101 = arith.mulf %96, %100 : vector<8x8xf32>
    %102 = arith.truncf %101 : vector<8x8xf32> to vector<8x8xbf16>
    %103 = vector.extract_strided_slice %30 {offsets = [0, 24], sizes = [8, 8], strides = [1, 1]} : vector<8x32xbf16> to vector<8x8xbf16>
    %cst_40 = arith.constant dense<0.000000e+00> : vector<8x8xf32>
    %104 = tpu.matmul %102, %103, %cst_40 {dimension_numbers = #tpu.dot_dimension_numbers<[1], [0], [0], [1], [0, 0, 1, 1], [], []>} : vector<8x8xbf16>, vector<8x8xbf16>, vector<8x8xf32> -> vector<8x8xf32>
    %105 = arith.truncf %104 : vector<8x8xf32> to vector<8x8xbf16>
    %c0_41 = arith.constant 0 : index
    %c24 = arith.constant 24 : index
    %106 = vector.load %arg18[%c0_41, %c24] : memref<8x32xbf16, #tpu.memory_space<vmem>>, vector<8x8xbf16>
    tpu.vector_store %arg18[%c0_41, %c24], %105 {strides = array<i32>} : memref<8x32xbf16, #tpu.memory_space<vmem>>, vector<8x8xbf16>,
    %c0_42 = arith.constant 0 : index
    %c0_43 = arith.constant 0 : index
    %107 = vector.load %arg18[%c0_42, %c0_43] : memref<8x32xbf16, #tpu.memory_space<vmem>>, vector<8x32xbf16>
    %cst_44 = arith.constant dense<0.000000e+00> : vector<8x32xf32>
    %108 = tpu.matmul %107, %11, %cst_44 {dimension_numbers = #tpu.dot_dimension_numbers<[1], [0], [0], [1], [0, 0, 1, 1], [], []>} : vector<8x32xbf16>, vector<32x32xbf16>, vector<8x32xf32> -> vector<8x32xf32>
    %109 = vector.shape_cast %13 : vector<32xf32> to vector<1x32xf32>
    %110 = vector.broadcast %109 : vector<1x32xf32> to vector<8x32xf32>
    %111 = arith.addf %108, %110 : vector<8x32xf32>
    %112 = arith.addf %1, %111 : vector<8x32xf32>
    %113 = vector.extract_strided_slice %6 {offsets = [0, 0], sizes = [1, 32], strides = [1, 1]} : vector<3x32xf32> to vector<1x32xf32>
    %114 = vector.shape_cast %113 : vector<1x32xf32> to vector<32xf32>
    %115 = vector.extract_strided_slice %7 {offsets = [0, 0], sizes = [1, 32], strides = [1, 1]} : vector<3x32xf32> to vector<1x32xf32>
    %116 = vector.shape_cast %115 : vector<1x32xf32> to vector<32xf32>
    %cst_45 = arith.constant dense<0.000000e+00> : vector<8xf32>
    %117 = vector.multi_reduction <add>, %112, %cst_45 [1] : vector<8x32xf32> to vector<8xf32>
    %118 = vector.shape_cast %117 : vector<8xf32> to vector<8x1xf32>
    %cst_46 = arith.constant 3.200000e+01 : f32
    %119 = vector.broadcast %cst_46 : f32 to vector<8x1xf32>
    %120 = arith.divf %118, %119 : vector<8x1xf32>
    %121 = vector.broadcast %120 : vector<8x1xf32> to vector<8x32xf32>
    %122 = arith.subf %112, %121 : vector<8x32xf32>
    %123 = arith.mulf %122, %122 : vector<8x32xf32>
    %cst_47 = arith.constant dense<0.000000e+00> : vector<8xf32>
    %124 = vector.multi_reduction <add>, %123, %cst_47 [1] : vector<8x32xf32> to vector<8xf32>
    %125 = vector.shape_cast %124 : vector<8xf32> to vector<8x1xf32>
    %cst_48 = arith.constant 3.200000e+01 : f32
    %126 = vector.broadcast %cst_48 : f32 to vector<8x1xf32>
    %127 = arith.divf %125, %126 : vector<8x1xf32>
    %128 = vector.broadcast %120 : vector<8x1xf32> to vector<8x32xf32>
    %129 = arith.subf %112, %128 : vector<8x32xf32>
    %cst_49 = arith.constant 9.99999974E-6 : f32
    %130 = vector.broadcast %cst_49 : f32 to vector<8x1xf32>
    %131 = arith.addf %127, %130 : vector<8x1xf32>
    %132 = math.rsqrt %131 : vector<8x1xf32>
    %133 = vector.broadcast %132 : vector<8x1xf32> to vector<8x32xf32>
    %134 = arith.mulf %129, %133 : vector<8x32xf32>
    %135 = vector.shape_cast %114 : vector<32xf32> to vector<1x32xf32>
    %136 = vector.broadcast %135 : vector<1x32xf32> to vector<8x32xf32>
    %137 = arith.mulf %134, %136 : vector<8x32xf32>
    %138 = vector.shape_cast %116 : vector<32xf32> to vector<1x32xf32>
    %139 = vector.broadcast %138 : vector<1x32xf32> to vector<8x32xf32>
    %140 = arith.addf %137, %139 : vector<8x32xf32>
    %c0_50 = arith.constant 0 : index
    %c0_51 = arith.constant 0 : index
    %141 = vector.load %arg8[%c0_50, %c0_51] : memref<32x96xbf16, #tpu.memory_space<vmem>>, vector<32x96xbf16>
    %c0_52 = arith.constant 0 : index
    %c0_53 = arith.constant 0 : index
    %142 = vector.load %arg9[%c0_52, %c0_53] : memref<1x96xf32, #tpu.memory_space<vmem>>, vector<1x96xf32>
    %c0_54 = arith.constant 0 : index
    %c0_55 = arith.constant 0 : index
    %143 = vector.load %arg10[%c0_54, %c0_55] : memref<32x32xbf16, #tpu.memory_space<vmem>>, vector<32x32xbf16>
    %144 = vector.extract_strided_slice %8 {offsets = [1, 0], sizes = [1, 32], strides = [1, 1]} : vector<2x32xf32> to vector<1x32xf32>
    %145 = vector.shape_cast %144 : vector<1x32xf32> to vector<32xf32>
    %146 = arith.truncf %140 : vector<8x32xf32> to vector<8x32xbf16>
    %147 = vector.extract_strided_slice %141 {offsets = [0, 0], sizes = [32, 32], strides = [1, 1]} : vector<32x96xbf16> to vector<32x32xbf16>
    %cst_56 = arith.constant dense<0.000000e+00> : vector<8x32xf32>
    %148 = tpu.matmul %146, %147, %cst_56 {dimension_numbers = #tpu.dot_dimension_numbers<[1], [0], [0], [1], [0, 0, 1, 1], [], []>} : vector<8x32xbf16>, vector<32x32xbf16>, vector<8x32xf32> -> vector<8x32xf32>
    %149 = vector.extract_strided_slice %142 {offsets = [0, 0], sizes = [1, 32], strides = [1, 1]} : vector<1x96xf32> to vector<1x32xf32>
    %150 = vector.broadcast %149 : vector<1x32xf32> to vector<8x32xf32>
    %151 = arith.addf %148, %150 : vector<8x32xf32>
    %152 = arith.truncf %5 : vector<8x32xf32> to vector<8x32xbf16>
    %153 = vector.extract_strided_slice %141 {offsets = [0, 32], sizes = [32, 64], strides = [1, 1]} : vector<32x96xbf16> to vector<32x64xbf16>
    %cst_57 = arith.constant dense<0.000000e+00> : vector<8x64xf32>
    %154 = tpu.matmul %152, %153, %cst_57 {dimension_numbers = #tpu.dot_dimension_numbers<[1], [0], [0], [1], [0, 0, 1, 1], [], []>} : vector<8x32xbf16>, vector<32x64xbf16>, vector<8x64xf32> -> vector<8x64xf32>
    %155 = vector.extract_strided_slice %142 {offsets = [0, 32], sizes = [1, 64], strides = [1, 1]} : vector<1x96xf32> to vector<1x64xf32>
    %156 = vector.broadcast %155 : vector<1x64xf32> to vector<8x64xf32>
    %157 = arith.addf %154, %156 : vector<8x64xf32>
    %158 = arith.truncf %151 : vector<8x32xf32> to vector<8x32xbf16>
    %159 = vector.extract_strided_slice %157 {offsets = [0, 0], sizes = [8, 32], strides = [1, 1]} : vector<8x64xf32> to vector<8x32xf32>
    %160 = arith.truncf %159 : vector<8x32xf32> to vector<8x32xbf16>
    %161 = vector.extract_strided_slice %157 {offsets = [0, 32], sizes = [8, 32], strides = [1, 1]} : vector<8x64xf32> to vector<8x32xf32>
    %162 = arith.truncf %161 : vector<8x32xf32> to vector<8x32xbf16>
    %163 = vector.extract_strided_slice %158 {offsets = [0, 0], sizes = [8, 8], strides = [1, 1]} : vector<8x32xbf16> to vector<8x8xbf16>
    %164 = vector.extract_strided_slice %160 {offsets = [0, 0], sizes = [8, 8], strides = [1, 1]} : vector<8x32xbf16> to vector<8x8xbf16>
    %165 = tpu.transpose %164, [1, 0] : vector<8x8xbf16> -> vector<8x8xbf16>
    %cst_58 = arith.constant dense<0.000000e+00> : vector<8x8xf32>
    %166 = tpu.matmul %163, %165, %cst_58 {dimension_numbers = #tpu.dot_dimension_numbers<[1], [0], [0], [1], [0, 0, 1, 1], [], []>} : vector<8x8xbf16>, vector<8x8xbf16>, vector<8x8xf32> -> vector<8x8xf32>
    %cst_59 = arith.constant dense<0xFF800000> : vector<8xf32>
    %167 = vector.multi_reduction <maximumf>, %166, %cst_59 [1] : vector<8x8xf32> to vector<8xf32>
    %168 = vector.shape_cast %167 : vector<8xf32> to vector<8x1xf32>
    %169 = vector.broadcast %168 : vector<8x1xf32> to vector<8x8xf32>
    %170 = arith.subf %166, %169 : vector<8x8xf32>
    %171 = math.exp %170 : vector<8x8xf32>
    %cst_60 = arith.constant dense<0.000000e+00> : vector<8xf32>
    %172 = vector.multi_reduction <add>, %171, %cst_60 [1] : vector<8x8xf32> to vector<8xf32>
    %173 = vector.shape_cast %172 : vector<8xf32> to vector<8x1xf32>
    %174 = vector.broadcast %173 : vector<8x1xf32> to vector<8x8xf32>
    %175 = arith.divf %171, %174 : vector<8x8xf32>
    %c0_61 = arith.constant 0 : index
    %c0_62 = arith.constant 0 : index
    %c0_63 = arith.constant 0 : index
    %c0_64 = arith.constant 0 : index
    %176 = vector.load %arg17[%c0_61, %c0_62, %c0_63, %c0_64] : memref<1x4x8x8xf32, #tpu.memory_space<vmem>>, vector<1x1x8x8xf32>
    %177 = vector.shape_cast %176 : vector<1x1x8x8xf32> to vector<8x8xf32>
    %178 = vector.shape_cast %175 : vector<8x8xf32> to vector<1x1x8x8xf32>
    tpu.vector_store %arg17[%c0_61, %c0_62, %c0_63, %c0_64], %178 {strides = array<i32>} : memref<1x4x8x8xf32, #tpu.memory_space<vmem>>, vector<1x1x8x8xf32>,
    %179 = arith.truncf %175 : vector<8x8xf32> to vector<8x8xbf16>
    %180 = vector.extract_strided_slice %162 {offsets = [0, 0], sizes = [8, 8], strides = [1, 1]} : vector<8x32xbf16> to vector<8x8xbf16>
    %cst_65 = arith.constant dense<0.000000e+00> : vector<8x8xf32>
    %181 = tpu.matmul %179, %180, %cst_65 {dimension_numbers = #tpu.dot_dimension_numbers<[1], [0], [0], [1], [0, 0, 1, 1], [], []>} : vector<8x8xbf16>, vector<8x8xbf16>, vector<8x8xf32> -> vector<8x8xf32>
    %182 = arith.truncf %181 : vector<8x8xf32> to vector<8x8xbf16>
    %c0_66 = arith.constant 0 : index
    %c0_67 = arith.constant 0 : index
    %183 = vector.load %arg18[%c0_66, %c0_67] : memref<8x32xbf16, #tpu.memory_space<vmem>>, vector<8x8xbf16>
    tpu.vector_store %arg18[%c0_66, %c0_67], %182 {strides = array<i32>} : memref<8x32xbf16, #tpu.memory_space<vmem>>, vector<8x8xbf16>,
    %184 = vector.extract_strided_slice %158 {offsets = [0, 8], sizes = [8, 8], strides = [1, 1]} : vector<8x32xbf16> to vector<8x8xbf16>
    %185 = vector.extract_strided_slice %160 {offsets = [0, 8], sizes = [8, 8], strides = [1, 1]} : vector<8x32xbf16> to vector<8x8xbf16>
    %186 = tpu.transpose %185, [1, 0] : vector<8x8xbf16> -> vector<8x8xbf16>
    %cst_68 = arith.constant dense<0.000000e+00> : vector<8x8xf32>
    %187 = tpu.matmul %184, %186, %cst_68 {dimension_numbers = #tpu.dot_dimension_numbers<[1], [0], [0], [1], [0, 0, 1, 1], [], []>} : vector<8x8xbf16>, vector<8x8xbf16>, vector<8x8xf32> -> vector<8x8xf32>
    %cst_69 = arith.constant dense<0xFF800000> : vector<8xf32>
    %188 = vector.multi_reduction <maximumf>, %187, %cst_69 [1] : vector<8x8xf32> to vector<8xf32>
    %189 = vector.shape_cast %188 : vector<8xf32> to vector<8x1xf32>
    %190 = vector.broadcast %189 : vector<8x1xf32> to vector<8x8xf32>
    %191 = arith.subf %187, %190 : vector<8x8xf32>
    %192 = math.exp %191 : vector<8x8xf32>
    %cst_70 = arith.constant dense<0.000000e+00> : vector<8xf32>
    %193 = vector.multi_reduction <add>, %192, %cst_70 [1] : vector<8x8xf32> to vector<8xf32>
    %194 = vector.shape_cast %193 : vector<8xf32> to vector<8x1xf32>
    %195 = vector.broadcast %194 : vector<8x1xf32> to vector<8x8xf32>
    %196 = arith.divf %192, %195 : vector<8x8xf32>
    %c0_71 = arith.constant 0 : index
    %c1 = arith.constant 1 : index
    %c0_72 = arith.constant 0 : index
    %c0_73 = arith.constant 0 : index
    %197 = vector.load %arg17[%c0_71, %c1, %c0_72, %c0_73] : memref<1x4x8x8xf32, #tpu.memory_space<vmem>>, vector<1x1x8x8xf32>
    %198 = vector.shape_cast %197 : vector<1x1x8x8xf32> to vector<8x8xf32>
    %199 = vector.shape_cast %196 : vector<8x8xf32> to vector<1x1x8x8xf32>
    tpu.vector_store %arg17[%c0_71, %c1, %c0_72, %c0_73], %199 {strides = array<i32>} : memref<1x4x8x8xf32, #tpu.memory_space<vmem>>, vector<1x1x8x8xf32>,
    %200 = arith.truncf %196 : vector<8x8xf32> to vector<8x8xbf16>
    %201 = vector.extract_strided_slice %162 {offsets = [0, 8], sizes = [8, 8], strides = [1, 1]} : vector<8x32xbf16> to vector<8x8xbf16>
    %cst_74 = arith.constant dense<0.000000e+00> : vector<8x8xf32>
    %202 = tpu.matmul %200, %201, %cst_74 {dimension_numbers = #tpu.dot_dimension_numbers<[1], [0], [0], [1], [0, 0, 1, 1], [], []>} : vector<8x8xbf16>, vector<8x8xbf16>, vector<8x8xf32> -> vector<8x8xf32>
    %203 = arith.truncf %202 : vector<8x8xf32> to vector<8x8xbf16>
    %c0_75 = arith.constant 0 : index
    %c8_76 = arith.constant 8 : index
    %204 = vector.load %arg18[%c0_75, %c8_76] : memref<8x32xbf16, #tpu.memory_space<vmem>>, vector<8x8xbf16>
    tpu.vector_store %arg18[%c0_75, %c8_76], %203 {strides = array<i32>} : memref<8x32xbf16, #tpu.memory_space<vmem>>, vector<8x8xbf16>,
    %205 = vector.extract_strided_slice %158 {offsets = [0, 16], sizes = [8, 8], strides = [1, 1]} : vector<8x32xbf16> to vector<8x8xbf16>
    %206 = vector.extract_strided_slice %160 {offsets = [0, 16], sizes = [8, 8], strides = [1, 1]} : vector<8x32xbf16> to vector<8x8xbf16>
    %207 = tpu.transpose %206, [1, 0] : vector<8x8xbf16> -> vector<8x8xbf16>
    %cst_77 = arith.constant dense<0.000000e+00> : vector<8x8xf32>
    %208 = tpu.matmul %205, %207, %cst_77 {dimension_numbers = #tpu.dot_dimension_numbers<[1], [0], [0], [1], [0, 0, 1, 1], [], []>} : vector<8x8xbf16>, vector<8x8xbf16>, vector<8x8xf32> -> vector<8x8xf32>
    %cst_78 = arith.constant dense<0xFF800000> : vector<8xf32>
    %209 = vector.multi_reduction <maximumf>, %208, %cst_78 [1] : vector<8x8xf32> to vector<8xf32>
    %210 = vector.shape_cast %209 : vector<8xf32> to vector<8x1xf32>
    %211 = vector.broadcast %210 : vector<8x1xf32> to vector<8x8xf32>
    %212 = arith.subf %208, %211 : vector<8x8xf32>
    %213 = math.exp %212 : vector<8x8xf32>
    %cst_79 = arith.constant dense<0.000000e+00> : vector<8xf32>
    %214 = vector.multi_reduction <add>, %213, %cst_79 [1] : vector<8x8xf32> to vector<8xf32>
    %215 = vector.shape_cast %214 : vector<8xf32> to vector<8x1xf32>
    %216 = vector.broadcast %215 : vector<8x1xf32> to vector<8x8xf32>
    %217 = arith.divf %213, %216 : vector<8x8xf32>
    %c0_80 = arith.constant 0 : index
    %c2 = arith.constant 2 : index
    %c0_81 = arith.constant 0 : index
    %c0_82 = arith.constant 0 : index
    %218 = vector.load %arg17[%c0_80, %c2, %c0_81, %c0_82] : memref<1x4x8x8xf32, #tpu.memory_space<vmem>>, vector<1x1x8x8xf32>
    %219 = vector.shape_cast %218 : vector<1x1x8x8xf32> to vector<8x8xf32>
    %220 = vector.shape_cast %217 : vector<8x8xf32> to vector<1x1x8x8xf32>
    tpu.vector_store %arg17[%c0_80, %c2, %c0_81, %c0_82], %220 {strides = array<i32>} : memref<1x4x8x8xf32, #tpu.memory_space<vmem>>, vector<1x1x8x8xf32>,
    %221 = arith.truncf %217 : vector<8x8xf32> to vector<8x8xbf16>
    %222 = vector.extract_strided_slice %162 {offsets = [0, 16], sizes = [8, 8], strides = [1, 1]} : vector<8x32xbf16> to vector<8x8xbf16>
    %cst_83 = arith.constant dense<0.000000e+00> : vector<8x8xf32>
    %223 = tpu.matmul %221, %222, %cst_83 {dimension_numbers = #tpu.dot_dimension_numbers<[1], [0], [0], [1], [0, 0, 1, 1], [], []>} : vector<8x8xbf16>, vector<8x8xbf16>, vector<8x8xf32> -> vector<8x8xf32>
    %224 = arith.truncf %223 : vector<8x8xf32> to vector<8x8xbf16>
    %c0_84 = arith.constant 0 : index
    %c16_85 = arith.constant 16 : index
    %225 = vector.load %arg18[%c0_84, %c16_85] : memref<8x32xbf16, #tpu.memory_space<vmem>>, vector<8x8xbf16>
    tpu.vector_store %arg18[%c0_84, %c16_85], %224 {strides = array<i32>} : memref<8x32xbf16, #tpu.memory_space<vmem>>, vector<8x8xbf16>,
    %226 = vector.extract_strided_slice %158 {offsets = [0, 24], sizes = [8, 8], strides = [1, 1]} : vector<8x32xbf16> to vector<8x8xbf16>
    %227 = vector.extract_strided_slice %160 {offsets = [0, 24], sizes = [8, 8], strides = [1, 1]} : vector<8x32xbf16> to vector<8x8xbf16>
    %228 = tpu.transpose %227, [1, 0] : vector<8x8xbf16> -> vector<8x8xbf16>
    %cst_86 = arith.constant dense<0.000000e+00> : vector<8x8xf32>
    %229 = tpu.matmul %226, %228, %cst_86 {dimension_numbers = #tpu.dot_dimension_numbers<[1], [0], [0], [1], [0, 0, 1, 1], [], []>} : vector<8x8xbf16>, vector<8x8xbf16>, vector<8x8xf32> -> vector<8x8xf32>
    %cst_87 = arith.constant dense<0xFF800000> : vector<8xf32>
    %230 = vector.multi_reduction <maximumf>, %229, %cst_87 [1] : vector<8x8xf32> to vector<8xf32>
    %231 = vector.shape_cast %230 : vector<8xf32> to vector<8x1xf32>
    %232 = vector.broadcast %231 : vector<8x1xf32> to vector<8x8xf32>
    %233 = arith.subf %229, %232 : vector<8x8xf32>
    %234 = math.exp %233 : vector<8x8xf32>
    %cst_88 = arith.constant dense<0.000000e+00> : vector<8xf32>
    %235 = vector.multi_reduction <add>, %234, %cst_88 [1] : vector<8x8xf32> to vector<8xf32>
    %236 = vector.shape_cast %235 : vector<8xf32> to vector<8x1xf32>
    %237 = vector.broadcast %236 : vector<8x1xf32> to vector<8x8xf32>
    %238 = arith.divf %234, %237 : vector<8x8xf32>
    %c0_89 = arith.constant 0 : index
    %c3 = arith.constant 3 : index
    %c0_90 = arith.constant 0 : index
    %c0_91 = arith.constant 0 : index
    %239 = vector.load %arg17[%c0_89, %c3, %c0_90, %c0_91] : memref<1x4x8x8xf32, #tpu.memory_space<vmem>>, vector<1x1x8x8xf32>
    %240 = vector.shape_cast %239 : vector<1x1x8x8xf32> to vector<8x8xf32>
    %241 = vector.shape_cast %238 : vector<8x8xf32> to vector<1x1x8x8xf32>
    tpu.vector_store %arg17[%c0_89, %c3, %c0_90, %c0_91], %241 {strides = array<i32>} : memref<1x4x8x8xf32, #tpu.memory_space<vmem>>, vector<1x1x8x8xf32>,
    %242 = arith.truncf %238 : vector<8x8xf32> to vector<8x8xbf16>
    %243 = vector.extract_strided_slice %162 {offsets = [0, 24], sizes = [8, 8], strides = [1, 1]} : vector<8x32xbf16> to vector<8x8xbf16>
    %cst_92 = arith.constant dense<0.000000e+00> : vector<8x8xf32>
    %244 = tpu.matmul %242, %243, %cst_92 {dimension_numbers = #tpu.dot_dimension_numbers<[1], [0], [0], [1], [0, 0, 1, 1], [], []>} : vector<8x8xbf16>, vector<8x8xbf16>, vector<8x8xf32> -> vector<8x8xf32>
    %245 = arith.truncf %244 : vector<8x8xf32> to vector<8x8xbf16>
    %c0_93 = arith.constant 0 : index
    %c24_94 = arith.constant 24 : index
    %246 = vector.load %arg18[%c0_93, %c24_94] : memref<8x32xbf16, #tpu.memory_space<vmem>>, vector<8x8xbf16>
    tpu.vector_store %arg18[%c0_93, %c24_94], %245 {strides = array<i32>} : memref<8x32xbf16, #tpu.memory_space<vmem>>, vector<8x8xbf16>,
    %c0_95 = arith.constant 0 : index
    %c0_96 = arith.constant 0 : index
    %247 = vector.load %arg18[%c0_95, %c0_96] : memref<8x32xbf16, #tpu.memory_space<vmem>>, vector<8x32xbf16>
    %cst_97 = arith.constant dense<0.000000e+00> : vector<8x32xf32>
    %248 = tpu.matmul %247, %143, %cst_97 {dimension_numbers = #tpu.dot_dimension_numbers<[1], [0], [0], [1], [0, 0, 1, 1], [], []>} : vector<8x32xbf16>, vector<32x32xbf16>, vector<8x32xf32> -> vector<8x32xf32>
    %249 = vector.shape_cast %145 : vector<32xf32> to vector<1x32xf32>
    %250 = vector.broadcast %249 : vector<1x32xf32> to vector<8x32xf32>
    %251 = arith.addf %248, %250 : vector<8x32xf32>
    %252 = arith.addf %140, %251 : vector<8x32xf32>
    %253 = vector.extract_strided_slice %6 {offsets = [1, 0], sizes = [1, 32], strides = [1, 1]} : vector<3x32xf32> to vector<1x32xf32>
    %254 = vector.shape_cast %253 : vector<1x32xf32> to vector<32xf32>
    %255 = vector.extract_strided_slice %7 {offsets = [1, 0], sizes = [1, 32], strides = [1, 1]} : vector<3x32xf32> to vector<1x32xf32>
    %256 = vector.shape_cast %255 : vector<1x32xf32> to vector<32xf32>
    %cst_98 = arith.constant dense<0.000000e+00> : vector<8xf32>
    %257 = vector.multi_reduction <add>, %252, %cst_98 [1] : vector<8x32xf32> to vector<8xf32>
    %258 = vector.shape_cast %257 : vector<8xf32> to vector<8x1xf32>
    %cst_99 = arith.constant 3.200000e+01 : f32
    %259 = vector.broadcast %cst_99 : f32 to vector<8x1xf32>
    %260 = arith.divf %258, %259 : vector<8x1xf32>
    %261 = vector.broadcast %260 : vector<8x1xf32> to vector<8x32xf32>
    %262 = arith.subf %252, %261 : vector<8x32xf32>
    %263 = arith.mulf %262, %262 : vector<8x32xf32>
    %cst_100 = arith.constant dense<0.000000e+00> : vector<8xf32>
    %264 = vector.multi_reduction <add>, %263, %cst_100 [1] : vector<8x32xf32> to vector<8xf32>
    %265 = vector.shape_cast %264 : vector<8xf32> to vector<8x1xf32>
    %cst_101 = arith.constant 3.200000e+01 : f32
    %266 = vector.broadcast %cst_101 : f32 to vector<8x1xf32>
    %267 = arith.divf %265, %266 : vector<8x1xf32>
    %268 = vector.broadcast %260 : vector<8x1xf32> to vector<8x32xf32>
    %269 = arith.subf %252, %268 : vector<8x32xf32>
    %cst_102 = arith.constant 9.99999974E-6 : f32
    %270 = vector.broadcast %cst_102 : f32 to vector<8x1xf32>
    %271 = arith.addf %267, %270 : vector<8x1xf32>
    %272 = math.rsqrt %271 : vector<8x1xf32>
    %273 = vector.broadcast %272 : vector<8x1xf32> to vector<8x32xf32>
    %274 = arith.mulf %269, %273 : vector<8x32xf32>
    %275 = vector.shape_cast %254 : vector<32xf32> to vector<1x32xf32>
    %276 = vector.broadcast %275 : vector<1x32xf32> to vector<8x32xf32>
    %277 = arith.mulf %274, %276 : vector<8x32xf32>
    %278 = vector.shape_cast %256 : vector<32xf32> to vector<1x32xf32>
    %279 = vector.broadcast %278 : vector<1x32xf32> to vector<8x32xf32>
    %280 = arith.addf %277, %279 : vector<8x32xf32>
    %c0_103 = arith.constant 0 : index
    %c0_104 = arith.constant 0 : index
    %c0_105 = arith.constant 0 : index
    %281 = vector.load %arg12[%c0_103, %c0_104, %c0_105] : memref<2x32x32xbf16, #tpu.memory_space<vmem>>, vector<2x32x32xbf16>
    %c0_106 = arith.constant 0 : index
    %c0_107 = arith.constant 0 : index
    %282 = vector.load %arg13[%c0_106, %c0_107] : memref<2x32xf32, #tpu.memory_space<vmem>>, vector<2x32xf32>
    %283 = arith.truncf %280 : vector<8x32xf32> to vector<8x32xbf16>
    %284 = vector.extract_strided_slice %281 {offsets = [0, 0, 0], sizes = [1, 32, 32], strides = [1, 1, 1]} : vector<2x32x32xbf16> to vector<1x32x32xbf16>
    %285 = vector.shape_cast %284 : vector<1x32x32xbf16> to vector<32x32xbf16>
    %cst_108 = arith.constant dense<0.000000e+00> : vector<8x32xf32>
    %286 = tpu.matmul %283, %285, %cst_108 {dimension_numbers = #tpu.dot_dimension_numbers<[1], [0], [0], [1], [0, 0, 1, 1], [], []>} : vector<8x32xbf16>, vector<32x32xbf16>, vector<8x32xf32> -> vector<8x32xf32>
    %287 = vector.extract_strided_slice %282 {offsets = [0, 0], sizes = [1, 32], strides = [1, 1]} : vector<2x32xf32> to vector<1x32xf32>
    %288 = vector.shape_cast %287 : vector<1x32xf32> to vector<32xf32>
    %289 = vector.shape_cast %288 : vector<32xf32> to vector<1x32xf32>
    %290 = vector.broadcast %289 : vector<1x32xf32> to vector<8x32xf32>
    %291 = arith.addf %286, %290 : vector<8x32xf32>
    %cst_109 = arith.constant 0.000000e+00 : f32
    %292 = vector.broadcast %cst_109 : f32 to vector<8x32xf32>
    %293 = arith.maximumf %291, %292 : vector<8x32xf32>
    %294 = arith.truncf %293 : vector<8x32xf32> to vector<8x32xbf16>
    %295 = vector.extract_strided_slice %281 {offsets = [1, 0, 0], sizes = [1, 32, 32], strides = [1, 1, 1]} : vector<2x32x32xbf16> to vector<1x32x32xbf16>
    %296 = vector.shape_cast %295 : vector<1x32x32xbf16> to vector<32x32xbf16>
    %cst_110 = arith.constant dense<0.000000e+00> : vector<8x32xf32>
    %297 = tpu.matmul %294, %296, %cst_110 {dimension_numbers = #tpu.dot_dimension_numbers<[1], [0], [0], [1], [0, 0, 1, 1], [], []>} : vector<8x32xbf16>, vector<32x32xbf16>, vector<8x32xf32> -> vector<8x32xf32>
    %298 = vector.extract_strided_slice %282 {offsets = [1, 0], sizes = [1, 32], strides = [1, 1]} : vector<2x32xf32> to vector<1x32xf32>
    %299 = vector.shape_cast %298 : vector<1x32xf32> to vector<32xf32>
    %300 = vector.shape_cast %299 : vector<32xf32> to vector<1x32xf32>
    %301 = vector.broadcast %300 : vector<1x32xf32> to vector<8x32xf32>
    %302 = arith.addf %297, %301 : vector<8x32xf32>
    %303 = arith.addf %280, %302 : vector<8x32xf32>
    %304 = vector.extract_strided_slice %6 {offsets = [2, 0], sizes = [1, 32], strides = [1, 1]} : vector<3x32xf32> to vector<1x32xf32>
    %305 = vector.shape_cast %304 : vector<1x32xf32> to vector<32xf32>
    %306 = vector.extract_strided_slice %7 {offsets = [2, 0], sizes = [1, 32], strides = [1, 1]} : vector<3x32xf32> to vector<1x32xf32>
    %307 = vector.shape_cast %306 : vector<1x32xf32> to vector<32xf32>
    %cst_111 = arith.constant dense<0.000000e+00> : vector<8xf32>
    %308 = vector.multi_reduction <add>, %303, %cst_111 [1] : vector<8x32xf32> to vector<8xf32>
    %309 = vector.shape_cast %308 : vector<8xf32> to vector<8x1xf32>
    %cst_112 = arith.constant 3.200000e+01 : f32
    %310 = vector.broadcast %cst_112 : f32 to vector<8x1xf32>
    %311 = arith.divf %309, %310 : vector<8x1xf32>
    %312 = vector.broadcast %311 : vector<8x1xf32> to vector<8x32xf32>
    %313 = arith.subf %303, %312 : vector<8x32xf32>
    %314 = arith.mulf %313, %313 : vector<8x32xf32>
    %cst_113 = arith.constant dense<0.000000e+00> : vector<8xf32>
    %315 = vector.multi_reduction <add>, %314, %cst_113 [1] : vector<8x32xf32> to vector<8xf32>
    %316 = vector.shape_cast %315 : vector<8xf32> to vector<8x1xf32>
    %cst_114 = arith.constant 3.200000e+01 : f32
    %317 = vector.broadcast %cst_114 : f32 to vector<8x1xf32>
    %318 = arith.divf %316, %317 : vector<8x1xf32>
    %319 = vector.broadcast %311 : vector<8x1xf32> to vector<8x32xf32>
    %320 = arith.subf %303, %319 : vector<8x32xf32>
    %cst_115 = arith.constant 9.99999974E-6 : f32
    %321 = vector.broadcast %cst_115 : f32 to vector<8x1xf32>
    %322 = arith.addf %318, %321 : vector<8x1xf32>
    %323 = math.rsqrt %322 : vector<8x1xf32>
    %324 = vector.broadcast %323 : vector<8x1xf32> to vector<8x32xf32>
    %325 = arith.mulf %320, %324 : vector<8x32xf32>
    %326 = vector.shape_cast %305 : vector<32xf32> to vector<1x32xf32>
    %327 = vector.broadcast %326 : vector<1x32xf32> to vector<8x32xf32>
    %328 = arith.mulf %325, %327 : vector<8x32xf32>
    %329 = vector.shape_cast %307 : vector<32xf32> to vector<1x32xf32>
    %330 = vector.broadcast %329 : vector<1x32xf32> to vector<8x32xf32>
    %331 = arith.addf %328, %330 : vector<8x32xf32>
    %c0_116 = arith.constant 0 : index
    %c0_117 = arith.constant 0 : index
    %c0_118 = arith.constant 0 : index
    %332 = vector.load %arg16[%c0_116, %c0_117, %c0_118] : memref<1x8x32xf32, #tpu.memory_space<vmem>>, vector<1x8x32xf32>
    %333 = vector.shape_cast %332 : vector<1x8x32xf32> to vector<8x32xf32>
    %334 = vector.shape_cast %331 : vector<8x32xf32> to vector<1x8x32xf32>
    tpu.vector_store %arg16[%c0_116, %c0_117, %c0_118], %334 {strides = array<i32>} : memref<1x8x32xf32, #tpu.memory_space<vmem>>, vector<1x8x32xf32>,
    return
  }
  func.func @transform_0(%arg0: i32, %arg1: i32) -> (i32, i32, i32) {
    %c0_i32 = arith.constant 0 : i32
    %c0_i32_0 = arith.constant 0 : i32
    return %arg0, %arg1, %c0_i32 : i32, i32, i32
  }
  func.func @transform_1(%arg0: i32, %arg1: i32) -> (i32, i32, i32) {
    %c0_i32 = arith.constant 0 : i32
    %c0_i32_0 = arith.constant 0 : i32
    %c0_i32_1 = arith.constant 0 : i32
    return %arg0, %c0_i32, %c0_i32_0 : i32, i32, i32
  }
  func.func @transform_2(%arg0: i32, %arg1: i32) -> (i32, i32, i32) {
    %c0_i32 = arith.constant 0 : i32
    %c0_i32_0 = arith.constant 0 : i32
    %c0_i32_1 = arith.constant 0 : i32
    return %arg0, %c0_i32, %c0_i32_0 : i32, i32, i32
  }
  func.func @transform_3(%arg0: i32, %arg1: i32) -> (i32, i32) {
    %c0_i32 = arith.constant 0 : i32
    %c0_i32_0 = arith.constant 0 : i32
    %c0_i32_1 = arith.constant 0 : i32
    return %c0_i32, %c0_i32_0 : i32, i32
  }
  func.func @transform_4(%arg0: i32, %arg1: i32) -> (i32, i32) {
    %c0_i32 = arith.constant 0 : i32
    %c0_i32_0 = arith.constant 0 : i32
    %c0_i32_1 = arith.constant 0 : i32
    return %c0_i32, %c0_i32_0 : i32, i32
  }
  func.func @transform_5(%arg0: i32, %arg1: i32) -> (i32, i32) {
    %c0_i32 = arith.constant 0 : i32
    %c0_i32_0 = arith.constant 0 : i32
    %c0_i32_1 = arith.constant 0 : i32
    return %c0_i32, %c0_i32_0 : i32, i32
  }
  func.func @transform_6(%arg0: i32, %arg1: i32) -> (i32, i32) {
    %c0_i32 = arith.constant 0 : i32
    %c0_i32_0 = arith.constant 0 : i32
    %c0_i32_1 = arith.constant 0 : i32
    return %c0_i32, %c0_i32_0 : i32, i32
  }
  func.func @transform_7(%arg0: i32, %arg1: i32) -> (i32, i32) {
    %c0_i32 = arith.constant 0 : i32
    %c0_i32_0 = arith.constant 0 : i32
    %c0_i32_1 = arith.constant 0 : i32
    return %c0_i32, %c0_i32_0 : i32, i32
  }
  func.func @transform_8(%arg0: i32, %arg1: i32) -> (i32, i32) {
    %c0_i32 = arith.constant 0 : i32
    %c0_i32_0 = arith.constant 0 : i32
    %c0_i32_1 = arith.constant 0 : i32
    return %c0_i32, %c0_i32_0 : i32, i32
  }
  func.func @transform_9(%arg0: i32, %arg1: i32) -> (i32, i32) {
    %c0_i32 = arith.constant 0 : i32
    %c0_i32_0 = arith.constant 0 : i32
    %c0_i32_1 = arith.constant 0 : i32
    return %c0_i32, %c0_i32_0 : i32, i32
  }
  func.func @transform_10(%arg0: i32, %arg1: i32) -> (i32, i32, i32) {
    %c0_i32 = arith.constant 0 : i32
    %c0_i32_0 = arith.constant 0 : i32
    %c0_i32_1 = arith.constant 0 : i32
    %c0_i32_2 = arith.constant 0 : i32
    return %c0_i32, %c0_i32_0, %c0_i32_1 : i32, i32, i32
  }
  func.func @transform_11(%arg0: i32, %arg1: i32) -> (i32, i32) {
    %c0_i32 = arith.constant 0 : i32
    %c0_i32_0 = arith.constant 0 : i32
    %c0_i32_1 = arith.constant 0 : i32
    return %c0_i32, %c0_i32_0 : i32, i32
  }
  func.func @transform_12(%arg0: i32, %arg1: i32) -> (i32, i32) {
    %c0_i32 = arith.constant 0 : i32
    %c0_i32_0 = arith.constant 0 : i32
    %c0_i32_1 = arith.constant 0 : i32
    return %c0_i32, %c0_i32_0 : i32, i32
  }
  func.func @transform_13(%arg0: i32, %arg1: i32) -> (i32, i32) {
    %c0_i32 = arith.constant 0 : i32
    %c0_i32_0 = arith.constant 0 : i32
    %c0_i32_1 = arith.constant 0 : i32
    return %c0_i32, %c0_i32_0 : i32, i32
  }
  func.func @transform_14(%arg0: i32, %arg1: i32) -> (i32, i32, i32) {
    %c0_i32 = arith.constant 0 : i32
    %c0_i32_0 = arith.constant 0 : i32
    return %arg0, %arg1, %c0_i32 : i32, i32, i32
  }
  func.func @transform_15(%arg0: i32, %arg1: i32) -> (i32, i32, i32, i32) {
    %c0_i32 = arith.constant 0 : i32
    %c0_i32_0 = arith.constant 0 : i32
    %c0_i32_1 = arith.constant 0 : i32
    return %arg0, %c0_i32, %arg1, %c0_i32_0 : i32, i32, i32, i32
  }
}

module attributes {stable_mosaic.version = 11 : i64} {
  func.func @decoder_layer_kernel(%arg0: i32, %arg1: i32, %arg2: memref<1x8x32xf32, #tpu.memory_space<vmem>>, %arg3: memref<1x8x32xf32, #tpu.memory_space<vmem>>, %arg4: memref<1x8x32xf32, #tpu.memory_space<vmem>>, %arg5: memref<32x96xbf16, #tpu.memory_space<vmem>>, %arg6: memref<1x96xf32, #tpu.memory_space<vmem>>, %arg7: memref<32x32xbf16, #tpu.memory_space<vmem>>, %arg8: memref<32x96xbf16, #tpu.memory_space<vmem>>, %arg9: memref<1x96xf32, #tpu.memory_space<vmem>>, %arg10: memref<32x32xbf16, #tpu.memory_space<vmem>>, %arg11: memref<2x32xf32, #tpu.memory_space<vmem>>, %arg12: memref<2x32x32xbf16, #tpu.memory_space<vmem>>, %arg13: memref<2x32xf32, #tpu.memory_space<vmem>>, %arg14: memref<3x32xf32, #tpu.memory_space<vmem>>, %arg15: memref<3x32xf32, #tpu.memory_space<vmem>>, %arg16: memref<1x8x32xf32, #tpu.memory_space<vmem>>, %arg17: memref<1x4x8x8xf32, #tpu.memory_space<vmem>>, %arg18: memref<8x32xbf16, #tpu.memory_space<vmem>>) attributes {dimension_semantics = [#tpu.dimension_semantics<parallel>, #tpu.dimension_semantics<parallel>], iteration_bounds = array<i64: 2, 1>, scalar_prefetch = 0 : i64, scratch_operands = 1 : i64, tpu.core_type = #tpu.core_type<tc>, window_params = [{transform_indices = @transform_0, window_bounds = array<i64: 1, 8, 32>}, {transform_indices = @transform_1, window_bounds = array<i64: 1, 8, 32>}, {transform_indices = @transform_2, window_bounds = array<i64: 1, 8, 32>}, {pipeline_mode = #tpu.pipeline_mode<synchronous>, transform_indices = @transform_3, window_bounds = array<i64: 32, 96>}, {pipeline_mode = #tpu.pipeline_mode<synchronous>, transform_indices = @transform_4, window_bounds = array<i64: 1, 96>}, {pipeline_mode = #tpu.pipeline_mode<synchronous>, transform_indices = @transform_5, window_bounds = array<i64: 32, 32>}, {pipeline_mode = #tpu.pipeline_mode<synchronous>, transform_indices = @transform_6, window_bounds = array<i64: 32, 96>}, {pipeline_mode = #tpu.pipeline_mode<synchronous>, transform_indices = @transform_7, window_bounds = array<i64: 1, 96>}, {pipeline_mode = #tpu.pipeline_mode<synchronous>, transform_indices = @transform_8, window_bounds = array<i64: 32, 32>}, {pipeline_mode = #tpu.pipeline_mode<synchronous>, transform_indices = @transform_9, window_bounds = array<i64: 2, 32>}, {pipeline_mode = #tpu.pipeline_mode<synchronous>, transform_indices = @transform_10, window_bounds = array<i64: 2, 32, 32>}, {pipeline_mode = #tpu.pipeline_mode<synchronous>, transform_indices = @transform_11, window_bounds = array<i64: 2, 32>}, {pipeline_mode = #tpu.pipeline_mode<synchronous>, transform_indices = @transform_12, window_bounds = array<i64: 3, 32>}, {pipeline_mode = #tpu.pipeline_mode<synchronous>, transform_indices = @transform_13, window_bounds = array<i64: 3, 32>}, {transform_indices = @transform_14, window_bounds = array<i64: 1, 8, 32>}, {transform_indices = @transform_15, window_bounds = array<i64: 1, 4, 8, 8>}]} {
    %c0 = arith.constant 0 : index
    %c0_0 = arith.constant 0 : index
    %c0_1 = arith.constant 0 : index
    %0 = vector.load %arg2[%c0, %c0_0, %c0_1] : memref<1x8x32xf32, #tpu.memory_space<vmem>>, vector<1x8x32xf32>
    %1 = vector.shape_cast %0 : vector<1x8x32xf32> to vector<8x32xf32>
    %c0_2 = arith.constant 0 : index
    %c0_3 = arith.constant 0 : index
    %c0_4 = arith.constant 0 : index
    %2 = vector.load %arg3[%c0_2, %c0_3, %c0_4] : memref<1x8x32xf32, #tpu.memory_space<vmem>>, vector<1x8x32xf32>
    %3 = vector.shape_cast %2 : vector<1x8x32xf32> to vector<8x32xf32>
    %c0_5 = arith.constant 0 : index
    %c0_6 = arith.constant 0 : index
    %c0_7 = arith.constant 0 : index
    %4 = vector.load %arg4[%c0_5, %c0_6, %c0_7] : memref<1x8x32xf32, #tpu.memory_space<vmem>>, vector<1x8x32xf32>
    %5 = vector.shape_cast %4 : vector<1x8x32xf32> to vector<8x32xf32>
    %c0_8 = arith.constant 0 : index
    %c0_9 = arith.constant 0 : index
    %6 = vector.load %arg14[%c0_8, %c0_9] : memref<3x32xf32, #tpu.memory_space<vmem>>, vector<3x32xf32>
    %c0_10 = arith.constant 0 : index
    %c0_11 = arith.constant 0 : index
    %7 = vector.load %arg15[%c0_10, %c0_11] : memref<3x32xf32, #tpu.memory_space<vmem>>, vector<3x32xf32>
    %c0_12 = arith.constant 0 : index
    %c0_13 = arith.constant 0 : index
    %8 = vector.load %arg11[%c0_12, %c0_13] : memref<2x32xf32, #tpu.memory_space<vmem>>, vector<2x32xf32>
    %c0_14 = arith.constant 0 : index
    %c0_15 = arith.constant 0 : index
    %9 = vector.load %arg5[%c0_14, %c0_15] : memref<32x96xbf16, #tpu.memory_space<vmem>>, vector<32x96xbf16>
    %c0_16 = arith.constant 0 : index
    %c0_17 = arith.constant 0 : index
    %10 = vector.load %arg6[%c0_16, %c0_17] : memref<1x96xf32, #tpu.memory_space<vmem>>, vector<1x96xf32>
    %c0_18 = arith.constant 0 : index
    %c0_19 = arith.constant 0 : index
    %11 = vector.load %arg7[%c0_18, %c0_19] : memref<32x32xbf16, #tpu.memory_space<vmem>>, vector<32x32xbf16>
    %12 = vector.extract_strided_slice %8 {offsets = [0, 0], sizes = [1, 32], strides = [1, 1]} : vector<2x32xf32> to vector<1x32xf32>
    %13 = vector.shape_cast %12 : vector<1x32xf32> to vector<32xf32>
    %14 = arith.truncf %1 : vector<8x32xf32> to vector<8x32xbf16>
    %15 = vector.extract_strided_slice %9 {offsets = [0, 0], sizes = [32, 32], strides = [1, 1]} : vector<32x96xbf16> to vector<32x32xbf16>
    %cst = arith.constant dense<0.000000e+00> : vector<8x32xf32>
    %16 = tpu.matmul %14, %15, %cst {dimension_numbers = #tpu.dot_dimension_numbers<[1], [0], [0], [1], [0, 0, 1, 1], [], []>} : vector<8x32xbf16>, vector<32x32xbf16>, vector<8x32xf32> -> vector<8x32xf32>
    %17 = vector.extract_strided_slice %10 {offsets = [0, 0], sizes = [1, 32], strides = [1, 1]} : vector<1x96xf32> to vector<1x32xf32>
    %18 = vector.broadcast %17 : vector<1x32xf32> to vector<8x32xf32>
    %19 = arith.addf %16, %18 : vector<8x32xf32>
    %20 = arith.truncf %3 : vector<8x32xf32> to vector<8x32xbf16>
    %21 = vector.extract_strided_slice %9 {offsets = [0, 32], sizes = [32, 64], strides = [1, 1]} : vector<32x96xbf16> to vector<32x64xbf16>
    %cst_20 = arith.constant dense<0.000000e+00> : vector<8x64xf32>
    %22 = tpu.matmul %20, %21, %cst_20 {dimension_numbers = #tpu.dot_dimension_numbers<[1], [0], [0], [1], [0, 0, 1, 1], [], []>} : vector<8x32xbf16>, vector<32x64xbf16>, vector<8x64xf32> -> vector<8x64xf32>
    %23 = vector.extract_strided_slice %10 {offsets = [0, 32], sizes = [1, 64], strides = [1, 1]} : vector<1x96xf32> to vector<1x64xf32>
    %24 = vector.broadcast %23 : vector<1x64xf32> to vector<8x64xf32>
    %25 = arith.addf %22, %24 : vector<8x64xf32>
    %26 = arith.truncf %19 : vector<8x32xf32> to vector<8x32xbf16>
    %27 = vector.extract_strided_slice %25 {offsets = [0, 0], sizes = [8, 32], strides = [1, 1]} : vector<8x64xf32> to vector<8x32xf32>
    %28 = arith.truncf %27 : vector<8x32xf32> to vector<8x32xbf16>
    %29 = vector.extract_strided_slice %25 {offsets = [0, 32], sizes = [8, 32], strides = [1, 1]} : vector<8x64xf32> to vector<8x32xf32>
    %30 = arith.truncf %29 : vector<8x32xf32> to vector<8x32xbf16>
    %31 = vector.extract_strided_slice %26 {offsets = [0, 0], sizes = [8, 8], strides = [1, 1]} : vector<8x32xbf16> to vector<8x8xbf16>
    %32 = vector.extract_strided_slice %28 {offsets = [0, 0], sizes = [8, 8], strides = [1, 1]} : vector<8x32xbf16> to vector<8x8xbf16>
    %33 = tpu.transpose %32, [1, 0] : vector<8x8xbf16> -> vector<8x8xbf16>
    %cst_21 = arith.constant dense<0.000000e+00> : vector<8x8xf32>
    %34 = tpu.matmul %31, %33, %cst_21 {dimension_numbers = #tpu.dot_dimension_numbers<[1], [0], [0], [1], [0, 0, 1, 1], [], []>} : vector<8x8xbf16>, vector<8x8xbf16>, vector<8x8xf32> -> vector<8x8xf32>
    %cst_22 = arith.constant dense<0xFF800000> : vector<8xf32>
    %35 = vector.multi_reduction <maximumf>, %34, %cst_22 [1] : vector<8x8xf32> to vector<8xf32>
    %36 = vector.shape_cast %35 : vector<8xf32> to vector<8x1xf32>
    %37 = vector.broadcast %36 : vector<8x1xf32> to vector<8x8xf32>
    %38 = arith.subf %34, %37 : vector<8x8xf32>
    %39 = math.exp %38 : vector<8x8xf32>
    %cst_23 = arith.constant dense<0.000000e+00> : vector<8xf32>
    %40 = vector.multi_reduction <add>, %39, %cst_23 [1] : vector<8x8xf32> to vector<8xf32>
    %41 = vector.shape_cast %40 : vector<8xf32> to vector<8x1xf32>
    %42 = tpu.reciprocal %41 {approx = true} : vector<8x1xf32> -> vector<8x1xf32>
    %43 = vector.broadcast %42 : vector<8x1xf32> to vector<8x8xf32>
    %44 = arith.mulf %39, %43 : vector<8x8xf32>
    %45 = arith.truncf %44 : vector<8x8xf32> to vector<8x8xbf16>
    %46 = vector.extract_strided_slice %30 {offsets = [0, 0], sizes = [8, 8], strides = [1, 1]} : vector<8x32xbf16> to vector<8x8xbf16>
    %cst_24 = arith.constant dense<0.000000e+00> : vector<8x8xf32>
    %47 = tpu.matmul %45, %46, %cst_24 {dimension_numbers = #tpu.dot_dimension_numbers<[1], [0], [0], [1], [0, 0, 1, 1], [], []>} : vector<8x8xbf16>, vector<8x8xbf16>, vector<8x8xf32> -> vector<8x8xf32>
    %48 = arith.truncf %47 : vector<8x8xf32> to vector<8x8xbf16>
    %c0_25 = arith.constant 0 : index
    %c0_26 = arith.constant 0 : index
    %49 = vector.load %arg18[%c0_25, %c0_26] : memref<8x32xbf16, #tpu.memory_space<vmem>>, vector<8x8xbf16>
    tpu.vector_store %arg18[%c0_25, %c0_26], %48 {strides = array<i32>} : memref<8x32xbf16, #tpu.memory_space<vmem>>, vector<8x8xbf16>,
    %50 = vector.extract_strided_slice %26 {offsets = [0, 8], sizes = [8, 8], strides = [1, 1]} : vector<8x32xbf16> to vector<8x8xbf16>
    %51 = vector.extract_strided_slice %28 {offsets = [0, 8], sizes = [8, 8], strides = [1, 1]} : vector<8x32xbf16> to vector<8x8xbf16>
    %52 = tpu.transpose %51, [1, 0] : vector<8x8xbf16> -> vector<8x8xbf16>
    %cst_27 = arith.constant dense<0.000000e+00> : vector<8x8xf32>
    %53 = tpu.matmul %50, %52, %cst_27 {dimension_numbers = #tpu.dot_dimension_numbers<[1], [0], [0], [1], [0, 0, 1, 1], [], []>} : vector<8x8xbf16>, vector<8x8xbf16>, vector<8x8xf32> -> vector<8x8xf32>
    %cst_28 = arith.constant dense<0xFF800000> : vector<8xf32>
    %54 = vector.multi_reduction <maximumf>, %53, %cst_28 [1] : vector<8x8xf32> to vector<8xf32>
    %55 = vector.shape_cast %54 : vector<8xf32> to vector<8x1xf32>
    %56 = vector.broadcast %55 : vector<8x1xf32> to vector<8x8xf32>
    %57 = arith.subf %53, %56 : vector<8x8xf32>
    %58 = math.exp %57 : vector<8x8xf32>
    %cst_29 = arith.constant dense<0.000000e+00> : vector<8xf32>
    %59 = vector.multi_reduction <add>, %58, %cst_29 [1] : vector<8x8xf32> to vector<8xf32>
    %60 = vector.shape_cast %59 : vector<8xf32> to vector<8x1xf32>
    %61 = tpu.reciprocal %60 {approx = true} : vector<8x1xf32> -> vector<8x1xf32>
    %62 = vector.broadcast %61 : vector<8x1xf32> to vector<8x8xf32>
    %63 = arith.mulf %58, %62 : vector<8x8xf32>
    %64 = arith.truncf %63 : vector<8x8xf32> to vector<8x8xbf16>
    %65 = vector.extract_strided_slice %30 {offsets = [0, 8], sizes = [8, 8], strides = [1, 1]} : vector<8x32xbf16> to vector<8x8xbf16>
    %cst_30 = arith.constant dense<0.000000e+00> : vector<8x8xf32>
    %66 = tpu.matmul %64, %65, %cst_30 {dimension_numbers = #tpu.dot_dimension_numbers<[1], [0], [0], [1], [0, 0, 1, 1], [], []>} : vector<8x8xbf16>, vector<8x8xbf16>, vector<8x8xf32> -> vector<8x8xf32>
    %67 = arith.truncf %66 : vector<8x8xf32> to vector<8x8xbf16>
    %c0_31 = arith.constant 0 : index
    %c8 = arith.constant 8 : index
    %68 = vector.load %arg18[%c0_31, %c8] : memref<8x32xbf16, #tpu.memory_space<vmem>>, vector<8x8xbf16>
    tpu.vector_store %arg18[%c0_31, %c8], %67 {strides = array<i32>} : memref<8x32xbf16, #tpu.memory_space<vmem>>, vector<8x8xbf16>,
    %69 = vector.extract_strided_slice %26 {offsets = [0, 16], sizes = [8, 8], strides = [1, 1]} : vector<8x32xbf16> to vector<8x8xbf16>
    %70 = vector.extract_strided_slice %28 {offsets = [0, 16], sizes = [8, 8], strides = [1, 1]} : vector<8x32xbf16> to vector<8x8xbf16>
    %71 = tpu.transpose %70, [1, 0] : vector<8x8xbf16> -> vector<8x8xbf16>
    %cst_32 = arith.constant dense<0.000000e+00> : vector<8x8xf32>
    %72 = tpu.matmul %69, %71, %cst_32 {dimension_numbers = #tpu.dot_dimension_numbers<[1], [0], [0], [1], [0, 0, 1, 1], [], []>} : vector<8x8xbf16>, vector<8x8xbf16>, vector<8x8xf32> -> vector<8x8xf32>
    %cst_33 = arith.constant dense<0xFF800000> : vector<8xf32>
    %73 = vector.multi_reduction <maximumf>, %72, %cst_33 [1] : vector<8x8xf32> to vector<8xf32>
    %74 = vector.shape_cast %73 : vector<8xf32> to vector<8x1xf32>
    %75 = vector.broadcast %74 : vector<8x1xf32> to vector<8x8xf32>
    %76 = arith.subf %72, %75 : vector<8x8xf32>
    %77 = math.exp %76 : vector<8x8xf32>
    %cst_34 = arith.constant dense<0.000000e+00> : vector<8xf32>
    %78 = vector.multi_reduction <add>, %77, %cst_34 [1] : vector<8x8xf32> to vector<8xf32>
    %79 = vector.shape_cast %78 : vector<8xf32> to vector<8x1xf32>
    %80 = tpu.reciprocal %79 {approx = true} : vector<8x1xf32> -> vector<8x1xf32>
    %81 = vector.broadcast %80 : vector<8x1xf32> to vector<8x8xf32>
    %82 = arith.mulf %77, %81 : vector<8x8xf32>
    %83 = arith.truncf %82 : vector<8x8xf32> to vector<8x8xbf16>
    %84 = vector.extract_strided_slice %30 {offsets = [0, 16], sizes = [8, 8], strides = [1, 1]} : vector<8x32xbf16> to vector<8x8xbf16>
    %cst_35 = arith.constant dense<0.000000e+00> : vector<8x8xf32>
    %85 = tpu.matmul %83, %84, %cst_35 {dimension_numbers = #tpu.dot_dimension_numbers<[1], [0], [0], [1], [0, 0, 1, 1], [], []>} : vector<8x8xbf16>, vector<8x8xbf16>, vector<8x8xf32> -> vector<8x8xf32>
    %86 = arith.truncf %85 : vector<8x8xf32> to vector<8x8xbf16>
    %c0_36 = arith.constant 0 : index
    %c16 = arith.constant 16 : index
    %87 = vector.load %arg18[%c0_36, %c16] : memref<8x32xbf16, #tpu.memory_space<vmem>>, vector<8x8xbf16>
    tpu.vector_store %arg18[%c0_36, %c16], %86 {strides = array<i32>} : memref<8x32xbf16, #tpu.memory_space<vmem>>, vector<8x8xbf16>,
    %88 = vector.extract_strided_slice %26 {offsets = [0, 24], sizes = [8, 8], strides = [1, 1]} : vector<8x32xbf16> to vector<8x8xbf16>
    %89 = vector.extract_strided_slice %28 {offsets = [0, 24], sizes = [8, 8], strides = [1, 1]} : vector<8x32xbf16> to vector<8x8xbf16>
    %90 = tpu.transpose %89, [1, 0] : vector<8x8xbf16> -> vector<8x8xbf16>
    %cst_37 = arith.constant dense<0.000000e+00> : vector<8x8xf32>
    %91 = tpu.matmul %88, %90, %cst_37 {dimension_numbers = #tpu.dot_dimension_numbers<[1], [0], [0], [1], [0, 0, 1, 1], [], []>} : vector<8x8xbf16>, vector<8x8xbf16>, vector<8x8xf32> -> vector<8x8xf32>
    %cst_38 = arith.constant dense<0xFF800000> : vector<8xf32>
    %92 = vector.multi_reduction <maximumf>, %91, %cst_38 [1] : vector<8x8xf32> to vector<8xf32>
    %93 = vector.shape_cast %92 : vector<8xf32> to vector<8x1xf32>
    %94 = vector.broadcast %93 : vector<8x1xf32> to vector<8x8xf32>
    %95 = arith.subf %91, %94 : vector<8x8xf32>
    %96 = math.exp %95 : vector<8x8xf32>
    %cst_39 = arith.constant dense<0.000000e+00> : vector<8xf32>
    %97 = vector.multi_reduction <add>, %96, %cst_39 [1] : vector<8x8xf32> to vector<8xf32>
    %98 = vector.shape_cast %97 : vector<8xf32> to vector<8x1xf32>
    %99 = tpu.reciprocal %98 {approx = true} : vector<8x1xf32> -> vector<8x1xf32>
    %100 = vector.broadcast %99 : vector<8x1xf32> to vector<8x8xf32>
    %101 = arith.mulf %96, %100 : vector<8x8xf32>
    %102 = arith.truncf %101 : vector<8x8xf32> to vector<8x8xbf16>
    %103 = vector.extract_strided_slice %30 {offsets = [0, 24], sizes = [8, 8], strides = [1, 1]} : vector<8x32xbf16> to vector<8x8xbf16>
    %cst_40 = arith.constant dense<0.000000e+00> : vector<8x8xf32>
    %104 = tpu.matmul %102, %103, %cst_40 {dimension_numbers = #tpu.dot_dimension_numbers<[1], [0], [0], [1], [0, 0, 1, 1], [], []>} : vector<8x8xbf16>, vector<8x8xbf16>, vector<8x8xf32> -> vector<8x8xf32>
    %105 = arith.truncf %104 : vector<8x8xf32> to vector<8x8xbf16>
    %c0_41 = arith.constant 0 : index
    %c24 = arith.constant 24 : index
    %106 = vector.load %arg18[%c0_41, %c24] : memref<8x32xbf16, #tpu.memory_space<vmem>>, vector<8x8xbf16>
    tpu.vector_store %arg18[%c0_41, %c24], %105 {strides = array<i32>} : memref<8x32xbf16, #tpu.memory_space<vmem>>, vector<8x8xbf16>,
    %c0_42 = arith.constant 0 : index
    %c0_43 = arith.constant 0 : index
    %107 = vector.load %arg18[%c0_42, %c0_43] : memref<8x32xbf16, #tpu.memory_space<vmem>>, vector<8x32xbf16>
    %cst_44 = arith.constant dense<0.000000e+00> : vector<8x32xf32>
    %108 = tpu.matmul %107, %11, %cst_44 {dimension_numbers = #tpu.dot_dimension_numbers<[1], [0], [0], [1], [0, 0, 1, 1], [], []>} : vector<8x32xbf16>, vector<32x32xbf16>, vector<8x32xf32> -> vector<8x32xf32>
    %109 = vector.shape_cast %13 : vector<32xf32> to vector<1x32xf32>
    %110 = vector.broadcast %109 : vector<1x32xf32> to vector<8x32xf32>
    %111 = arith.addf %108, %110 : vector<8x32xf32>
    %112 = arith.addf %1, %111 : vector<8x32xf32>
    %113 = vector.extract_strided_slice %6 {offsets = [0, 0], sizes = [1, 32], strides = [1, 1]} : vector<3x32xf32> to vector<1x32xf32>
    %114 = vector.shape_cast %113 : vector<1x32xf32> to vector<32xf32>
    %115 = vector.extract_strided_slice %7 {offsets = [0, 0], sizes = [1, 32], strides = [1, 1]} : vector<3x32xf32> to vector<1x32xf32>
    %116 = vector.shape_cast %115 : vector<1x32xf32> to vector<32xf32>
    %cst_45 = arith.constant dense<0.000000e+00> : vector<8xf32>
    %117 = vector.multi_reduction <add>, %112, %cst_45 [1] : vector<8x32xf32> to vector<8xf32>
    %118 = vector.shape_cast %117 : vector<8xf32> to vector<8x1xf32>
    %cst_46 = arith.constant 3.200000e+01 : f32
    %119 = vector.broadcast %cst_46 : f32 to vector<8x1xf32>
    %120 = arith.divf %118, %119 : vector<8x1xf32>
    %121 = vector.broadcast %120 : vector<8x1xf32> to vector<8x32xf32>
    %122 = arith.subf %112, %121 : vector<8x32xf32>
    %123 = arith.mulf %122, %122 : vector<8x32xf32>
    %cst_47 = arith.constant dense<0.000000e+00> : vector<8xf32>
    %124 = vector.multi_reduction <add>, %123, %cst_47 [1] : vector<8x32xf32> to vector<8xf32>
    %125 = vector.shape_cast %124 : vector<8xf32> to vector<8x1xf32>
    %cst_48 = arith.constant 3.200000e+01 : f32
    %126 = vector.broadcast %cst_48 : f32 to vector<8x1xf32>
    %127 = arith.divf %125, %126 : vector<8x1xf32>
    %128 = vector.broadcast %120 : vector<8x1xf32> to vector<8x32xf32>
    %129 = arith.subf %112, %128 : vector<8x32xf32>
    %cst_49 = arith.constant 9.99999974E-6 : f32
    %130 = vector.broadcast %cst_49 : f32 to vector<8x1xf32>
    %131 = arith.addf %127, %130 : vector<8x1xf32>
    %132 = math.rsqrt %131 : vector<8x1xf32>
    %133 = vector.broadcast %132 : vector<8x1xf32> to vector<8x32xf32>
    %134 = arith.mulf %129, %133 : vector<8x32xf32>
    %135 = vector.shape_cast %114 : vector<32xf32> to vector<1x32xf32>
    %136 = vector.broadcast %135 : vector<1x32xf32> to vector<8x32xf32>
    %137 = arith.mulf %134, %136 : vector<8x32xf32>
    %138 = vector.shape_cast %116 : vector<32xf32> to vector<1x32xf32>
    %139 = vector.broadcast %138 : vector<1x32xf32> to vector<8x32xf32>
    %140 = arith.addf %137, %139 : vector<8x32xf32>
    %c0_50 = arith.constant 0 : index
    %c0_51 = arith.constant 0 : index
    %141 = vector.load %arg8[%c0_50, %c0_51] : memref<32x96xbf16, #tpu.memory_space<vmem>>, vector<32x96xbf16>
    %c0_52 = arith.constant 0 : index
    %c0_53 = arith.constant 0 : index
    %142 = vector.load %arg9[%c0_52, %c0_53] : memref<1x96xf32, #tpu.memory_space<vmem>>, vector<1x96xf32>
    %c0_54 = arith.constant 0 : index
    %c0_55 = arith.constant 0 : index
    %143 = vector.load %arg10[%c0_54, %c0_55] : memref<32x32xbf16, #tpu.memory_space<vmem>>, vector<32x32xbf16>
    %144 = vector.extract_strided_slice %8 {offsets = [1, 0], sizes = [1, 32], strides = [1, 1]} : vector<2x32xf32> to vector<1x32xf32>
    %145 = vector.shape_cast %144 : vector<1x32xf32> to vector<32xf32>
    %146 = arith.truncf %140 : vector<8x32xf32> to vector<8x32xbf16>
    %147 = vector.extract_strided_slice %141 {offsets = [0, 0], sizes = [32, 32], strides = [1, 1]} : vector<32x96xbf16> to vector<32x32xbf16>
    %cst_56 = arith.constant dense<0.000000e+00> : vector<8x32xf32>
    %148 = tpu.matmul %146, %147, %cst_56 {dimension_numbers = #tpu.dot_dimension_numbers<[1], [0], [0], [1], [0, 0, 1, 1], [], []>} : vector<8x32xbf16>, vector<32x32xbf16>, vector<8x32xf32> -> vector<8x32xf32>
    %149 = vector.extract_strided_slice %142 {offsets = [0, 0], sizes = [1, 32], strides = [1, 1]} : vector<1x96xf32> to vector<1x32xf32>
    %150 = vector.broadcast %149 : vector<1x32xf32> to vector<8x32xf32>
    %151 = arith.addf %148, %150 : vector<8x32xf32>
    %152 = arith.truncf %5 : vector<8x32xf32> to vector<8x32xbf16>
    %153 = vector.extract_strided_slice %141 {offsets = [0, 32], sizes = [32, 64], strides = [1, 1]} : vector<32x96xbf16> to vector<32x64xbf16>
    %cst_57 = arith.constant dense<0.000000e+00> : vector<8x64xf32>
    %154 = tpu.matmul %152, %153, %cst_57 {dimension_numbers = #tpu.dot_dimension_numbers<[1], [0], [0], [1], [0, 0, 1, 1], [], []>} : vector<8x32xbf16>, vector<32x64xbf16>, vector<8x64xf32> -> vector<8x64xf32>
    %155 = vector.extract_strided_slice %142 {offsets = [0, 32], sizes = [1, 64], strides = [1, 1]} : vector<1x96xf32> to vector<1x64xf32>
    %156 = vector.broadcast %155 : vector<1x64xf32> to vector<8x64xf32>
    %157 = arith.addf %154, %156 : vector<8x64xf32>
    %158 = arith.truncf %151 : vector<8x32xf32> to vector<8x32xbf16>
    %159 = vector.extract_strided_slice %157 {offsets = [0, 0], sizes = [8, 32], strides = [1, 1]} : vector<8x64xf32> to vector<8x32xf32>
    %160 = arith.truncf %159 : vector<8x32xf32> to vector<8x32xbf16>
    %161 = vector.extract_strided_slice %157 {offsets = [0, 32], sizes = [8, 32], strides = [1, 1]} : vector<8x64xf32> to vector<8x32xf32>
    %162 = arith.truncf %161 : vector<8x32xf32> to vector<8x32xbf16>
    %163 = vector.extract_strided_slice %158 {offsets = [0, 0], sizes = [8, 8], strides = [1, 1]} : vector<8x32xbf16> to vector<8x8xbf16>
    %164 = vector.extract_strided_slice %160 {offsets = [0, 0], sizes = [8, 8], strides = [1, 1]} : vector<8x32xbf16> to vector<8x8xbf16>
    %165 = tpu.transpose %164, [1, 0] : vector<8x8xbf16> -> vector<8x8xbf16>
    %cst_58 = arith.constant dense<0.000000e+00> : vector<8x8xf32>
    %166 = tpu.matmul %163, %165, %cst_58 {dimension_numbers = #tpu.dot_dimension_numbers<[1], [0], [0], [1], [0, 0, 1, 1], [], []>} : vector<8x8xbf16>, vector<8x8xbf16>, vector<8x8xf32> -> vector<8x8xf32>
    %cst_59 = arith.constant dense<0xFF800000> : vector<8xf32>
    %167 = vector.multi_reduction <maximumf>, %166, %cst_59 [1] : vector<8x8xf32> to vector<8xf32>
    %168 = vector.shape_cast %167 : vector<8xf32> to vector<8x1xf32>
    %169 = vector.broadcast %168 : vector<8x1xf32> to vector<8x8xf32>
    %170 = arith.subf %166, %169 : vector<8x8xf32>
    %171 = math.exp %170 : vector<8x8xf32>
    %cst_60 = arith.constant dense<0.000000e+00> : vector<8xf32>
    %172 = vector.multi_reduction <add>, %171, %cst_60 [1] : vector<8x8xf32> to vector<8xf32>
    %173 = vector.shape_cast %172 : vector<8xf32> to vector<8x1xf32>
    %174 = vector.broadcast %173 : vector<8x1xf32> to vector<8x8xf32>
    %175 = arith.divf %171, %174 : vector<8x8xf32>
    %c0_61 = arith.constant 0 : index
    %c0_62 = arith.constant 0 : index
    %c0_63 = arith.constant 0 : index
    %c0_64 = arith.constant 0 : index
    %176 = vector.load %arg17[%c0_61, %c0_62, %c0_63, %c0_64] : memref<1x4x8x8xf32, #tpu.memory_space<vmem>>, vector<1x1x8x8xf32>
    %177 = vector.shape_cast %176 : vector<1x1x8x8xf32> to vector<8x8xf32>
    %178 = vector.shape_cast %175 : vector<8x8xf32> to vector<1x1x8x8xf32>
    tpu.vector_store %arg17[%c0_61, %c0_62, %c0_63, %c0_64], %178 {strides = array<i32>} : memref<1x4x8x8xf32, #tpu.memory_space<vmem>>, vector<1x1x8x8xf32>,
    %179 = arith.truncf %175 : vector<8x8xf32> to vector<8x8xbf16>
    %180 = vector.extract_strided_slice %162 {offsets = [0, 0], sizes = [8, 8], strides = [1, 1]} : vector<8x32xbf16> to vector<8x8xbf16>
    %cst_65 = arith.constant dense<0.000000e+00> : vector<8x8xf32>
    %181 = tpu.matmul %179, %180, %cst_65 {dimension_numbers = #tpu.dot_dimension_numbers<[1], [0], [0], [1], [0, 0, 1, 1], [], []>} : vector<8x8xbf16>, vector<8x8xbf16>, vector<8x8xf32> -> vector<8x8xf32>
    %182 = arith.truncf %181 : vector<8x8xf32> to vector<8x8xbf16>
    %c0_66 = arith.constant 0 : index
    %c0_67 = arith.constant 0 : index
    %183 = vector.load %arg18[%c0_66, %c0_67] : memref<8x32xbf16, #tpu.memory_space<vmem>>, vector<8x8xbf16>
    tpu.vector_store %arg18[%c0_66, %c0_67], %182 {strides = array<i32>} : memref<8x32xbf16, #tpu.memory_space<vmem>>, vector<8x8xbf16>,
    %184 = vector.extract_strided_slice %158 {offsets = [0, 8], sizes = [8, 8], strides = [1, 1]} : vector<8x32xbf16> to vector<8x8xbf16>
    %185 = vector.extract_strided_slice %160 {offsets = [0, 8], sizes = [8, 8], strides = [1, 1]} : vector<8x32xbf16> to vector<8x8xbf16>
    %186 = tpu.transpose %185, [1, 0] : vector<8x8xbf16> -> vector<8x8xbf16>
    %cst_68 = arith.constant dense<0.000000e+00> : vector<8x8xf32>
    %187 = tpu.matmul %184, %186, %cst_68 {dimension_numbers = #tpu.dot_dimension_numbers<[1], [0], [0], [1], [0, 0, 1, 1], [], []>} : vector<8x8xbf16>, vector<8x8xbf16>, vector<8x8xf32> -> vector<8x8xf32>
    %cst_69 = arith.constant dense<0xFF800000> : vector<8xf32>
    %188 = vector.multi_reduction <maximumf>, %187, %cst_69 [1] : vector<8x8xf32> to vector<8xf32>
    %189 = vector.shape_cast %188 : vector<8xf32> to vector<8x1xf32>
    %190 = vector.broadcast %189 : vector<8x1xf32> to vector<8x8xf32>
    %191 = arith.subf %187, %190 : vector<8x8xf32>
    %192 = math.exp %191 : vector<8x8xf32>
    %cst_70 = arith.constant dense<0.000000e+00> : vector<8xf32>
    %193 = vector.multi_reduction <add>, %192, %cst_70 [1] : vector<8x8xf32> to vector<8xf32>
    %194 = vector.shape_cast %193 : vector<8xf32> to vector<8x1xf32>
    %195 = vector.broadcast %194 : vector<8x1xf32> to vector<8x8xf32>
    %196 = arith.divf %192, %195 : vector<8x8xf32>
    %c0_71 = arith.constant 0 : index
    %c1 = arith.constant 1 : index
    %c0_72 = arith.constant 0 : index
    %c0_73 = arith.constant 0 : index
    %197 = vector.load %arg17[%c0_71, %c1, %c0_72, %c0_73] : memref<1x4x8x8xf32, #tpu.memory_space<vmem>>, vector<1x1x8x8xf32>
    %198 = vector.shape_cast %197 : vector<1x1x8x8xf32> to vector<8x8xf32>
    %199 = vector.shape_cast %196 : vector<8x8xf32> to vector<1x1x8x8xf32>
    tpu.vector_store %arg17[%c0_71, %c1, %c0_72, %c0_73], %199 {strides = array<i32>} : memref<1x4x8x8xf32, #tpu.memory_space<vmem>>, vector<1x1x8x8xf32>,
    %200 = arith.truncf %196 : vector<8x8xf32> to vector<8x8xbf16>
    %201 = vector.extract_strided_slice %162 {offsets = [0, 8], sizes = [8, 8], strides = [1, 1]} : vector<8x32xbf16> to vector<8x8xbf16>
    %cst_74 = arith.constant dense<0.000000e+00> : vector<8x8xf32>
    %202 = tpu.matmul %200, %201, %cst_74 {dimension_numbers = #tpu.dot_dimension_numbers<[1], [0], [0], [1], [0, 0, 1, 1], [], []>} : vector<8x8xbf16>, vector<8x8xbf16>, vector<8x8xf32> -> vector<8x8xf32>
    %203 = arith.truncf %202 : vector<8x8xf32> to vector<8x8xbf16>
    %c0_75 = arith.constant 0 : index
    %c8_76 = arith.constant 8 : index
    %204 = vector.load %arg18[%c0_75, %c8_76] : memref<8x32xbf16, #tpu.memory_space<vmem>>, vector<8x8xbf16>
    tpu.vector_store %arg18[%c0_75, %c8_76], %203 {strides = array<i32>} : memref<8x32xbf16, #tpu.memory_space<vmem>>, vector<8x8xbf16>,
    %205 = vector.extract_strided_slice %158 {offsets = [0, 16], sizes = [8, 8], strides = [1, 1]} : vector<8x32xbf16> to vector<8x8xbf16>
    %206 = vector.extract_strided_slice %160 {offsets = [0, 16], sizes = [8, 8], strides = [1, 1]} : vector<8x32xbf16> to vector<8x8xbf16>
    %207 = tpu.transpose %206, [1, 0] : vector<8x8xbf16> -> vector<8x8xbf16>
    %cst_77 = arith.constant dense<0.000000e+00> : vector<8x8xf32>
    %208 = tpu.matmul %205, %207, %cst_77 {dimension_numbers = #tpu.dot_dimension_numbers<[1], [0], [0], [1], [0, 0, 1, 1], [], []>} : vector<8x8xbf16>, vector<8x8xbf16>, vector<8x8xf32> -> vector<8x8xf32>
    %cst_78 = arith.constant dense<0xFF800000> : vector<8xf32>
    %209 = vector.multi_reduction <maximumf>, %208, %cst_78 [1] : vector<8x8xf32> to vector<8xf32>
    %210 = vector.shape_cast %209 : vector<8xf32> to vector<8x1xf32>
    %211 = vector.broadcast %210 : vector<8x1xf32> to vector<8x8xf32>
    %212 = arith.subf %208, %211 : vector<8x8xf32>
    %213 = math.exp %212 : vector<8x8xf32>
    %cst_79 = arith.constant dense<0.000000e+00> : vector<8xf32>
    %214 = vector.multi_reduction <add>, %213, %cst_79 [1] : vector<8x8xf32> to vector<8xf32>
    %215 = vector.shape_cast %214 : vector<8xf32> to vector<8x1xf32>
    %216 = vector.broadcast %215 : vector<8x1xf32> to vector<8x8xf32>
    %217 = arith.divf %213, %216 : vector<8x8xf32>
    %c0_80 = arith.constant 0 : index
    %c2 = arith.constant 2 : index
    %c0_81 = arith.constant 0 : index
    %c0_82 = arith.constant 0 : index
    %218 = vector.load %arg17[%c0_80, %c2, %c0_81, %c0_82] : memref<1x4x8x8xf32, #tpu.memory_space<vmem>>, vector<1x1x8x8xf32>
    %219 = vector.shape_cast %218 : vector<1x1x8x8xf32> to vector<8x8xf32>
    %220 = vector.shape_cast %217 : vector<8x8xf32> to vector<1x1x8x8xf32>
    tpu.vector_store %arg17[%c0_80, %c2, %c0_81, %c0_82], %220 {strides = array<i32>} : memref<1x4x8x8xf32, #tpu.memory_space<vmem>>, vector<1x1x8x8xf32>,
    %221 = arith.truncf %217 : vector<8x8xf32> to vector<8x8xbf16>
    %222 = vector.extract_strided_slice %162 {offsets = [0, 16], sizes = [8, 8], strides = [1, 1]} : vector<8x32xbf16> to vector<8x8xbf16>
    %cst_83 = arith.constant dense<0.000000e+00> : vector<8x8xf32>
    %223 = tpu.matmul %221, %222, %cst_83 {dimension_numbers = #tpu.dot_dimension_numbers<[1], [0], [0], [1], [0, 0, 1, 1], [], []>} : vector<8x8xbf16>, vector<8x8xbf16>, vector<8x8xf32> -> vector<8x8xf32>
    %224 = arith.truncf %223 : vector<8x8xf32> to vector<8x8xbf16>
    %c0_84 = arith.constant 0 : index
    %c16_85 = arith.constant 16 : index
    %225 = vector.load %arg18[%c0_84, %c16_85] : memref<8x32xbf16, #tpu.memory_space<vmem>>, vector<8x8xbf16>
    tpu.vector_store %arg18[%c0_84, %c16_85], %224 {strides = array<i32>} : memref<8x32xbf16, #tpu.memory_space<vmem>>, vector<8x8xbf16>,
    %226 = vector.extract_strided_slice %158 {offsets = [0, 24], sizes = [8, 8], strides = [1, 1]} : vector<8x32xbf16> to vector<8x8xbf16>
    %227 = vector.extract_strided_slice %160 {offsets = [0, 24], sizes = [8, 8], strides = [1, 1]} : vector<8x32xbf16> to vector<8x8xbf16>
    %228 = tpu.transpose %227, [1, 0] : vector<8x8xbf16> -> vector<8x8xbf16>
    %cst_86 = arith.constant dense<0.000000e+00> : vector<8x8xf32>
    %229 = tpu.matmul %226, %228, %cst_86 {dimension_numbers = #tpu.dot_dimension_numbers<[1], [0], [0], [1], [0, 0, 1, 1], [], []>} : vector<8x8xbf16>, vector<8x8xbf16>, vector<8x8xf32> -> vector<8x8xf32>
    %cst_87 = arith.constant dense<0xFF800000> : vector<8xf32>
    %230 = vector.multi_reduction <maximumf>, %229, %cst_87 [1] : vector<8x8xf32> to vector<8xf32>
    %231 = vector.shape_cast %230 : vector<8xf32> to vector<8x1xf32>
    %232 = vector.broadcast %231 : vector<8x1xf32> to vector<8x8xf32>
    %233 = arith.subf %229, %232 : vector<8x8xf32>
    %234 = math.exp %233 : vector<8x8xf32>
    %cst_88 = arith.constant dense<0.000000e+00> : vector<8xf32>
    %235 = vector.multi_reduction <add>, %234, %cst_88 [1] : vector<8x8xf32> to vector<8xf32>
    %236 = vector.shape_cast %235 : vector<8xf32> to vector<8x1xf32>
    %237 = vector.broadcast %236 : vector<8x1xf32> to vector<8x8xf32>
    %238 = arith.divf %234, %237 : vector<8x8xf32>
    %c0_89 = arith.constant 0 : index
    %c3 = arith.constant 3 : index
    %c0_90 = arith.constant 0 : index
    %c0_91 = arith.constant 0 : index
    %239 = vector.load %arg17[%c0_89, %c3, %c0_90, %c0_91] : memref<1x4x8x8xf32, #tpu.memory_space<vmem>>, vector<1x1x8x8xf32>
    %240 = vector.shape_cast %239 : vector<1x1x8x8xf32> to vector<8x8xf32>
    %241 = vector.shape_cast %238 : vector<8x8xf32> to vector<1x1x8x8xf32>
    tpu.vector_store %arg17[%c0_89, %c3, %c0_90, %c0_91], %241 {strides = array<i32>} : memref<1x4x8x8xf32, #tpu.memory_space<vmem>>, vector<1x1x8x8xf32>,
    %242 = arith.truncf %238 : vector<8x8xf32> to vector<8x8xbf16>
    %243 = vector.extract_strided_slice %162 {offsets = [0, 24], sizes = [8, 8], strides = [1, 1]} : vector<8x32xbf16> to vector<8x8xbf16>
    %cst_92 = arith.constant dense<0.000000e+00> : vector<8x8xf32>
    %244 = tpu.matmul %242, %243, %cst_92 {dimension_numbers = #tpu.dot_dimension_numbers<[1], [0], [0], [1], [0, 0, 1, 1], [], []>} : vector<8x8xbf16>, vector<8x8xbf16>, vector<8x8xf32> -> vector<8x8xf32>
    %245 = arith.truncf %244 : vector<8x8xf32> to vector<8x8xbf16>
    %c0_93 = arith.constant 0 : index
    %c24_94 = arith.constant 24 : index
    %246 = vector.load %arg18[%c0_93, %c24_94] : memref<8x32xbf16, #tpu.memory_space<vmem>>, vector<8x8xbf16>
    tpu.vector_store %arg18[%c0_93, %c24_94], %245 {strides = array<i32>} : memref<8x32xbf16, #tpu.memory_space<vmem>>, vector<8x8xbf16>,
    %c0_95 = arith.constant 0 : index
    %c0_96 = arith.constant 0 : index
    %247 = vector.load %arg18[%c0_95, %c0_96] : memref<8x32xbf16, #tpu.memory_space<vmem>>, vector<8x32xbf16>
    %cst_97 = arith.constant dense<0.000000e+00> : vector<8x32xf32>
    %248 = tpu.matmul %247, %143, %cst_97 {dimension_numbers = #tpu.dot_dimension_numbers<[1], [0], [0], [1], [0, 0, 1, 1], [], []>} : vector<8x32xbf16>, vector<32x32xbf16>, vector<8x32xf32> -> vector<8x32xf32>
    %249 = vector.shape_cast %145 : vector<32xf32> to vector<1x32xf32>
    %250 = vector.broadcast %249 : vector<1x32xf32> to vector<8x32xf32>
    %251 = arith.addf %248, %250 : vector<8x32xf32>
    %252 = arith.addf %140, %251 : vector<8x32xf32>
    %253 = vector.extract_strided_slice %6 {offsets = [1, 0], sizes = [1, 32], strides = [1, 1]} : vector<3x32xf32> to vector<1x32xf32>
    %254 = vector.shape_cast %253 : vector<1x32xf32> to vector<32xf32>
    %255 = vector.extract_strided_slice %7 {offsets = [1, 0], sizes = [1, 32], strides = [1, 1]} : vector<3x32xf32> to vector<1x32xf32>
    %256 = vector.shape_cast %255 : vector<1x32xf32> to vector<32xf32>
    %cst_98 = arith.constant dense<0.000000e+00> : vector<8xf32>
    %257 = vector.multi_reduction <add>, %252, %cst_98 [1] : vector<8x32xf32> to vector<8xf32>
    %258 = vector.shape_cast %257 : vector<8xf32> to vector<8x1xf32>
    %cst_99 = arith.constant 3.200000e+01 : f32
    %259 = vector.broadcast %cst_99 : f32 to vector<8x1xf32>
    %260 = arith.divf %258, %259 : vector<8x1xf32>
    %261 = vector.broadcast %260 : vector<8x1xf32> to vector<8x32xf32>
    %262 = arith.subf %252, %261 : vector<8x32xf32>
    %263 = arith.mulf %262, %262 : vector<8x32xf32>
    %cst_100 = arith.constant dense<0.000000e+00> : vector<8xf32>
    %264 = vector.multi_reduction <add>, %263, %cst_100 [1] : vector<8x32xf32> to vector<8xf32>
    %265 = vector.shape_cast %264 : vector<8xf32> to vector<8x1xf32>
    %cst_101 = arith.constant 3.200000e+01 : f32
    %266 = vector.broadcast %cst_101 : f32 to vector<8x1xf32>
    %267 = arith.divf %265, %266 : vector<8x1xf32>
    %268 = vector.broadcast %260 : vector<8x1xf32> to vector<8x32xf32>
    %269 = arith.subf %252, %268 : vector<8x32xf32>
    %cst_102 = arith.constant 9.99999974E-6 : f32
    %270 = vector.broadcast %cst_102 : f32 to vector<8x1xf32>
    %271 = arith.addf %267, %270 : vector<8x1xf32>
    %272 = math.rsqrt %271 : vector<8x1xf32>
    %273 = vector.broadcast %272 : vector<8x1xf32> to vector<8x32xf32>
    %274 = arith.mulf %269, %273 : vector<8x32xf32>
    %275 = vector.shape_cast %254 : vector<32xf32> to vector<1x32xf32>
    %276 = vector.broadcast %275 : vector<1x32xf32> to vector<8x32xf32>
    %277 = arith.mulf %274, %276 : vector<8x32xf32>
    %278 = vector.shape_cast %256 : vector<32xf32> to vector<1x32xf32>
    %279 = vector.broadcast %278 : vector<1x32xf32> to vector<8x32xf32>
    %280 = arith.addf %277, %279 : vector<8x32xf32>
    %c0_103 = arith.constant 0 : index
    %c0_104 = arith.constant 0 : index
    %c0_105 = arith.constant 0 : index
    %281 = vector.load %arg12[%c0_103, %c0_104, %c0_105] : memref<2x32x32xbf16, #tpu.memory_space<vmem>>, vector<2x32x32xbf16>
    %c0_106 = arith.constant 0 : index
    %c0_107 = arith.constant 0 : index
    %282 = vector.load %arg13[%c0_106, %c0_107] : memref<2x32xf32, #tpu.memory_space<vmem>>, vector<2x32xf32>
    %283 = arith.truncf %280 : vector<8x32xf32> to vector<8x32xbf16>
    %284 = vector.extract_strided_slice %281 {offsets = [0, 0, 0], sizes = [1, 32, 32], strides = [1, 1, 1]} : vector<2x32x32xbf16> to vector<1x32x32xbf16>
    %285 = vector.shape_cast %284 : vector<1x32x32xbf16> to vector<32x32xbf16>
    %cst_108 = arith.constant dense<0.000000e+00> : vector<8x32xf32>
    %286 = tpu.matmul %283, %285, %cst_108 {dimension_numbers = #tpu.dot_dimension_numbers<[1], [0], [0], [1], [0, 0, 1, 1], [], []>} : vector<8x32xbf16>, vector<32x32xbf16>, vector<8x32xf32> -> vector<8x32xf32>
    %287 = vector.extract_strided_slice %282 {offsets = [0, 0], sizes = [1, 32], strides = [1, 1]} : vector<2x32xf32> to vector<1x32xf32>
    %288 = vector.shape_cast %287 : vector<1x32xf32> to vector<32xf32>
    %289 = vector.shape_cast %288 : vector<32xf32> to vector<1x32xf32>
    %290 = vector.broadcast %289 : vector<1x32xf32> to vector<8x32xf32>
    %291 = arith.addf %286, %290 : vector<8x32xf32>
    %cst_109 = arith.constant 0.000000e+00 : f32
    %292 = vector.broadcast %cst_109 : f32 to vector<8x32xf32>
    %293 = arith.maximumf %291, %292 : vector<8x32xf32>
    %294 = arith.truncf %293 : vector<8x32xf32> to vector<8x32xbf16>
    %295 = vector.extract_strided_slice %281 {offsets = [1, 0, 0], sizes = [1, 32, 32], strides = [1, 1, 1]} : vector<2x32x32xbf16> to vector<1x32x32xbf16>
    %296 = vector.shape_cast %295 : vector<1x32x32xbf16> to vector<32x32xbf16>
    %cst_110 = arith.constant dense<0.000000e+00> : vector<8x32xf32>
    %297 = tpu.matmul %294, %296, %cst_110 {dimension_numbers = #tpu.dot_dimension_numbers<[1], [0], [0], [1], [0, 0, 1, 1], [], []>} : vector<8x32xbf16>, vector<32x32xbf16>, vector<8x32xf32> -> vector<8x32xf32>
    %298 = vector.extract_strided_slice %282 {offsets = [1, 0], sizes = [1, 32], strides = [1, 1]} : vector<2x32xf32> to vector<1x32xf32>
    %299 = vector.shape_cast %298 : vector<1x32xf32> to vector<32xf32>
    %300 = vector.shape_cast %299 : vector<32xf32> to vector<1x32xf32>
    %301 = vector.broadcast %300 : vector<1x32xf32> to vector<8x32xf32>
    %302 = arith.addf %297, %301 : vector<8x32xf32>
    %303 = arith.addf %280, %302 : vector<8x32xf32>
    %304 = vector.extract_strided_slice %6 {offsets = [2, 0], sizes = [1, 32], strides = [1, 1]} : vector<3x32xf32> to vector<1x32xf32>
    %305 = vector.shape_cast %304 : vector<1x32xf32> to vector<32xf32>
    %306 = vector.extract_strided_slice %7 {offsets = [2, 0], sizes = [1, 32], strides = [1, 1]} : vector<3x32xf32> to vector<1x32xf32>
    %307 = vector.shape_cast %306 : vector<1x32xf32> to vector<32xf32>
    %cst_111 = arith.constant dense<0.000000e+00> : vector<8xf32>
    %308 = vector.multi_reduction <add>, %303, %cst_111 [1] : vector<8x32xf32> to vector<8xf32>
    %309 = vector.shape_cast %308 : vector<8xf32> to vector<8x1xf32>
    %cst_112 = arith.constant 3.200000e+01 : f32
    %310 = vector.broadcast %cst_112 : f32 to vector<8x1xf32>
    %311 = arith.divf %309, %310 : vector<8x1xf32>
    %312 = vector.broadcast %311 : vector<8x1xf32> to vector<8x32xf32>
    %313 = arith.subf %303, %312 : vector<8x32xf32>
    %314 = arith.mulf %313, %313 : vector<8x32xf32>
    %cst_113 = arith.constant dense<0.000000e+00> : vector<8xf32>
    %315 = vector.multi_reduction <add>, %314, %cst_113 [1] : vector<8x32xf32> to vector<8xf32>
    %316 = vector.shape_cast %315 : vector<8xf32> to vector<8x1xf32>
    %cst_114 = arith.constant 3.200000e+01 : f32
    %317 = vector.broadcast %cst_114 : f32 to vector<8x1xf32>
    %318 = arith.divf %316, %317 : vector<8x1xf32>
    %319 = vector.broadcast %311 : vector<8x1xf32> to vector<8x32xf32>
    %320 = arith.subf %303, %319 : vector<8x32xf32>
    %cst_115 = arith.constant 9.99999974E-6 : f32
    %321 = vector.broadcast %cst_115 : f32 to vector<8x1xf32>
    %322 = arith.addf %318, %321 : vector<8x1xf32>
    %323 = math.rsqrt %322 : vector<8x1xf32>
    %324 = vector.broadcast %323 : vector<8x1xf32> to vector<8x32xf32>
    %325 = arith.mulf %320, %324 : vector<8x32xf32>
    %326 = vector.shape_cast %305 : vector<32xf32> to vector<1x32xf32>
    %327 = vector.broadcast %326 : vector<1x32xf32> to vector<8x32xf32>
    %328 = arith.mulf %325, %327 : vector<8x32xf32>
    %329 = vector.shape_cast %307 : vector<32xf32> to vector<1x32xf32>
    %330 = vector.broadcast %329 : vector<1x32xf32> to vector<8x32xf32>
    %331 = arith.addf %328, %330 : vector<8x32xf32>
    %c0_116 = arith.constant 0 : index
    %c0_117 = arith.constant 0 : index
    %c0_118 = arith.constant 0 : index
    %332 = vector.load %arg16[%c0_116, %c0_117, %c0_118] : memref<1x8x32xf32, #tpu.memory_space<vmem>>, vector<1x8x32xf32>
    %333 = vector.shape_cast %332 : vector<1x8x32xf32> to vector<8x32xf32>
    %334 = vector.shape_cast %331 : vector<8x32xf32> to vector<1x8x32xf32>
    tpu.vector_store %arg16[%c0_116, %c0_117, %c0_118], %334 {strides = array<i32>} : memref<1x8x32xf32, #tpu.memory_space<vmem>>, vector<1x8x32xf32>,
    return
  }
  func.func @transform_0(%arg0: i32, %arg1: i32) -> (i32, i32, i32) {
    %c0_i32 = arith.constant 0 : i32
    %c0_i32_0 = arith.constant 0 : i32
    return %arg0, %arg1, %c0_i32 : i32, i32, i32
  }
  func.func @transform_1(%arg0: i32, %arg1: i32) -> (i32, i32, i32) {
    %c0_i32 = arith.constant 0 : i32
    %c0_i32_0 = arith.constant 0 : i32
    %c0_i32_1 = arith.constant 0 : i32
    return %arg0, %c0_i32, %c0_i32_0 : i32, i32, i32
  }
  func.func @transform_2(%arg0: i32, %arg1: i32) -> (i32, i32, i32) {
    %c0_i32 = arith.constant 0 : i32
    %c0_i32_0 = arith.constant 0 : i32
    %c0_i32_1 = arith.constant 0 : i32
    return %arg0, %c0_i32, %c0_i32_0 : i32, i32, i32
  }
  func.func @transform_3(%arg0: i32, %arg1: i32) -> (i32, i32) {
    %c0_i32 = arith.constant 0 : i32
    %c0_i32_0 = arith.constant 0 : i32
    %c0_i32_1 = arith.constant 0 : i32
    return %c0_i32, %c0_i32_0 : i32, i32
  }
  func.func @transform_4(%arg0: i32, %arg1: i32) -> (i32, i32) {
    %c0_i32 = arith.constant 0 : i32
    %c0_i32_0 = arith.constant 0 : i32
    %c0_i32_1 = arith.constant 0 : i32
    return %c0_i32, %c0_i32_0 : i32, i32
  }
  func.func @transform_5(%arg0: i32, %arg1: i32) -> (i32, i32) {
    %c0_i32 = arith.constant 0 : i32
    %c0_i32_0 = arith.constant 0 : i32
    %c0_i32_1 = arith.constant 0 : i32
    return %c0_i32, %c0_i32_0 : i32, i32
  }
  func.func @transform_6(%arg0: i32, %arg1: i32) -> (i32, i32) {
    %c0_i32 = arith.constant 0 : i32
    %c0_i32_0 = arith.constant 0 : i32
    %c0_i32_1 = arith.constant 0 : i32
    return %c0_i32, %c0_i32_0 : i32, i32
  }
  func.func @transform_7(%arg0: i32, %arg1: i32) -> (i32, i32) {
    %c0_i32 = arith.constant 0 : i32
    %c0_i32_0 = arith.constant 0 : i32
    %c0_i32_1 = arith.constant 0 : i32
    return %c0_i32, %c0_i32_0 : i32, i32
  }
  func.func @transform_8(%arg0: i32, %arg1: i32) -> (i32, i32) {
    %c0_i32 = arith.constant 0 : i32
    %c0_i32_0 = arith.constant 0 : i32
    %c0_i32_1 = arith.constant 0 : i32
    return %c0_i32, %c0_i32_0 : i32, i32
  }
  func.func @transform_9(%arg0: i32, %arg1: i32) -> (i32, i32) {
    %c0_i32 = arith.constant 0 : i32
    %c0_i32_0 = arith.constant 0 : i32
    %c0_i32_1 = arith.constant 0 : i32
    return %c0_i32, %c0_i32_0 : i32, i32
  }
  func.func @transform_10(%arg0: i32, %arg1: i32) -> (i32, i32, i32) {
    %c0_i32 = arith.constant 0 : i32
    %c0_i32_0 = arith.constant 0 : i32
    %c0_i32_1 = arith.constant 0 : i32
    %c0_i32_2 = arith.constant 0 : i32
    return %c0_i32, %c0_i32_0, %c0_i32_1 : i32, i32, i32
  }
  func.func @transform_11(%arg0: i32, %arg1: i32) -> (i32, i32) {
    %c0_i32 = arith.constant 0 : i32
    %c0_i32_0 = arith.constant 0 : i32
    %c0_i32_1 = arith.constant 0 : i32
    return %c0_i32, %c0_i32_0 : i32, i32
  }
  func.func @transform_12(%arg0: i32, %arg1: i32) -> (i32, i32) {
    %c0_i32 = arith.constant 0 : i32
    %c0_i32_0 = arith.constant 0 : i32
    %c0_i32_1 = arith.constant 0 : i32
    return %c0_i32, %c0_i32_0 : i32, i32
  }
  func.func @transform_13(%arg0: i32, %arg1: i32) -> (i32, i32) {
    %c0_i32 = arith.constant 0 : i32
    %c0_i32_0 = arith.constant 0 : i32
    %c0_i32_1 = arith.constant 0 : i32
    return %c0_i32, %c0_i32_0 : i32, i32
  }
  func.func @transform_14(%arg0: i32, %arg1: i32) -> (i32, i32, i32) {
    %c0_i32 = arith.constant 0 : i32
    %c0_i32_0 = arith.constant 0 : i32
    return %arg0, %arg1, %c0_i32 : i32, i32, i32
  }
  func.func @transform_15(%arg0: i32, %arg1: i32) -> (i32, i32, i32, i32) {
    %c0_i32 = arith.constant 0 : i32
    %c0_i32_0 = arith.constant 0 : i32
    %c0_i32_1 = arith.constant 0 : i32
    return %arg0, %c0_i32, %arg1, %c0_i32_0 : i32, i32, i32, i32
  }
}

</mosaic_0001>

<bundles_post_ra>
// kernel: tpu_custom_call.1
= control target key start
LH: loop header
LB: loop body
LE: loop exit
PB: predicated region body
PF: predicated region fallthrough
CT: control target
= control target key end

     0   :  { %s4294_s0 = inlined_call_operand.hbm [shape: f32[2,8,32], index: 0, kind: input, shape index: {}]   ;;  %s4295_s1 = inlined_call_operand.hbm [shape: f32[2,8,32], index: 1, kind: input, shape index: {}]   ;;  %s4296_s2 = inlined_call_operand.hbm [shape: f32[2,8,32], index: 2, kind: input, shape index: {}]   ;;  %s4297_s3 = inlined_call_operand.hbm [shape: bf16[32,96], index: 3, kind: input, shape index: {}]   ;;  %s4298_s4 = inlined_call_operand.vmem [shape: f32[1,96], index: 4, kind: input, shape index: {}]   ;;  %s4299_s5 = inlined_call_operand.hbm [shape: bf16[32,32], index: 5, kind: input, shape index: {}]   ;;  %s4300_s6 = inlined_call_operand.hbm [shape: bf16[32,96], index: 6, kind: input, shape index: {}]   ;;  %s4301_s7 = inlined_call_operand.hbm [shape: f32[1,96], index: 7, kind: input, shape index: {}]   ;;  %s4302_s8 = inlined_call_operand.hbm [shape: bf16[32,32], index: 8, kind: input, shape index: {}]   ;;  %s4303_s9 = inlined_call_operand.hbm [shape: f32[2,32], index: 9, kind: input, shape index: {}]   ;;  %s4304_s10 = inlined_call_operand.vmem [shape: bf16[2,32,32], index: 10, kind: input, shape index: {}]   ;;  %s4305_s11 = inlined_call_operand.hbm [shape: f32[2,32], index: 11, kind: input, shape index: {}]   ;;  %s4306_s12 = inlined_call_operand.vmem [shape: f32[3,32], index: 12, kind: input, shape index: {}]   ;;  %s4307_s13 = inlined_call_operand.vmem [shape: f32[3,32], index: 13, kind: input, shape index: {}]   ;;  %s4308_s14 = inlined_call_operand.hbm [shape: f32[2,8,32], index: 14, kind: output, shape index: {0}]   ;;  %s4309_s15 = inlined_call_operand.hbm [shape: f32[2,4,8,8], index: 15, kind: output, shape index: {1}]  }
   0x1   :  { %4339 = sst [smem:[#allocation40_spill]] %s4295_s1 }
   0x2   :  { %4340 = sst [smem:[#allocation41_spill]] %s4296_s2 }
   0x3   :  { %4341 = sst [smem:[#allocation42_spill]] %s4297_s3 }
   0x4   :  { %4342 = sst [smem:[#allocation43_spill]] %s4298_s4 }
   0x5   :  { %4343 = sst [smem:[#allocation44_spill]] %s4300_s6 }
   0x6   :  { %4344 = sst [smem:[#allocation45_spill]] %s4302_s8 }
   0x7   :  { %4345 = sst [smem:[#allocation46_spill]] %s4304_s10 }
   0x8   :  { %4346 = sst [smem:[#allocation47_spill]] %s4306_s12 }
   0x9   :  { %4347 = sst [smem:[#allocation48_spill]] %s4307_s13 }
   0xa   :  { %4348 = sst [smem:[#allocation49_spill]] %s4308_s14 }
   0xb   :  { %4349 = sst [smem:[#allocation50_spill]] %s4309_s15 }
   0xc   :  { %21 = vsyncpa [#allocation4], 0 }
   0xd   :  { %23 = vsyncpa [#allocation4 + $0x1], 0 }
   0xe   :  { %24 = vsyncpa [#allocation7], 0 }
   0xf   :  { %26 = vsyncpa [#allocation7 + $0x1], 0 }
  0x10   :  { %27 = vsyncpa [#allocation10], 0 }
  0x11   :  { %28 = vsyncpa [#allocation13], 0 }
  0x12   :  { %29 = vsyncpa [#allocation16], 0 }
  0x13   :  { %30 = vsyncpa [#allocation19], 0 }
  0x14   :  { %31 = vsyncpa [#allocation5], 0 }
  0x15   :  { %33 = vsyncpa [#allocation5 + $0x1], 0 }
  0x16   :  { %34 = vsyncpa [#allocation22], 0 }
  0x17   :  { %36 = vsyncpa [#allocation22 + $0x1], 0  ;;  %s3542_s18 = smov 0   ;;  %s3544_s19 = smov 0  }
  0x18   :  { %s3546_s20 = smov 0   ;;  %s3548_s21 = smov 0  }
  0x19   :  { %s3550_s22 = smov 0   ;;  %s3552_s23 = smov 0  }
  0x1a LB: > { %4350 = sst [smem:[#allocation31_spill]] %s3413_s18  ;;  %s3573_s24 = sadd.s32 4294967295, %s3433_s23   ;;  %s3433_s23 = sphi %s3552_s23, %s42_s23   ;;  %s3429_s22 = sphi %s3550_s22, %s4409_s22   ;;  %s3425_s21 = sphi %s3548_s21, %s4408_s21   ;;  %s3421_s20 = sphi %s3546_s20, %s4412_s20   ;;  %s3417_s19 = sphi %s3544_s19, %s4411_s19   ;;  %s3413_s18 = sphi %s3542_s18, %s4410_s18  }
  0x1b   : > { %4351 = sst [smem:[#allocation32_spill]] %s3425_s21  ;;  %p2495_p0 = scmp.ge.s32.totalorder %s3433_s23, 1 }
  0x1c   : > { %4352 = sst [smem:[#allocation33_spill]] %s3429_s22  ;;  %p4316_p1 = scmp.eq.s32.totalorder %s3573_s24, 0 }
  0x1d   : > { %4353 = sst [smem:[#allocation34_spill]] %s3433_s23  ;;  %p426_p2 = scmp.lt.s32.totalorder %s3433_s23, 3 }
  0x1e   : > { %s3435_s26 = smov [#allocation9]   ;;  %s3436_s29 = smov [#allocation12]  }
  0x1f   : > { %p3578_p3 = pnand %p2495_p0, %p426_p2  ;;  %s438_s27 = sshll.u32 %s3435_s26, 4  ;;  %s3582_s27 = int_to_ptr.vmem [resolvable:$true] %s438_s27 }
  0x20   : > { %s467_s30 = sshll.u32 %s3436_s29, 4  ;;  %s3437_s16 = smov [#allocation15]   ;;  %s3593_s30 = int_to_ptr.vmem [resolvable:$true] %s467_s30 }
  0x21   : > { %s4354_s25 = scalar_select %p3578_p3, 1, 0 }
  0x22   : > { %p2838_p4 = pneg %p3578_p3  ;;  %s3595_s17 = sshll.u32 %s3437_s16, 4  ;;  %s492_s17 = int_to_ptr.vmem [resolvable:$true] %s3595_s17 }
  0x23   : > { %4355 = sst [smem:[#allocation35_spill]] %s4354_s25  ;;  %s4357_s3 = sld [smem:[#allocation42_spill]] }
  0x24   : > { %p3589_p6 = pnand %p2838_p4, %p4316_p1 }
  0x26   : > { %s4356_s28 = scalar_select %p3589_p6, 1, 0 }
  0x27   : > { %p3605_p8 = pneg %p3589_p6 }
  0x29   : > { %s3013_s15 = scalar_lea.hbm %s4357_s3, 256 }
  0x2a   : > { %p3014_p7 = scmp.ne.s32.totalorder %s4357_s3, %s3013_s15  ;;  %p3020_p11 = scmp.lt.u32.totalorder %s3013_s15, %s4357_s3 }
  0x2b   : > { %s4358_s13 = scalar_select %p3605_p8, 1, 0 }
  0x2c   : > { %p3016_p9 = pnand %p3605_p8, %p3014_p7 }
  0x2e   : > { %p3017_p10 = pneg %p3016_p9 }
  0x30   : > { %p3022_p12 = pnand %p3020_p11, %p3017_p10 }
  0x32   : > { %3025 = shalt.err (!%p3022_p12)
}
  0x33   : > { %s3026_s10 = scalar_lea.vmem %s3582_s27, 256  ;;  %p3034_p4 = scmp.lt.s32.totalorder %s3582_s27, %s3582_s27 }
  0x34   : > { %p3027_p13 = scmp.ne.s32.totalorder %s3582_s27, %s3026_s10  ;;  %p3035_p5 = scmp.lt.s32.totalorder %s3026_s10, %s3026_s10 }
  0x36   : > { %p3029_p0 = pnand %p3027_p13, %p3605_p8  ;;  %p3036_p7 = por %p3035_p5, %p3034_p4 }
  0x38   : > { %p3030_p2 = pneg %p3029_p0 }
  0x3a   : > { %p3037_p9 = pnand %p3036_p7, %p3030_p2 }
  0x3c   : > { %3040 = shalt.err (!%p3037_p9)
}
  0x3d   : > { %s4318_s14 = smov 64   ;;  %s4319_s15 = smov 4  }
  0x3e   : > { %2841 = dma.hbm_to_vmem [thread:$0]  (!%p3589_p6), %s4357_s3, 256, %s3582_s27, [#allocation10], %s4318_s14, %s4318_s14, %s4319_s15  }
  0x3f   : > { %s4359_s6 = sld [smem:[#allocation44_spill]] }
  0x45   : > { %s3041_s10 = scalar_lea.hbm %s4359_s6, 256 }
  0x46   : > { %p3042_p5 = scmp.ne.s32.totalorder %s4359_s6, %s3041_s10  ;;  %p3048_p12 = scmp.lt.u32.totalorder %s3041_s10, %s4359_s6 }
  0x48   : > { %p3044_p10 = pnand %p3042_p5, %p3605_p8 }
  0x4a   : > { %p3045_p11 = pneg %p3044_p10 }
  0x4c   : > { %p3050_p13 = pnand %p3048_p12, %p3045_p11 }
  0x4e   : > { %3053 = shalt.err (!%p3050_p13)
}
  0x4f   : > { %s3054_s27 = scalar_lea.vmem %s3593_s30, 256  ;;  %p3062_p7 = scmp.lt.s32.totalorder %s3593_s30, %s3593_s30 }
  0x50   : > { %p3055_p0 = scmp.ne.s32.totalorder %s3593_s30, %s3054_s27  ;;  %p3063_p9 = scmp.lt.s32.totalorder %s3054_s27, %s3054_s27 }
  0x52   : > { %p3057_p2 = pnand %p3055_p0, %p3605_p8  ;;  %p3064_p5 = por %p3063_p9, %p3062_p7 }
  0x54   : > { %p3058_p4 = pneg %p3057_p2 }
  0x56   : > { %p3065_p10 = pnand %p3064_p5, %p3058_p4 }
  0x58   : > { %3068 = shalt.err (!%p3065_p10)
}
  0x59   : > { %2847 = dma.hbm_to_vmem [thread:$0]  (!%p3589_p6), %s4359_s6, 256, %s3593_s30, [#allocation13], %s4318_s14, %s4318_s14, %s4319_s15  }
  0x5a   : > { %s4360_s8 = sld [smem:[#allocation45_spill]] }
  0x60   : > { %s3069_s21 = scalar_lea.hbm %s4360_s8, 256 }
  0x61   : > { %p3070_p11 = scmp.ne.s32.totalorder %s4360_s8, %s3069_s21  ;;  %p3076_p0 = scmp.lt.u32.totalorder %s3069_s21, %s4360_s8 }
  0x63   : > { %p3072_p12 = pnand %p3070_p11, %p3605_p8 }
  0x65   : > { %p3073_p13 = pneg %p3072_p12 }
  0x67   : > { %p3078_p2 = pnand %p3076_p0, %p3073_p13 }
  0x69   : > { %3081 = shalt.err (!%p3078_p2)
}
  0x6a   : > { %s3082_s27 = scalar_lea.vmem %s492_s17, 256  ;;  %p3090_p5 = scmp.lt.s32.totalorder %s492_s17, %s492_s17 }
  0x6b   : > { %p3083_p4 = scmp.ne.s32.totalorder %s492_s17, %s3082_s27  ;;  %p3091_p10 = scmp.lt.s32.totalorder %s3082_s27, %s3082_s27 }
  0x6d   : > { %p3085_p7 = pnand %p3083_p4, %p3605_p8  ;;  %p3092_p1 = por %p3091_p10, %p3090_p5 }
  0x6f   : > { %p3086_p9 = pneg %p3085_p7 }
  0x71   : > { %p3093_p3 = pnand %p3092_p1, %p3086_p9 }
  0x73   : > { %3096 = shalt.err (!%p3093_p3)
}
  0x74   : > { %2853 = dma.hbm_to_vmem [thread:$0]  (!%p3589_p6), %s4360_s8, 256, %s492_s17, [#allocation16], %s4318_s14, %s4318_s14, %s4319_s15  }
  0x75   : > { %s2494_s4 = sadd.s32 4294967294, %s3433_s23   ;;  %s54_s12 = sadd.s32 1, %s3429_s22 }
  0x76   : > { %s63_s25 = sadd.s32 1, %s3421_s20  ;;  %p56_p1 = scmp.ge.s32.totalorder %s54_s12, 2 }
  0x77   : > { %p70_p3 = scmp.ne.s32.totalorder %s3421_s20, %s3417_s19  ;;  %p71_p11 = scmp.eq.s32.totalorder %s3433_s23, 0 }
  0x78   : > { %p76_p12 = scmp.ne.s32.totalorder %s3417_s19, %s3413_s18  ;;  %s4414_s12 = smov (%p56_p1, %s54_s12), 0 }
  0x79   : > { %4361 = sst [smem:[#allocation36_spill]] %s4414_s12  ;;  %p3687_p13 = por %p71_p11, %p70_p3 }
  0x7a   : > { %p4363_p0 = scmp.eq.s32.totalorder %s3573_s24, 0  ;;  %s58_s26 = ssub.s32 %s3429_s22, %s4414_s12 }
  0x7b   : > { %p385_p4 = scmp.eq.s32.totalorder %s3573_s24, 1  ;;  %p61_p7 = scmp.eq.s32.totalorder %s58_s26, 0 }
  0x7c   : > { %p3693_p2 = por %p4363_p0, %p76_p12  ;;  %p391_p9 = scmp.eq.s32.totalorder %s2494_s4, 1 }
  0x7d   : > { %p3700_p5 = por %p385_p4, %p70_p3  ;;  %p2884_p10 = scmp.lt.s32.totalorder %s3433_s23, 2 }
  0x7e   : > { %s4364_s17 = scalar_select %p3693_p2, 1, 0 }
  0x7f   : > { %s4365_s29 = scalar_select %p3700_p5, 1, 0 }
  0x80   : > { %s3706_s16 = scalar_select %p61_p7, %s3421_s20, %s63_s25  }
  0x81   : > { %4366 = sst [smem:[#allocation37_spill]] %s4365_s29  ;;  %p3708_p1 = por %p391_p9, %p76_p12 }
  0x82   : > { %4367 = sst [smem:[#allocation38_spill]] %s3706_s16  ;;  %s4320_s27 = sand.u32 1, %s3421_s20  }
  0x83   : > { %s4368_s10 = scalar_select %p3708_p1, 1, 0 }
  0x84   : > { %s3715_s30 = sshll.u32 %s4320_s27, 3  ;;  %s3718_s2 = sshll.u32 %s3429_s22, 7 }
  0x85   : > { %4369 = sst [smem:[#allocation39_spill]] %s4368_s10  ;;  %p3722_p3 = pnand %p2884_p10, %p3687_p13 }
  0x86   : > { %s555_s25 = sand.u32 1, %s3433_s23   ;;  %s4371_s1 = sld [smem:[#allocation40_spill]] }
  0x87   : > { %s4370_s4 = scalar_select %p3722_p3, 1, 0 }
  0x88   : > { %s559_s27 = scalar_lea.vmem [#allocation6], %s3715_s30  ;;  %s3440_s21 = smov [#allocation11]  }
  0x89   : > { %s566_s3 = sshll.u32 %s559_s27, 4  ;;  %s3736_s6 = sshll.u32 %s3440_s21, 4  ;;  %s3734_s3 = int_to_ptr.vmem [resolvable:$true] %s566_s3  ;;  %s455_s6 = int_to_ptr.vmem [resolvable:$true] %s3736_s6 }
  0x8a   : > { %s3738_s8 = scalar_lea.sflag [#allocation7], %s555_s25  ;;  %p3744_p12 = pneg %p3722_p3 }
  0x8c   : > { %s3731_s15 = scalar_lea.hbm %s4371_s1, %s3718_s2  ;;  %s3102_s22 = scalar_lea.hbm %s4371_s1, 256 }
  0x8d   : > { %s3097_s12 = scalar_lea.hbm %s3731_s15, 128  ;;  %p3103_p4 = scmp.lt.u32.totalorder %s3731_s15, %s4371_s1 }
  0x8e   : > { %p3098_p11 = scmp.ne.s32.totalorder %s3731_s15, %s3097_s12  ;;  %p3104_p7 = scmp.lt.u32.totalorder %s3102_s22, %s3097_s12 }
  0x8f   : > { %s4372_s14 = scalar_select %p3744_p12, 1, 0 }
  0x90   : > { %p3100_p13 = pnand %p3744_p12, %p3098_p11  ;;  %p3105_p9 = por %p3104_p7, %p3103_p4 }
  0x91   : > { %p3106_p10 = scmp.lt.u32.totalorder %s3097_s12, %s3731_s15 }
  0x92   : > { %p3101_p0 = pneg %p3100_p13 }
  0x93   : > { %p3107_p1 = por %p3106_p10, %p3105_p9 }
  0x95   : > { %p3108_p5 = pnand %p3107_p1, %p3101_p0 }
  0x97   : > { %3111 = shalt.err (!%p3108_p5)
}
  0x98   : > { %s3112_s25 = scalar_lea.vmem %s3734_s3, 128  ;;  %s3441_s26 = smov [#allocation6]  }
  0x99   : > { %p3113_p11 = scmp.ne.s32.totalorder %s3734_s3, %s3112_s25  ;;  %s3117_s27 = sshll.u32 %s3441_s26, 4  ;;  %s3118_s27 = int_to_ptr.vmem [resolvable:$false] %s3117_s27 }
  0x9a   : > { %s3119_s16 = scalar_lea.vmem %s3118_s27, 256  ;;  %p3120_p6 = scmp.lt.s32.totalorder %s3734_s3, %s3118_s27 }
  0x9b   : > { %p3115_p13 = pnand %p3113_p11, %p3744_p12  ;;  %p3121_p8 = scmp.lt.s32.totalorder %s3119_s16, %s3112_s25 }
  0x9d   : > { %p3116_p2 = pneg %p3115_p13  ;;  %p3122_p4 = por %p3121_p8, %p3120_p6 }
  0x9f   : > { %p3123_p7 = pnand %p3122_p4, %p3116_p2 }
  0xa1   : > { %3126 = shalt.err (!%p3123_p7)
}
  0xa2   : > { %2866 = dma.hbm_to_vmem [thread:$0]  (!%p3722_p3), %s3731_s15, 128, %s3734_s3, %s3738_s8  }
  0xa3   : > { %s3127_s21 = scalar_lea.hbm %s4299_s5, 256  ;;  %p4373_p6 = scmp.ne.s32.totalorder %s4358_s13, 0 }
  0xa4   : > { %p3128_p5 = scmp.ne.s32.totalorder %s4299_s5, %s3127_s21  ;;  %p3134_p1 = scmp.lt.u32.totalorder %s3127_s21, %s4299_s5 }
  0xa6   : > { %p3130_p8 = pnand %p3128_p5, %p4373_p6 }
  0xa8   : > { %p3131_p2 = pneg %p3130_p8 }
  0xaa   : > { %p3136_p0 = pnand %p3134_p1, %p3131_p2 }
  0xac   : > { %3139 = shalt.err (!%p3136_p0)
}
  0xad   : > { %s3140_s16 = scalar_lea.vmem %s455_s6, 256  ;;  %p3148_p13 = scmp.lt.s32.totalorder %s455_s6, %s455_s6 }
  0xae   : > { %p3141_p9 = scmp.ne.s32.totalorder %s455_s6, %s3140_s16  ;;  %p3149_p4 = scmp.lt.s32.totalorder %s3140_s16, %s3140_s16 }
  0xb0   : > { %p3143_p10 = pnand %p3141_p9, %p4373_p6  ;;  %p3150_p7 = por %p3149_p4, %p3148_p13 }
  0xb2   : > { %p3144_p11 = pneg %p3143_p10 }
  0xb4   : > { %p3151_p3 = pnand %p3150_p7, %p3144_p11 }
  0xb6   : > { %3154 = shalt.err (!%p3151_p3)
}
  0xb7   : > { %p4374_p5 = scmp.ne.s32.totalorder %s4356_s28, 0  ;;  %s4375_s1 = smov 4  }
  0xb8   : > { %s4376_s3 = smov 64   ;;  %s3442_s12 = smov [#allocation14]  }
  0xb9   : > { %2844 = dma.hbm_to_vmem [thread:$0]  (!%p4374_p5), %s4299_s5, 256, %s455_s6, [#allocation10], %s4376_s3, %s4376_s3, %s4375_s1  }
  0xba   : > { %s481_s21 = sshll.u32 %s3442_s12, 4  ;;  %s3443_s26 = smov [#allocation17]   ;;  %s482_s21 = int_to_ptr.vmem [resolvable:$true] %s481_s21 }
  0xbb   : > { %s505_s25 = sshll.u32 %s3443_s26, 4  ;;  %s3155_s23 = scalar_lea.hbm %s4301_s7, 16  ;;  %s506_s25 = int_to_ptr.vmem [resolvable:$true] %s505_s25 }
  0xbc   : > { %p3156_p3 = scmp.ne.s32.totalorder %s4301_s7, %s3155_s23  ;;  %p3162_p1 = scmp.lt.u32.totalorder %s3155_s23, %s4301_s7 }
  0xbe   : > { %p3158_p8 = pnand %p3156_p3, %p4373_p6 }
  0xc0   : > { %p3159_p2 = pneg %p3158_p8 }
  0xc2   : > { %p3164_p0 = pnand %p3162_p1, %p3159_p2 }
  0xc4   : > { %3167 = shalt.err (!%p3164_p0)
}
  0xc5   : > { %s3168_s6 = scalar_lea.vmem %s482_s21, 16  ;;  %s3175_s1 = scalar_lea.vmem %s482_s21, 32 }
  0xc6   : > { %p3169_p9 = scmp.ne.s32.totalorder %s482_s21, %s3168_s6  ;;  %p3176_p13 = scmp.lt.s32.totalorder %s482_s21, %s482_s21 }
  0xc7   : > { %p3177_p4 = scmp.lt.s32.totalorder %s3175_s1, %s3168_s6 }
  0xc8   : > { %p3171_p10 = pnand %p3169_p9, %p4373_p6 }
  0xc9   : > { %p3178_p7 = por %p3177_p4, %p3176_p13 }
  0xca   : > { %p3172_p11 = pneg %p3171_p10 }
  0xcc   : > { %p3179_p12 = pnand %p3178_p7, %p3172_p11 }
  0xce   : > { %3182 = shalt.err (!%p3179_p12)
}
  0xcf   : > { %2850 = dma.hbm_to_vmem [thread:$0]  (!%p4374_p5), %s4301_s7, 16, %s482_s21, [#allocation13]  }
  0xd0   : > { %s3183_s3 = scalar_lea.hbm %s4303_s9, 32 }
  0xd1   : > { %p3184_p3 = scmp.ne.s32.totalorder %s4303_s9, %s3183_s3  ;;  %p3190_p12 = scmp.lt.u32.totalorder %s3183_s3, %s4303_s9 }
  0xd3   : > { %p3186_p8 = pnand %p3184_p3, %p4373_p6 }
  0xd5   : > { %p3187_p2 = pneg %p3186_p8 }
  0xd7   : > { %p3192_p1 = pnand %p3190_p12, %p3187_p2 }
  0xd9   : > { %3195 = shalt.err (!%p3192_p1)
}
  0xda   : > { %s3196_s16 = scalar_lea.vmem %s506_s25, 32  ;;  %p3204_p11 = scmp.lt.s32.totalorder %s506_s25, %s506_s25 }
  0xdb   : > { %p3197_p0 = scmp.ne.s32.totalorder %s506_s25, %s3196_s16  ;;  %p3205_p13 = scmp.lt.s32.totalorder %s3196_s16, %s3196_s16 }
  0xdd   : > { %p3199_p9 = pnand %p3197_p0, %p4373_p6  ;;  %p3206_p4 = por %p3205_p13, %p3204_p11 }
  0xdf   : > { %p3200_p10 = pneg %p3199_p9 }
  0xe1   : > { %p3207_p7 = pnand %p3206_p4, %p3200_p10 }
  0xe3   : > { %3210 = shalt.err (!%p3207_p7)
}
  0xe4   : > { %2856 = dma.hbm_to_vmem [thread:$0]  (!%p4374_p5), %s4303_s9, 32, %s506_s25, [#allocation16]  }
  0xe5   : > { %s3444_s6 = smov [#allocation18]   ;;  %s3211_s23 = scalar_lea.hbm %s4305_s11, 32 }
  0xe6   : > { %s519_s1 = sshll.u32 %s3444_s6, 4  ;;  %p3212_p3 = scmp.ne.s32.totalorder %s4305_s11, %s3211_s23  ;;  %s520_s1 = int_to_ptr.vmem [resolvable:$true] %s519_s1 }
  0xe7   : > { %p3218_p12 = scmp.lt.u32.totalorder %s3211_s23, %s4305_s11 }
  0xe8   : > { %p3214_p8 = pnand %p3212_p3, %p4373_p6 }
  0xea   : > { %p3215_p2 = pneg %p3214_p8 }
  0xec   : > { %p3220_p1 = pnand %p3218_p12, %p3215_p2 }
  0xee   : > { %3223 = shalt.err (!%p3220_p1)
}
  0xef   : > { %s3224_s25 = scalar_lea.vmem %s520_s1, 32  ;;  %p3232_p11 = scmp.lt.s32.totalorder %s520_s1, %s520_s1 }
  0xf0   : > { %p3225_p0 = scmp.ne.s32.totalorder %s520_s1, %s3224_s25  ;;  %p3233_p13 = scmp.lt.s32.totalorder %s3224_s25, %s3224_s25 }
  0xf2   : > { %p3227_p9 = pnand %p3225_p0, %p4373_p6  ;;  %p3234_p4 = por %p3233_p13, %p3232_p11 }
  0xf4   : > { %p3228_p10 = pneg %p3227_p9 }
  0xf6   : > { %p3235_p7 = pnand %p3234_p4, %p3228_p10 }
  0xf8   : > { %3238 = shalt.err (!%p3235_p7)
}
  0xf9   : > { %2859 = dma.hbm_to_vmem [thread:$0]  (!%p4374_p5), %s4305_s11, 32, %s520_s1, [#allocation19]  }
  0xfa   : > { %s3848_s13 = scalar_lea.hbm %s4294_s0, %s3718_s2  ;;  %s540_s15 = scalar_lea.vmem [#allocation3], %s3715_s30 }
  0xfb   : > { %s548_s6 = sshll.u32 %s540_s15, 4  ;;  %s4377_s28 = sand.u32 1, %s3421_s20   ;;  %s549_s6 = int_to_ptr.vmem [resolvable:$true] %s548_s6 }
  0xfc   : > { %s537_s18 = scalar_lea.sflag [#allocation4], %s4377_s28  ;;  %s3239_s10 = scalar_lea.hbm %s3848_s13, 128 }
  0xfd   : > { %p3240_p6 = scmp.ne.s32.totalorder %s3848_s13, %s3239_s10  ;;  %p4378_p3 = scmp.ne.s32.totalorder %s4372_s14, 0 }
  0xfe   : > { %s3244_s29 = scalar_lea.hbm %s4294_s0, 256  ;;  %p3245_p5 = scmp.lt.u32.totalorder %s3848_s13, %s4294_s0 }
  0xff   : > { %p3242_p8 = pnand %p3240_p6, %p4378_p3  ;;  %p3246_p12 = scmp.lt.u32.totalorder %s3244_s29, %s3239_s10 }
 0x100   : > { %p3248_p0 = scmp.lt.u32.totalorder %s3239_s10, %s3848_s13 }
 0x101   : > { %p3243_p2 = pneg %p3242_p8  ;;  %p3247_p1 = por %p3246_p12, %p3245_p5 }
 0x103   : > { %p3249_p9 = por %p3248_p0, %p3247_p1 }
 0x105   : > { %p3250_p10 = pnand %p3249_p9, %p3243_p2 }
 0x107   : > { %3253 = shalt.err (!%p3250_p10)
}
 0x108   : > { %s3254_s12 = scalar_lea.vmem %s549_s6, 128  ;;  %s3445_s25 = smov [#allocation3]  }
 0x109   : > { %p3255_p11 = scmp.ne.s32.totalorder %s549_s6, %s3254_s12  ;;  %s3259_s26 = sshll.u32 %s3445_s25, 4  ;;  %s3260_s26 = int_to_ptr.vmem [resolvable:$false] %s3259_s26 }
 0x10a   : > { %s3261_s27 = scalar_lea.vmem %s3260_s26, 256  ;;  %p3262_p7 = scmp.lt.s32.totalorder %s549_s6, %s3260_s26 }
 0x10b   : > { %p3257_p13 = pnand %p3255_p11, %p4378_p3  ;;  %p3263_p6 = scmp.lt.s32.totalorder %s3261_s27, %s3254_s12 }
 0x10d   : > { %p3258_p4 = pneg %p3257_p13  ;;  %p3264_p8 = por %p3263_p6, %p3262_p7 }
 0x10f   : > { %p3265_p5 = pnand %p3264_p8, %p3258_p4 }
 0x111   : > { %3268 = shalt.err (!%p3265_p5)
}
 0x112   : > { %p4379_p12 = scmp.ne.s32.totalorder %s4370_s4, 0  ;;  %s4380_s15 = sld [smem:[#allocation41_spill]] }
 0x113   : > { %s577_s10 = scalar_lea.vmem [#allocation8], %s3715_s30 }
 0x114   : > { %2863 = dma.hbm_to_vmem [thread:$0]  (!%p4379_p12), %s3848_s13, 128, %s549_s6, %s537_s18  }
 0x115   : > { %s584_s1 = sshll.u32 %s577_s10, 4  ;;  %s585_s1 = int_to_ptr.vmem [resolvable:$true] %s584_s1 }
 0x118   : > { %s3874_s28 = scalar_lea.hbm %s4380_s15, %s3718_s2  ;;  %s3274_s13 = scalar_lea.hbm %s4380_s15, 256 }
 0x119   : > { %s3269_s23 = scalar_lea.hbm %s3874_s28, 128  ;;  %p3275_p9 = scmp.lt.u32.totalorder %s3874_s28, %s4380_s15 }
 0x11a   : > { %p3270_p2 = scmp.ne.s32.totalorder %s3874_s28, %s3269_s23  ;;  %p3276_p10 = scmp.lt.u32.totalorder %s3274_s13, %s3269_s23 }
 0x11b   : > { %p3278_p13 = scmp.lt.u32.totalorder %s3269_s23, %s3874_s28 }
 0x11c   : > { %p3272_p1 = pnand %p3270_p2, %p4378_p3  ;;  %p3277_p11 = por %p3276_p10, %p3275_p9 }
 0x11e   : > { %p3273_p0 = pneg %p3272_p1  ;;  %p3279_p4 = por %p3278_p13, %p3277_p11 }
 0x120   : > { %p3280_p7 = pnand %p3279_p4, %p3273_p0 }
 0x122   : > { %3283 = shalt.err (!%p3280_p7)
}
 0x123   : > { %s3284_s30 = scalar_lea.vmem %s585_s1, 128  ;;  %s3446_s2 = smov [#allocation8]  }
 0x124   : > { %p3285_p6 = scmp.ne.s32.totalorder %s585_s1, %s3284_s30  ;;  %s3289_s22 = sshll.u32 %s3446_s2, 4  ;;  %s3290_s22 = int_to_ptr.vmem [resolvable:$false] %s3289_s22 }
 0x125   : > { %s3291_s12 = scalar_lea.vmem %s3290_s22, 256  ;;  %p3292_p2 = scmp.lt.s32.totalorder %s585_s1, %s3290_s22 }
 0x126   : > { %p3287_p8 = pnand %p3285_p6, %p4378_p3  ;;  %p3293_p1 = scmp.lt.s32.totalorder %s3291_s12, %s3284_s30 }
 0x128   : > { %p3288_p5 = pneg %p3287_p8  ;;  %p3294_p12 = por %p3293_p1, %p3292_p2 }
 0x12a   : > { %p3295_p9 = pnand %p3294_p12, %p3288_p5 }
 0x12c   : > { %3298 = shalt.err (!%p3295_p9)
}
 0x12d   : > { %p4381_p10 = scmp.ne.s32.totalorder %s4370_s4, 0  ;;  %s4382_s25 = sld [smem:[#allocation35_spill]] }
 0x12f   : > { %2869 = dma.hbm_to_vmem [thread:$0]  (!%p4381_p10), %s3874_s28, 128, %s585_s1, %s3738_s8  }
 0x133   : > { %p4383_p0 = scmp.ne.s32.totalorder %s4382_s25, 0 }
 0x134   : > { %s3898_s14 = sand.u32 (!%p4383_p0), 1, %s3417_s19   ;;  %p4384_p3 = scmp.ne.s32.totalorder (!%p4383_p0), %s4364_s17, 0 }
 0x135   : > { %593 = sbr.rel (%p4383_p0) target bundleno = 4789 (0x12b5), region = 76  ;;  %s3901_s26 = sshll.u32 (!%p4383_p0), %s3898_s14, 3 }
 0x136   : > { %s596_s27 = scalar_lea.sflag (!%p4383_p0), [#allocation4], %s3898_s14  ;;  %s599_s16 = scalar_lea.vmem (!%p4383_p0), [#allocation3], %s3901_s26 }
 0x13c   : > { %3380 = dma.done.wait (%p4384_p3), %s596_s27, 128  }
 0x13d   : > { %3382 = vsyncadd (%p4384_p3), %s596_s27, 4294967168  ;;  %s604_s8 = sand.u32 1, %s3573_s24   ;;  %s608_s21 = scalar_lea.vmem [#allocation6], %s3901_s26 }
 0x13e   : > { %s605_s4 = scalar_lea.sflag [#allocation7], %s604_s8 }
 0x13f   : > { %3384 = dma.done.wait (%p4384_p3), %s605_s4, 256  }
 0x140   : > { %3386 = vsyncadd (%p4384_p3), %s605_s4, 4294967040  ;;  %s617_s28 = scalar_lea.vmem [#allocation8], %s3901_s26  ;;  %p4385_p12 = scmp.eq.s32.totalorder %s3573_s24, 0 }
 0x142   : > { %3388 = dma.done.wait (%p4385_p12), [#allocation10], 512   ;;  %p4386_p11 = pmov %p4385_p12 }
 0x144   : > { %3390 = vsyncadd (%p4386_p11), [#allocation10], 4294966784  ;;  %p4387_p13 = pmov %p4386_p11 }
 0x145   : > { %p4388_p4 = pmov %p4386_p11 }
 0x146   : > { %3392 = dma.done.wait (%p4387_p13), [#allocation13], 272  }
 0x147   : > { %3394 = vsyncadd (%p4388_p4), [#allocation13], 4294967024  ;;  %p4389_p7 = pmov %p4388_p4 }
 0x148   : > { %p4390_p6 = pmov %p4388_p4 }
 0x149   : > { %3396 = dma.done.wait (%p4389_p7), [#allocation16], 288  }
 0x14a   : > { %3398 = vsyncadd (%p4390_p6), [#allocation16], 4294967008  ;;  %p4391_p8 = pmov %p4388_p4 }
 0x14b   : > { %p4392_p5 = pmov %p4388_p4 }
 0x14c   : > { %3400 = dma.done.wait (%p4391_p8), [#allocation19], 32  }
 0x14d   : > { %3402 = vsyncadd (%p4392_p5), [#allocation19], 4294967264  ;;  %v3447_v0 = vmov 0.0   ;;  %vm3448_vm0 = vmmov 0   ;;  %v2963_v1 = vld [vmem:[#allocation9] sm:$0xff]   ;;  %s3449_s17 = smov 96  }
 0x14e   : > { %2640 = vmatprep.subr.bf16.mxu0 %v3447_v0  ;;  %2648 = vmatprep.subr.bf16.mxu1 %v3447_v0  ;;  %v2964_v2 = vld [vmem:[#allocation9 + $0x8] sm:$0xff]   ;;  %v3939_v3 = vld [vmem:[%s599_s16] sm:$0xff]  ;;  %vm742_vm1 = vcmask 261120   ;;  %s4393_s1 = sld [smem:[#allocation43_spill]]  ;;  %s3450_s23 = smov 120   ;;  %vm841_vm2 = vcmask 64512  }
 0x14f   : > { %2644 = vmatprep.mubr.msk.bf16.mxu0 %vm3448_vm0, %v3447_v0  ;;  %2652 = vmatprep.mubr.msk.bf16.mxu1 %vm3448_vm0, %v3447_v0  ;;  %v723_v5 = vpack.c.bf16 %v3939_v3, %v3939_v3  ;;  %v709_v7 = vld [vmem:[%s608_s21] sm:$0xff]  ;;  %s3451_s29 = smov 112   ;;  %s3452_s3 = smov 104   ;;  %vm906_vm3 = vcmask 1043456   ;;  %vm951_vm4 = vcmask 60416   ;;  %vm1071_vm5 = vcmask 126016  }
 0x150   : > { %787 = vrot.lane.b32.xlu0 %v2963_v1, %s3449_s17  ;;  %2641 = vmatpush3.bf16.msra.mxu0 %v2963_v1  ;;  %v786_v9 = vpack.c.bf16 %v709_v7, %v709_v7  ;;  %s3453_s13 = smov 88   ;;  %s3454_s6 = smov 72   ;;  %vm1190_vm6 = vcmask 191616   ;;  %vm1309_vm7 = vcmask 257216  }
 0x151   : > { %2642 = vmatprep.subr.bf16.mxu0 %v3447_v0  ;;  %s3455_s18 = smov 80   ;;  %s3456_s30 = smov 8  }
 0x152   : > { %s3457_s2 = smov 16   ;;  %s3458_s22 = smov 24  }
 0x153   : > { %s4394_s27 = sld [smem:[#allocation47_spill]]  ;;  %s4395_s4 = sld [smem:[#allocation48_spill]] }
 0x154   : > { %v2523_v4 = vld [vmem:[%s4393_s1] ss:$0 sm:$0xff]  ;;  %789 = vrot.lane.b32.xlu0 %v2964_v2, %s3449_s17  ;;  %2643 = vmatpush3.bf16.msra.mxu0 %v2964_v2  ;;  %s2522_s21 = sshll.u32 %s3898_s14, 5  ;;  %s4396_s10 = sld [smem:[#allocation46_spill]] }
 0x155   : > { %793 = vrot.lane.b32.xlu1 %v2523_v4, %s3449_s17  ;;  %2656 = vmatprep.subr.bf16.mxu0 %v3447_v0  ;;  %s4399_s16 = sld [smem:[#allocation50_spill]] }
 0x157   : > { %2645 = vmatmul.mubr.msk.bf16.vlgmr.msra.gmra.mrb[0].mxu0 %vm742_vm1, %v723_v5 }
 0x158   : > { %2658 = vmatprep.mubr.msk.bf16.mxu0 %vm3448_vm0, %v3447_v0 }
 0x1c2   : > { %v788_v6 = vpop.permute.xlu0 %787 }
 0x1c3   : > { %2649 = vmatpush3.bf16.msra.mxu1 %v788_v6 }
 0x1c4   : > { %2650 = vmatprep.subr.bf16.mxu1 %v3447_v0 }
 0x1c6   : > { %v790_v8 = vpop.permute.xlu0 %789 }
 0x1c7   : > { %2651 = vmatpush3.bf16.msra.mxu1 %v790_v8  ;;  %v794_v16 = vpop.permute.xlu1 %793 }
 0x1c8   : > { %2662 = vmatprep.subr.bf16.mxu1 %v3447_v0 }
 0x1ca   : > { %2653 = vmatmul.mubr.msk.bf16.vlgmr.msra.gmra.mrb[0].mxu1 %vm742_vm1, %v786_v9 }
 0x1cb   : > { %2664 = vmatprep.mubr.msk.bf16.mxu1 %vm3448_vm0, %v3447_v0 }
 0x22a   : > { %v780_v10 = vpop.f32.mrb[0].mxu0 }
 0x22b   : > { %v781_v11 = vadd.f32 %v2523_v4, %v780_v10  ;;  %v2646_v12 = vpop.f32.mrb[1].mxu0 }
 0x22c   : > { %v783_v13 = vpop.f32.mrb[2].mxu0 }
 0x22d   : > { %v839_v14 = vpack.c.bf16 %v781_v11, %v781_v11  ;;  %v2647_v15 = vpop.f32.mrb[3].mxu0 }
 0x22f   : > { %954 = vrot.lane.b32.xlu0 %v839_v14, %s3450_s23 }
 0x233   : > { %1073 = vrot.lane.b32.xlu0 %v839_v14, %s3451_s29 }
 0x237   : > { %1192 = vrot.lane.b32.xlu0 %v839_v14, %s3452_s3 }
 0x29d   : > { %v833_v17 = vpop.f32.mrb[0].mxu1 }
 0x29e   : > { %v834_v18 = vadd.f32 %v833_v17, %v794_v16  ;;  %v2654_v19 = vpop.f32.mrb[1].mxu1 }
 0x29f   : > { %v836_v20 = vpop.f32.mrb[2].mxu1 }
 0x2a0   : > { %v3963_v21 = vpack.c.bf16 %v834_v18, %v834_v18  ;;  %v2655_v22 = vpop.f32.mrb[3].mxu1 }
 0x2a1   : > { %v955_v27 = vpop.permute.xlu0 %954 }
 0x2a2   : > { %956 = vrot.lane.b32.xlu1 %v3963_v21, %s3450_s23  ;;  %v846_v23 = vsel %vm841_vm2, %v3963_v21, 0 }
 0x2a3   : > { %2657 = vmatpush3.bf16.xpose.msra.mxu0 %v846_v23 }
 0x2a4   : > { %2668 = vmatprep.subr.bf16.mxu0 %v3447_v0 }
 0x2a5   : > { %v1074_v30 = vpop.permute.xlu0 %1073 }
 0x2a6   : > { %1075 = vrot.lane.b32.xlu1 %v3963_v21, %s3451_s29 }
 0x2a9   : > { %v1193_v32 = vpop.permute.xlu0 %1192 }
 0x2aa   : > { %1194 = vrot.lane.b32.xlu1 %v3963_v21, %s3452_s3  ;;  %2659 = vmatmul.mubr.msk.bf16.vlgmr.msra.gmra.mrb[4].mxu0 %vm841_vm2, %v839_v14 }
 0x2ab   : > { %2670 = vmatprep.mubr.msk.bf16.mxu0 %vm3448_vm0, %v3447_v0 }
 0x314   : > { %v957_v24 = vpop.permute.xlu1 %956 }
 0x315   : > { %v962_v25 = vsel %vm841_vm2, %v957_v24, 0 }
 0x316   : > { %2669 = vmatpush3.bf16.xpose.msra.mxu0 %v962_v25 }
 0x317   : > { %2680 = vmatprep.subr.bf16.mxu0 %v3447_v0 }
 0x318   : > { %v1076_v26 = vpop.permute.xlu1 %1075 }
 0x319   : > { %v1081_v28 = vsel %vm841_vm2, %v1076_v26, 0 }
 0x31c   : > { %v1195_v29 = vpop.permute.xlu1 %1194 }
 0x31d   : > { %2671 = vmatmul.mubr.msk.bf16.vlgmr.msra.gmra.mrb[8].mxu0 %vm841_vm2, %v955_v27  ;;  %v1200_v31 = vsel %vm841_vm2, %v1195_v29, 0 }
 0x31e   : > { %2681 = vmatpush3.bf16.xpose.msra.mxu0 %v1081_v28  ;;  %2682 = vmatprep.mubr.msk.bf16.mxu0 %vm3448_vm0, %v3447_v0 }
 0x31f   : > { %2692 = vmatprep.subr.bf16.mxu0 %v3447_v0 }
 0x325   : > { %2683 = vmatmul.mubr.msk.bf16.vlgmr.msra.gmra.mrb[12].mxu0 %vm841_vm2, %v1074_v30 }
 0x326   : > { %2693 = vmatpush3.bf16.xpose.msra.mxu0 %v1200_v31  ;;  %2694 = vmatprep.mubr.msk.bf16.mxu0 %vm3448_vm0, %v3447_v0 }
 0x327   : > { %2704 = vmatprep.subr.bf16.mxu0 %v3447_v0 }
 0x32d   : > { %2695 = vmatmul.mubr.msk.bf16.vlgmr.msra.gmra.mrb[16].mxu0 %vm841_vm2, %v1193_v32 }
 0x32e   : > { %2708 = vmatprep.mubr.msk.bf16.mxu0 %vm3448_vm0, %v3447_v0 }
 0x37d   : > { %v882_v33 = vpop.f32.mrb[4].mxu0 }
 0x37e   : > { %v2660_v34 = vpop.f32.mrb[5].mxu0  ;;  %v888_v35 = vsel %vm841_vm2, %v882_v33, -inf }
 0x37f   : > { %889 = vmax.xlane.f32.xlu1 %v888_v35  ;;  %v885_v36 = vpop.f32.mrb[6].mxu0 }
 0x380   : > { %v2661_v37 = vpop.f32.mrb[7].mxu0 }
 0x3f0   : > { %v998_v38 = vpop.f32.mrb[8].mxu0 }
 0x3f1   : > { %v2672_v39 = vpop.f32.mrb[9].mxu0  ;;  %v1004_v40 = vsel %vm841_vm2, %v998_v38, -inf }
 0x3f2   : > { %1005 = vmax.xlane.f32.xlu0 %v1004_v40  ;;  %v1001_v41 = vpop.f32.mrb[10].mxu0 }
 0x3f3   : > { %v2673_v42 = vpop.f32.mrb[11].mxu0 }
 0x3f8   : > { %v1117_v43 = vpop.f32.mrb[12].mxu0 }
 0x3f9   : > { %v2684_v44 = vpop.f32.mrb[13].mxu0  ;;  %v1123_v45 = vsel %vm841_vm2, %v1117_v43, -inf }
 0x3fa   : > { %1124 = vmax.xlane.f32.xlu0 %v1123_v45  ;;  %v1120_v46 = vpop.f32.mrb[14].mxu0  ;;  %v2965_v45 = vld [vmem:[#allocation11] sm:$0xff]  }
 0x3fb   : > { %v2685_v47 = vpop.f32.mrb[15].mxu0  ;;  %2705 = vmatpush3.bf16.msra.mxu0 %v2965_v45  ;;  %v2966_v46 = vld [vmem:[#allocation11 + $0x8] sm:$0xff]  }
 0x3fc   : > { %2706 = vmatprep.subr.bf16.mxu0 %v3447_v0 }
 0x3ff   : > { %2707 = vmatpush3.bf16.msra.mxu0 %v2966_v46 }
 0x400   : > { %v1236_v48 = vpop.f32.mrb[16].mxu0  ;;  %2720 = vmatprep.subr.bf16.mxu0 %v3447_v0 }
 0x401   : > { %v2696_v49 = vpop.f32.mrb[17].mxu0  ;;  %v1242_v50 = vsel %vm841_vm2, %v1236_v48, -inf }
 0x402   : > { %1243 = vmax.xlane.f32.xlu1 %v1242_v50  ;;  %v1239_v51 = vpop.f32.mrb[18].mxu0 }
 0x403   : > { %v2697_v52 = vpop.f32.mrb[19].mxu0 }
 0x40c   : > { %v890_v53 = vpop.xlane.xlu1 %889 }
 0x40d   : > { %v891_v54 = vsub.f32 %v882_v33, %v890_v53 }
 0x40f   : > { %v892_v55 = vmul.f32 1.442695, %v891_v54 }
 0x411   : > { %2975 = vpow2.f32 %v892_v55 }
 0x41b   : > { %v2976_v56 = vpop.eup %2975 }
 0x41c   : > { %v894_v57 = vsel %vm841_vm2, %v2976_v56, 0.0 }
 0x41d   : > { %895 = vadd.xlane.f32.xlu0 %v894_v57 }
 0x47f   : > { %v1006_v58 = vpop.xlane.xlu0 %1005 }
 0x480   : > { %v1007_v59 = vsub.f32 %v998_v38, %v1006_v58 }
 0x482   : > { %v1008_v60 = vmul.f32 1.442695, %v1007_v59 }
 0x484   : > { %2977 = vpow2.f32 %v1008_v60 }
 0x487   : > { %v1125_v61 = vpop.xlane.xlu0 %1124 }
 0x488   : > { %v1126_v62 = vsub.f32 %v1117_v43, %v1125_v61  ;;  %v1312_v61 = vlaneseq }
 0x48a   : > { %v1127_v63 = vmul.f32 1.442695, %v1126_v62  ;;  %v4040_v62 = vshrl.u32 %v1312_v61, 7 }
 0x48c   : > { %2979 = vpow2.f32 %v1127_v63  ;;  %v4043_v63 = vsub.s32 0, %v4040_v62 }
 0x48e   : > { %v2978_v1 = vpop.eup %2977 }
 0x48f   : > { %v1010_v2 = vsel %vm841_vm2, %v2978_v1, 0.0  ;;  %v1244_v6 = vpop.xlane.xlu1 %1243 }
 0x490   : > { %1011 = vadd.xlane.f32.xlu1 %v1010_v2  ;;  %v1245_v7 = vsub.f32 %v1236_v48, %v1244_v6 }
 0x492   : > { %v1246_v8 = vmul.f32 1.442695, %v1245_v7 }
 0x494   : > { %2981 = vpow2.f32 %v1246_v8 }
 0x496   : > { %v2980_v4 = vpop.eup %2979 }
 0x497   : > { %v1129_v5 = vsel %vm841_vm2, %v2980_v4, 0.0 }
 0x498   : > { %1130 = vadd.xlane.f32.xlu0 %v1129_v5 }
 0x49e   : > { %v2982_v9 = vpop.eup %2981 }
 0x49f   : > { %v1248_v10 = vsel %vm841_vm2, %v2982_v9, 0.0 }
 0x4a1   : > { %1016 = vrot.lane.b32.xlu1 %v3963_v21, %s3453_s13 }
 0x4aa   : > { %v896_v11 = vpop.xlane.xlu0 %895 }
 0x4ab   : > { %2983 = vrcp.f32 %v896_v11  ;;  %v2967_v11 = vld [vmem:[#allocation12] sm:$0xff]  }
 0x4ae   : > { %901 = vrot.lane.b32.xlu0 %v3963_v21, %s3449_s17 }
 0x4b2   : > { %1254 = vrot.lane.b32.xlu0 %v3963_v21, %s3454_s6 }
 0x4b5   : > { %v2984_v13 = vpop.eup %2983 }
 0x4b6   : > { %v898_v15 = vmul.f32 %v2984_v13, %v2976_v56 }
 0x4b8   : > { %v899_v19 = vpack.c.bf16 %v898_v15, %v898_v15 }
 0x4c5   : > { %1249 = vadd.xlane.f32.xlu1 %v1248_v10 }
 0x4d6   : > { %1135 = vrot.lane.b32.xlu1 %v3963_v21, %s3455_s18 }
 0x51d   : > { %v1012_v12 = vpop.xlane.xlu1 %1011 }
 0x51e   : > { %2985 = vrcp.f32 %v1012_v12  ;;  %v2968_v12 = vld [vmem:[#allocation12 + $0x8] sm:$0xff]  }
 0x521   : > { %v1017_v18 = vpop.permute.xlu1 %1016 }
 0x522   : > { %v1022_v22 = vsel %vm906_vm3, %v1017_v18, 0  ;;  %v2542_v18 = vld [vmem:[#allocation14] ss:$0 sm:$0xff] }
 0x525   : > { %v1131_v14 = vpop.xlane.xlu0 %1130 }
 0x526   : > { %2987 = vrcp.f32 %v1131_v14 }
 0x528   : > { %v2986_v20 = vpop.eup %2985 }
 0x529   : > { %v902_v16 = vpop.permute.xlu0 %901  ;;  %v1014_v21 = vmul.f32 %v2986_v20, %v2978_v1  ;;  %v4045_v1 = vld [vmem:[#allocation17] sm:$0x3] }
 0x52a   : > { %v908_v17 = vsel %vm906_vm3, %v902_v16, 0  ;;  %v1315_v2 = vrot.slane %v4045_v1, %v4043_v63 }
 0x52b   : > { %2663 = vmatpush3.bf16.msra.mxu1 %v908_v17  ;;  %v1015_v23 = vpack.c.bf16 %v1014_v21, %v1014_v21 }
 0x52c   : > { %2674 = vmatprep.subr.bf16.mxu1 %v3447_v0 }
 0x52d   : > { %v1255_v29 = vpop.permute.xlu0 %1254 }
 0x52e   : > { %2665 = vmatmul.mubr.msk.bf16.vlgmr.msra.gmra.mrb[4].mxu1 %vm841_vm2, %v899_v19  ;;  %v1260_v31 = vsel %vm906_vm3, %v1255_v29, 0 }
 0x52f   : > { %2675 = vmatpush3.bf16.msra.mxu1 %v1022_v22  ;;  %2676 = vmatprep.mubr.msk.bf16.mxu1 %vm3448_vm0, %v3447_v0  ;;  %v710_v22 = vld [vmem:[%s617_s28] sm:$0xff]  ;;  %s4131_s28 = scalar_lea.vmem [#allocation21], %s2522_s21 }
 0x530   : > { %2686 = vmatprep.subr.bf16.mxu1 %v3447_v0  ;;  %v2988_v24 = vpop.eup %2987  ;;  %s2266_s12 = sshll.u32 %s4131_s28, 4  ;;  %s4209_s12 = int_to_ptr.vmem [resolvable:$true] %s2266_s12 }
 0x531   : > { %v1133_v26 = vmul.f32 %v2988_v24, %v2980_v4  ;;  %v1467_v24 = vpack.c.bf16 %v710_v22, %v710_v22  ;;  %s3299_s21 = scalar_lea.vmem %s4209_s12, 512 }
 0x532   : > { %p3300_p2 = scmp.ne.s32.totalorder %s4209_s12, %s3299_s21 }
 0x533   : > { %v1134_v30 = vpack.c.bf16 %v1133_v26, %v1133_v26  ;;  %v4072_v26 = vld [vmem:[%s4395_s4] sm:$0x7]  ;;  %s2238_s4 = scalar_lea.sflag [#allocation22], %s3898_s14 }
 0x536   : > { %2677 = vmatmul.mubr.msk.bf16.vlgmr.msra.gmra.mrb[8].mxu1 %vm841_vm2, %v1015_v23 }
 0x537   : > { %2688 = vmatprep.mubr.msk.bf16.mxu1 %vm3448_vm0, %v3447_v0 }
 0x552   : > { %v1250_v25 = vpop.xlane.xlu1 %1249 }
 0x553   : > { %2989 = vrcp.f32 %v1250_v25  ;;  %v4067_v25 = vld [vmem:[%s4394_s27] sm:$0x7] }
 0x556   : > { %v1136_v27 = vpop.permute.xlu1 %1135 }
 0x557   : > { %v1141_v28 = vsel %vm906_vm3, %v1136_v27, 0  ;;  %v1389_v27 = vrot.slane %v4067_v25, %v4043_v63 }
 0x558   : > { %2687 = vmatpush3.bf16.msra.mxu1 %v1141_v28 }
 0x559   : > { %2698 = vmatprep.subr.bf16.mxu1 %v3447_v0 }
 0x55b   : > { %2689 = vmatmul.mubr.msk.bf16.vlgmr.msra.gmra.mrb[12].mxu1 %vm841_vm2, %v1134_v30  ;;  %v1394_v30 = vrot.slane %v4072_v26, %v4043_v63 }
 0x55c   : > { %2699 = vmatpush3.bf16.msra.mxu1 %v1260_v31  ;;  %2700 = vmatprep.mubr.msk.bf16.mxu1 %vm3448_vm0, %v3447_v0 }
 0x55d   : > { %v2990_v32 = vpop.eup %2989  ;;  %2712 = vmatprep.subr.bf16.mxu1 %v3447_v0 }
 0x55e   : > { %v1252_v33 = vmul.f32 %v2990_v32, %v2982_v9 }
 0x560   : > { %v1253_v34 = vpack.c.bf16 %v1252_v33, %v1252_v33 }
 0x563   : > { %2701 = vmatmul.mubr.msk.bf16.vlgmr.msra.gmra.mrb[16].mxu1 %vm841_vm2, %v1253_v34 }
 0x564   : > { %2716 = vmatprep.mubr.msk.bf16.mxu1 %vm3448_vm0, %v3447_v0  ;;  %2713 = vmatpush3.bf16.msra.mxu1 %v2967_v11 }
 0x565   : > { %2714 = vmatprep.subr.bf16.mxu1 %v3447_v0 }
 0x568   : > { %2715 = vmatpush3.bf16.msra.mxu1 %v2968_v12 }
 0x569   : > { %2728 = vmatprep.subr.bf16.mxu1 %v3447_v0 }
 0x601   : > { %v944_v35 = vpop.f32.mrb[4].mxu1 }
 0x602   : > { %v950_v36 = vpack.c.bf16 %v944_v35, %v944_v35  ;;  %v2666_v37 = vpop.f32.mrb[5].mxu1 }
 0x603   : > { %v947_v38 = vpop.f32.mrb[6].mxu1 }
 0x604   : > { %952 = vst.msk [vmem:[#allocation2] sm:$0xf] %vm951_vm4, %v950_v36  ;;  %v2667_v39 = vpop.f32.mrb[7].mxu1 }
 0x609   : > { %v1058_v40 = vpop.f32.mrb[8].mxu1 }
 0x60a   : > { %v2577_v41 = vpack.c.bf16 %v1058_v40, %v1058_v40  ;;  %v2678_v42 = vpop.f32.mrb[9].mxu1 }
 0x60b   : > { %v1061_v43 = vpop.f32.mrb[10].mxu1 }
 0x60c   : > { %1068 = vrot.lane.b32.xlu1 %v2577_v41, %s3456_s30  ;;  %v2679_v44 = vpop.f32.mrb[11].mxu1 }
 0x62e   : > { %v1177_v47 = vpop.f32.mrb[12].mxu1 }
 0x62f   : > { %v2578_v48 = vpack.c.bf16 %v1177_v47, %v1177_v47  ;;  %v2690_v49 = vpop.f32.mrb[13].mxu1 }
 0x630   : > { %v1180_v50 = vpop.f32.mrb[14].mxu1 }
 0x631   : > { %1187 = vrot.lane.b32.xlu0 %v2578_v48, %s3457_s2  ;;  %v2691_v51 = vpop.f32.mrb[15].mxu1 }
 0x636   : > { %v1296_v52 = vpop.f32.mrb[16].mxu1 }
 0x637   : > { %v2579_v53 = vpack.c.bf16 %v1296_v52, %v1296_v52  ;;  %v2702_v54 = vpop.f32.mrb[17].mxu1 }
 0x638   : > { %v1299_v55 = vpop.f32.mrb[18].mxu1 }
 0x639   : > { %1306 = vrot.lane.b32.xlu1 %v2579_v53, %s3458_s22  ;;  %v2703_v56 = vpop.f32.mrb[19].mxu1 }
 0x67e   : > { %v1069_v57 = vpop.permute.xlu1 %1068 }
 0x67f   : > { %1072 = vst.msk [vmem:[#allocation2] sm:$0xf] %vm1071_vm5, %v1069_v57 }
 0x6a3   : > { %v1188_v58 = vpop.permute.xlu0 %1187 }
 0x6a4   : > { %1191 = vst.msk [vmem:[#allocation2] sm:$0xf] %vm1190_vm6, %v1188_v58 }
 0x6ab   : > { %v1307_v59 = vpop.permute.xlu1 %1306 }
 0x6ac   : > { %1310 = vst.msk [vmem:[#allocation2] sm:$0xf] %vm1309_vm7, %v1307_v59 }
 0x6b3   : > { %v1311_v60 = vld [vmem:[#allocation2] sm:$0xf] }
 0x6b4   : > { %2709 = vmatmul.mubr.msk.bf16.vlgmr.msra.gmra.mrb[20].mxu0 %vm742_vm1, %v1311_v60 }
 0x6b5   : > { %2724 = vmatprep.mubr.msk.bf16.mxu0 %vm3448_vm0, %v3447_v0 }
 0x787   : > { %v1365_v4 = vpop.f32.mrb[20].mxu0 }
 0x788   : > { %v1366_v5 = vadd.f32 %v1365_v4, %v1315_v2  ;;  %v2710_v6 = vpop.f32.mrb[21].mxu0 }
 0x789   : > { %v1368_v7 = vpop.f32.mrb[22].mxu0 }
 0x78a   : > { %v2711_v8 = vpop.f32.mrb[23].mxu0  ;;  %v1371_v9 = vadd.f32 %v1366_v5, %v3939_v3 }
 0x78c   : > { %v1372_v10 = vsel %vm742_vm1, %v1371_v9, 0.0 }
 0x78d   : > { %1373 = vadd.xlane.f32.xlu0 %v1372_v10 }
 0x7a3   : > { %1468 = vrot.lane.b32.xlu0 %v2967_v11, %s3449_s17 }
 0x7a7   : > { %1474 = vrot.lane.b32.xlu0 %v2542_v18, %s3449_s17 }
 0x81a   : > { %v1374_v13 = vpop.xlane.xlu0 %1373 }
 0x81b   : > { %v1376_v14 = vmul.f32 0.03125, %v1374_v13 }
 0x81d   : > { %v1377_v15 = vsub.f32 %v1371_v9, %v1376_v14 }
 0x81e   : > { %v1469_v17 = vpop.permute.xlu0 %1468 }
 0x81f   : > { %v1378_v16 = vmul.f32 %v1377_v15, %v1377_v15  ;;  %2721 = vmatpush3.bf16.msra.mxu0 %v1469_v17 }
 0x820   : > { %2722 = vmatprep.subr.bf16.mxu0 %v3447_v0 }
 0x821   : > { %v1379_v3 = vsel %vm742_vm1, %v1378_v16, 0.0 }
 0x822   : > { %1380 = vadd.xlane.f32.xlu1 %v1379_v3  ;;  %v1475_v34 = vpop.permute.xlu0 %1474 }
 0x833   : > { %1470 = vrot.lane.b32.xlu1 %v2968_v12, %s3449_s17 }
 0x8af   : > { %v1381_v19 = vpop.xlane.xlu1 %1380 }
 0x8b0   : > { %v1382_v20 = vmul.f32 0.03125, %v1381_v19 }
 0x8b2   : > { %v1383_v21 = vadd.f32 1e-05, %v1382_v20 }
 0x8b3   : > { %v1471_v23 = vpop.permute.xlu1 %1470 }
 0x8b4   : > { %2991 = vrsqrt.f32 %v1383_v21  ;;  %2723 = vmatpush3.bf16.msra.mxu0 %v1471_v23 }
 0x8b5   : > { %2734 = vmatprep.subr.bf16.mxu0 %v3447_v0 }
 0x8b7   : > { %2725 = vmatmul.mubr.msk.bf16.vlgmr.msra.gmra.mrb[24].mxu0 %vm742_vm1, %v1467_v24 }
 0x8b8   : > { %2736 = vmatprep.mubr.msk.bf16.mxu0 %vm3448_vm0, %v3447_v0 }
 0x8be   : > { %v2992_v28 = vpop.eup %2991 }
 0x8bf   : > { %v1385_v29 = vmul.f32 %v2992_v28, %v1377_v15 }
 0x8c1   : > { %v1390_v31 = vmul.f32 %v1389_v27, %v1385_v29 }
 0x8c3   : > { %v4078_v32 = vadd.f32 %v1394_v30, %v1390_v31 }
 0x8c5   : > { %v1405_v33 = vpack.c.bf16 %v4078_v32, %v4078_v32 }
 0x8c7   : > { %2717 = vmatmul.mubr.msk.bf16.vlgmr.msra.gmra.mrb[20].mxu1 %vm742_vm1, %v1405_v33 }
 0x8c8   : > { %2730 = vmatprep.mubr.msk.bf16.mxu1 %vm3448_vm0, %v3447_v0 }
 0x98a   : > { %v1514_v35 = vpop.f32.mrb[24].mxu0 }
 0x98b   : > { %v1515_v36 = vadd.f32 %v1514_v35, %v1475_v34  ;;  %v2726_v37 = vpop.f32.mrb[25].mxu0 }
 0x98c   : > { %v1517_v38 = vpop.f32.mrb[26].mxu0 }
 0x98d   : > { %v4085_v39 = vpack.c.bf16 %v1515_v36, %v1515_v36  ;;  %v2727_v40 = vpop.f32.mrb[27].mxu0 }
 0x98f   : > { %1635 = vrot.lane.b32.xlu1 %v4085_v39, %s3450_s23  ;;  %v1526_v41 = vsel %vm841_vm2, %v4085_v39, 0 }
 0x990   : > { %2729 = vmatpush3.bf16.xpose.msra.mxu1 %v1526_v41 }
 0x991   : > { %2740 = vmatprep.subr.bf16.mxu1 %v3447_v0 }
 0x993   : > { %1755 = vrot.lane.b32.xlu1 %v4085_v39, %s3451_s29 }
 0x997   : > { %1875 = vrot.lane.b32.xlu1 %v4085_v39, %s3452_s3 }
 0x99a   : > { %v1461_v42 = vpop.f32.mrb[20].mxu1 }
 0x99b   : > { %v1462_v43 = vadd.f32 %v2542_v18, %v1461_v42  ;;  %v2718_v44 = vpop.f32.mrb[21].mxu1 }
 0x99c   : > { %v1464_v45 = vpop.f32.mrb[22].mxu1 }
 0x99d   : > { %v1520_v46 = vpack.c.bf16 %v1462_v43, %v1462_v43  ;;  %v2719_v47 = vpop.f32.mrb[23].mxu1 }
 0x99f   : > { %1633 = vrot.lane.b32.xlu0 %v1520_v46, %s3450_s23  ;;  %2731 = vmatmul.mubr.msk.bf16.vlgmr.msra.gmra.mrb[24].mxu1 %vm841_vm2, %v1520_v46 }
 0x9a0   : > { %2742 = vmatprep.mubr.msk.bf16.mxu1 %vm3448_vm0, %v3447_v0 }
 0x9a3   : > { %1753 = vrot.lane.b32.xlu0 %v1520_v46, %s3451_s29 }
 0x9a7   : > { %1873 = vrot.lane.b32.xlu0 %v1520_v46, %s3452_s3 }
 0xa01   : > { %v1636_v48 = vpop.permute.xlu1 %1635 }
 0xa02   : > { %v1641_v49 = vsel %vm841_vm2, %v1636_v48, 0 }
 0xa03   : > { %2741 = vmatpush3.bf16.xpose.msra.mxu1 %v1641_v49 }
 0xa04   : > { %2752 = vmatprep.subr.bf16.mxu1 %v3447_v0 }
 0xa05   : > { %v1756_v50 = vpop.permute.xlu1 %1755 }
 0xa06   : > { %v1761_v52 = vsel %vm841_vm2, %v1756_v50, 0 }
 0xa09   : > { %v1876_v53 = vpop.permute.xlu1 %1875 }
 0xa0a   : > { %v1881_v55 = vsel %vm841_vm2, %v1876_v53, 0 }
 0xa11   : > { %v1634_v51 = vpop.permute.xlu0 %1633 }
 0xa12   : > { %2743 = vmatmul.mubr.msk.bf16.vlgmr.msra.gmra.mrb[28].mxu1 %vm841_vm2, %v1634_v51 }
 0xa13   : > { %2753 = vmatpush3.bf16.xpose.msra.mxu1 %v1761_v52  ;;  %2754 = vmatprep.mubr.msk.bf16.mxu1 %vm3448_vm0, %v3447_v0 }
 0xa14   : > { %2764 = vmatprep.subr.bf16.mxu1 %v3447_v0 }
 0xa15   : > { %v1754_v54 = vpop.permute.xlu0 %1753 }
 0xa19   : > { %v1874_v56 = vpop.permute.xlu0 %1873 }
 0xa1a   : > { %2755 = vmatmul.mubr.msk.bf16.vlgmr.msra.gmra.mrb[32].mxu1 %vm841_vm2, %v1754_v54 }
 0xa1b   : > { %2765 = vmatpush3.bf16.xpose.msra.mxu1 %v1881_v55  ;;  %2766 = vmatprep.mubr.msk.bf16.mxu1 %vm3448_vm0, %v3447_v0 }
 0xa1c   : > { %2776 = vmatprep.subr.bf16.mxu1 %v3447_v0 }
 0xa22   : > { %2767 = vmatmul.mubr.msk.bf16.vlgmr.msra.gmra.mrb[36].mxu1 %vm841_vm2, %v1874_v56 }
 0xa23   : > { %2780 = vmatprep.mubr.msk.bf16.mxu1 %vm3448_vm0, %v3447_v0 }
 0xa72   : > { %v1562_v57 = vpop.f32.mrb[24].mxu1 }
 0xa73   : > { %v2732_v58 = vpop.f32.mrb[25].mxu1  ;;  %v1568_v59 = vsel %vm841_vm2, %v1562_v57, -inf }
 0xa74   : > { %1569 = vmax.xlane.f32.xlu1 %v1568_v59  ;;  %v1565_v60 = vpop.f32.mrb[26].mxu1 }
 0xa75   : > { %v2733_v61 = vpop.f32.mrb[27].mxu1 }
 0xae5   : > { %v1677_v2 = vpop.f32.mrb[28].mxu1 }
 0xae6   : > { %v2744_v4 = vpop.f32.mrb[29].mxu1  ;;  %v1683_v5 = vsel %vm841_vm2, %v1677_v2, -inf }
 0xae7   : > { %1684 = vmax.xlane.f32.xlu0 %v1683_v5  ;;  %v1680_v6 = vpop.f32.mrb[30].mxu1 }
 0xae8   : > { %v2745_v7 = vpop.f32.mrb[31].mxu1 }
 0xaed   : > { %v1797_v8 = vpop.f32.mrb[32].mxu1 }
 0xaee   : > { %v2756_v9 = vpop.f32.mrb[33].mxu1  ;;  %v1803_v10 = vsel %vm841_vm2, %v1797_v8, -inf }
 0xaef   : > { %1804 = vmax.xlane.f32.xlu0 %v1803_v10  ;;  %v1800_v11 = vpop.f32.mrb[34].mxu1 }
 0xaf0   : > { %v2757_v12 = vpop.f32.mrb[35].mxu1 }
 0xaf5   : > { %v1917_v13 = vpop.f32.mrb[36].mxu1 }
 0xaf6   : > { %v2768_v14 = vpop.f32.mrb[37].mxu1  ;;  %v1923_v15 = vsel %vm841_vm2, %v1917_v13, -inf }
 0xaf7   : > { %1924 = vmax.xlane.f32.xlu1 %v1923_v15  ;;  %v1920_v16 = vpop.f32.mrb[38].mxu1  ;;  %v2969_v15 = vld [vmem:[#allocation15] sm:$0xff]  }
 0xaf8   : > { %v2769_v3 = vpop.f32.mrb[39].mxu1  ;;  %2777 = vmatpush3.bf16.msra.mxu1 %v2969_v15 }
 0xaf9   : > { %v2970_v3 = vld [vmem:[#allocation15 + $0x8] sm:$0xff]   ;;  %2778 = vmatprep.subr.bf16.mxu1 %v3447_v0 }
 0xafc   : > { %2779 = vmatpush3.bf16.msra.mxu1 %v2970_v3 }
 0xafd   : > { %2792 = vmatprep.subr.bf16.mxu1 %v3447_v0 }
 0xb01   : > { %v1570_v17 = vpop.xlane.xlu1 %1569 }
 0xb02   : > { %v1571_v18 = vsub.f32 %v1562_v57, %v1570_v17 }
 0xb04   : > { %v1572_v19 = vmul.f32 1.442695, %v1571_v18 }
 0xb06   : > { %2993 = vpow2.f32 %v1572_v19 }
 0xb10   : > { %v2994_v20 = vpop.eup %2993 }
 0xb11   : > { %v1574_v22 = vsel %vm841_vm2, %v2994_v20, 0.0 }
 0xb12   : > { %1575 = vadd.xlane.f32.xlu0 %v1574_v22 }
 0xb74   : > { %v1685_v21 = vpop.xlane.xlu0 %1684 }
 0xb75   : > { %v1686_v23 = vsub.f32 %v1677_v2, %v1685_v21 }
 0xb77   : > { %v1687_v24 = vmul.f32 1.442695, %v1686_v23 }
 0xb79   : > { %2995 = vpow2.f32 %v1687_v24 }
 0xb7c   : > { %v1805_v27 = vpop.xlane.xlu0 %1804 }
 0xb7d   : > { %v1806_v28 = vsub.f32 %v1797_v8, %v1805_v27 }
 0xb7f   : > { %v1807_v29 = vmul.f32 1.442695, %v1806_v28 }
 0xb81   : > { %2997 = vpow2.f32 %v1807_v29 }
 0xb83   : > { %v2996_v30 = vpop.eup %2995 }
 0xb84   : > { %v1689_v31 = vsel %vm841_vm2, %v2996_v30, 0.0  ;;  %v1925_v36 = vpop.xlane.xlu1 %1924 }
 0xb85   : > { %1690 = vadd.xlane.f32.xlu1 %v1689_v31  ;;  %v1926_v37 = vsub.f32 %v1917_v13, %v1925_v36 }
 0xb87   : > { %v1927_v38 = vmul.f32 1.442695, %v1926_v37 }
 0xb8b   : > { %v2998_v33 = vpop.eup %2997 }
 0xb8c   : > { %v1809_v34 = vsel %vm841_vm2, %v2998_v33, 0.0 }
 0xb8d   : > { %1810 = vadd.xlane.f32.xlu0 %v1809_v34 }
 0xb96   : > { %1697 = vrot.lane.b32.xlu1 %v4085_v39, %s3453_s13 }
 0xb9f   : > { %v1576_v35 = vpop.xlane.xlu0 %1575 }
 0xba0   : > { %2999 = vrcp.f32 %v1576_v35 }
 0xba1   : > { %3001 = vpow2.f32 %v1927_v38 }
 0xba3   : > { %1582 = vrot.lane.b32.xlu0 %v4085_v39, %s3449_s17  ;;  %s3459_s17 = smov [#allocation21]  }
 0xba4   : > { %s3303_s24 = sshll.u32 %s3459_s17, 4  ;;  %s3304_s24 = int_to_ptr.vmem [resolvable:$false] %s3303_s24 }
 0xba5   : > { %p3306_p0 = scmp.lt.s32.totalorder %s4209_s12, %s3304_s24 }
 0xba7   : > { %1937 = vrot.lane.b32.xlu0 %v4085_v39, %s3454_s6 }
 0xbaa   : > { %v3000_v40 = vpop.eup %2999 }
 0xbab   : > { %v1578_v41 = vmul.f32 %v3000_v40, %v2994_v20  ;;  %v3002_v42 = vpop.eup %3001 }
 0xbac   : > { %v1929_v43 = vsel %vm841_vm2, %v3002_v42, 0.0 }
 0xbad   : > { %1579 = vst.msk [vmem:[%s4131_s28] sm:$0xff] %vm841_vm2, %v1578_v41  ;;  %v1580_v51 = vpack.c.bf16 %v1578_v41, %v1578_v41 }
 0xbba   : > { %1930 = vadd.xlane.f32.xlu1 %v1929_v43 }
 0xbcb   : > { %1817 = vrot.lane.b32.xlu1 %v4085_v39, %s3455_s18  ;;  %s4397_s18 = sld [smem:[#allocation32_spill]] }
 0xc12   : > { %v1691_v44 = vpop.xlane.xlu1 %1690 }
 0xc13   : > { %3003 = vrcp.f32 %v1691_v44 }
 0xc16   : > { %v1698_v50 = vpop.permute.xlu1 %1697 }
 0xc17   : > { %v1703_v52 = vsel %vm906_vm3, %v1698_v50, 0 }
 0xc1a   : > { %v1811_v45 = vpop.xlane.xlu0 %1810 }
 0xc1b   : > { %3005 = vrcp.f32 %v1811_v45 }
 0xc1d   : > { %v3004_v46 = vpop.eup %3003 }
 0xc1e   : > { %v1693_v47 = vmul.f32 %v3004_v46, %v2996_v30  ;;  %v1583_v48 = vpop.permute.xlu0 %1582 }
 0xc1f   : > { %v1588_v49 = vsel %vm906_vm3, %v1583_v48, 0  ;;  %v2972_v48 = vld [vmem:[%s4396_s10 + $0x8] sm:$0xff]  }
 0xc20   : > { %2550 = vst.msk [vmem:[%s4131_s28 + $0x8] sm:$0xff] %vm841_vm2, %v1693_v47  ;;  %2735 = vmatpush3.bf16.msra.mxu0 %v1588_v49  ;;  %v1696_v54 = vpack.c.bf16 %v1693_v47, %v1693_v47 }
 0xc21   : > { %2746 = vmatprep.subr.bf16.mxu0 %v3447_v0 }
 0xc22   : > { %v1938_v58 = vpop.permute.xlu0 %1937 }
 0xc23   : > { %2737 = vmatmul.mubr.msk.bf16.vlgmr.msra.gmra.mrb[28].mxu0 %vm841_vm2, %v1580_v51  ;;  %v1943_v60 = vsel %vm906_vm3, %v1938_v58, 0  ;;  %v2974_v58 = vld [vmem:[%s4396_s10 + $0x18] sm:$0xff]  }
 0xc24   : > { %2747 = vmatpush3.bf16.msra.mxu0 %v1703_v52  ;;  %2748 = vmatprep.mubr.msk.bf16.mxu0 %vm3448_vm0, %v3447_v0 }
 0xc25   : > { %v3006_v39 = vpop.eup %3005  ;;  %2758 = vmatprep.subr.bf16.mxu0 %v3447_v0 }
 0xc26   : > { %v1813_v53 = vmul.f32 %v3006_v39, %v2998_v33  ;;  %v1996_v33 = vsub.s32 1, %v4040_v62 }
 0xc28   : > { %2554 = vst.msk [vmem:[%s4131_s28 + $0x10] sm:$0xff] %vm841_vm2, %v1813_v53  ;;  %v1816_v59 = vpack.c.bf16 %v1813_v53, %v1813_v53  ;;  %v1997_v34 = vrot.slane %v4045_v1, %v1996_v33  ;;  %v2971_v1 = vld [vmem:[%s4396_s10] sm:$0xff]   ;;  %v2070_v51 = vrot.slane %v4067_v25, %v1996_v33  ;;  %v2075_v53 = vrot.slane %v4072_v26, %v1996_v33 }
 0xc2b   : > { %2749 = vmatmul.mubr.msk.bf16.vlgmr.msra.gmra.mrb[32].mxu0 %vm841_vm2, %v1696_v54 }
 0xc2c   : > { %2760 = vmatprep.mubr.msk.bf16.mxu0 %vm3448_vm0, %v3447_v0 }
 0xc47   : > { %v1931_v55 = vpop.xlane.xlu1 %1930 }
 0xc48   : > { %3007 = vrcp.f32 %v1931_v55 }
 0xc4b   : > { %v1818_v56 = vpop.permute.xlu1 %1817 }
 0xc4c   : > { %v1823_v57 = vsel %vm906_vm3, %v1818_v56, 0 }
 0xc4d   : > { %2759 = vmatpush3.bf16.msra.mxu0 %v1823_v57  ;;  %v2973_v57 = vld [vmem:[%s4396_s10 + $0x10] sm:$0xff]  }
 0xc4e   : > { %2770 = vmatprep.subr.bf16.mxu0 %v3447_v0 }
 0xc50   : > { %2761 = vmatmul.mubr.msk.bf16.vlgmr.msra.gmra.mrb[36].mxu0 %vm841_vm2, %v1816_v59  ;;  %v2085_v59 = vld [vmem:[#allocation18] sm:$0x3] }
 0xc51   : > { %2771 = vmatpush3.bf16.msra.mxu0 %v1943_v60  ;;  %2772 = vmatprep.mubr.msk.bf16.mxu0 %vm3448_vm0, %v3447_v0  ;;  %v2090_v60 = vrot.slane %v2085_v59, %v4043_v63 }
 0xc52   : > { %v3008_v61 = vpop.eup %3007  ;;  %2784 = vmatprep.subr.bf16.mxu0 %v3447_v0 }
 0xc53   : > { %v1933_v2 = vmul.f32 %v3008_v61, %v3002_v42 }
 0xc55   : > { %2558 = vst.msk [vmem:[%s4131_s28 + $0x18] sm:$0xff] %vm841_vm2, %v1933_v2  ;;  %v1936_v4 = vpack.c.bf16 %v1933_v2, %v1933_v2  ;;  %s3305_s28 = scalar_lea.vmem %s3304_s24, 1024 }
 0xc56   : > { %p3307_p3 = scmp.lt.s32.totalorder %s3305_s28, %s3299_s21 }
 0xc58   : > { %2773 = vmatmul.mubr.msk.bf16.vlgmr.msra.gmra.mrb[40].mxu0 %vm841_vm2, %v1936_v4  ;;  %p3308_p12 = por %p3307_p3, %p3306_p0 }
 0xc59   : > { %2788 = vmatprep.mubr.msk.bf16.mxu0 %vm3448_vm0, %v3447_v0  ;;  %2785 = vmatpush3.bf16.msra.mxu0 %v2971_v1 }
 0xc5a   : > { %2786 = vmatprep.subr.bf16.mxu0 %v3447_v0 }
 0xc5d   : > { %2787 = vmatpush3.bf16.msra.mxu0 %v2972_v48 }
 0xcf6   : > { %v1624_v5 = vpop.f32.mrb[28].mxu0 }
 0xcf7   : > { %v1630_v6 = vpack.c.bf16 %v1624_v5, %v1624_v5  ;;  %v2738_v7 = vpop.f32.mrb[29].mxu0 }
 0xcf8   : > { %v1627_v8 = vpop.f32.mrb[30].mxu0 }
 0xcf9   : > { %1631 = vst.msk [vmem:[#allocation2] sm:$0xf] %vm951_vm4, %v1630_v6  ;;  %v2739_v9 = vpop.f32.mrb[31].mxu0 }
 0xcfa   : > { %v2151_v9 = vrot.slane %v2085_v59, %v1996_v33 }
 0xcfe   : > { %v1739_v10 = vpop.f32.mrb[32].mxu0 }
 0xcff   : > { %v2580_v11 = vpack.c.bf16 %v1739_v10, %v1739_v10  ;;  %v2750_v12 = vpop.f32.mrb[33].mxu0 }
 0xd00   : > { %v1742_v13 = vpop.f32.mrb[34].mxu0 }
 0xd01   : > { %1749 = vrot.lane.b32.xlu1 %v2580_v11, %s3456_s30  ;;  %v2751_v14 = vpop.f32.mrb[35].mxu0 }
 0xd23   : > { %v1859_v16 = vpop.f32.mrb[36].mxu0 }
 0xd24   : > { %v2581_v17 = vpack.c.bf16 %v1859_v16, %v1859_v16  ;;  %v2762_v18 = vpop.f32.mrb[37].mxu0 }
 0xd25   : > { %v1862_v19 = vpop.f32.mrb[38].mxu0 }
 0xd26   : > { %1869 = vrot.lane.b32.xlu0 %v2581_v17, %s3457_s2  ;;  %v2763_v20 = vpop.f32.mrb[39].mxu0  ;;  %s4398_s2 = sld [smem:[#allocation37_spill]] }
 0xd2b   : > { %v1979_v22 = vpop.f32.mrb[40].mxu0 }
 0xd2c   : > { %v2582_v21 = vpack.c.bf16 %v1979_v22, %v1979_v22  ;;  %v2774_v23 = vpop.f32.mrb[41].mxu0  ;;  %p4400_p1 = scmp.ne.s32.totalorder %s4398_s2, 0 }
 0xd2d   : > { %v1982_v24 = vpop.f32.mrb[42].mxu0 }
 0xd2e   : > { %1989 = vrot.lane.b32.xlu1 %v2582_v21, %s3458_s22  ;;  %v2775_v27 = vpop.f32.mrb[43].mxu0  ;;  %s2583_s22 = sshll.u32 %s4397_s18, 9  ;;  %p3301_p9 = pnand %p3300_p2, %p4400_p1 }
 0xd2f   : > { %s4207_s8 = scalar_lea.hbm %s4399_s16, %s2583_s22 }
 0xd30   : > { %p3302_p10 = pneg %p3301_p9 }
 0xd32   : > { %p3309_p11 = pnand %p3308_p12, %p3302_p10 }
 0xd73   : > { %v1750_v28 = vpop.permute.xlu1 %1749 }
 0xd74   : > { %1752 = vst.msk [vmem:[#allocation2] sm:$0xf] %vm1071_vm5, %v1750_v28 }
 0xd98   : > { %v1870_v29 = vpop.permute.xlu0 %1869 }
 0xd99   : > { %1872 = vst.msk [vmem:[#allocation2] sm:$0xf] %vm1190_vm6, %v1870_v29 }
 0xda0   : > { %v1990_v30 = vpop.permute.xlu1 %1989 }
 0xda1   : > { %1992 = vst.msk [vmem:[#allocation2] sm:$0xf] %vm1309_vm7, %v1990_v30 }
 0xda8   : > { %v1993_v31 = vld [vmem:[#allocation2] sm:$0xf] }
 0xda9   : > { %2781 = vmatmul.mubr.msk.bf16.vlgmr.msra.gmra.mrb[40].mxu1 %vm742_vm1, %v1993_v31 }
 0xdaa   : > { %2796 = vmatprep.mubr.msk.bf16.mxu1 %vm3448_vm0, %v3447_v0  ;;  %2793 = vmatpush3.bf16.msra.mxu1 %v2973_v57 }
 0xdab   : > { %2794 = vmatprep.subr.bf16.mxu1 %v3447_v0 }
 0xdae   : > { %2795 = vmatpush3.bf16.msra.mxu1 %v2974_v58 }
 0xe7c   : > { %v2047_v35 = vpop.f32.mrb[40].mxu1 }
 0xe7d   : > { %v2048_v36 = vadd.f32 %v2047_v35, %v1997_v34  ;;  %v2782_v37 = vpop.f32.mrb[41].mxu1 }
 0xe7e   : > { %v2050_v38 = vpop.f32.mrb[42].mxu1 }
 0xe7f   : > { %v2783_v40 = vpop.f32.mrb[43].mxu1  ;;  %v2053_v41 = vadd.f32 %v2048_v36, %v4078_v32 }
 0xe81   : > { %v2054_v42 = vsel %vm742_vm1, %v2053_v41, 0.0 }
 0xe82   : > { %2055 = vadd.xlane.f32.xlu0 %v2054_v42 }
 0xf0f   : > { %v2056_v43 = vpop.xlane.xlu0 %2055 }
 0xf10   : > { %v2057_v44 = vmul.f32 0.03125, %v2056_v43 }
 0xf12   : > { %v2058_v45 = vsub.f32 %v2053_v41, %v2057_v44 }
 0xf14   : > { %v2059_v46 = vmul.f32 %v2058_v45, %v2058_v45 }
 0xf16   : > { %v2060_v47 = vsel %vm742_vm1, %v2059_v46, 0.0 }
 0xf17   : > { %2061 = vadd.xlane.f32.xlu1 %v2060_v47 }
 0xfa4   : > { %v2062_v32 = vpop.xlane.xlu1 %2061 }
 0xfa5   : > { %v2063_v49 = vmul.f32 0.03125, %v2062_v32 }
 0xfa7   : > { %v2064_v50 = vadd.f32 1e-05, %v2063_v49 }
 0xfa9   : > { %3009 = vrsqrt.f32 %v2064_v50 }
 0xfb3   : > { %v3010_v52 = vpop.eup %3009 }
 0xfb4   : > { %v2066_v39 = vmul.f32 %v3010_v52, %v2058_v45 }
 0xfb6   : > { %v2071_v54 = vmul.f32 %v2070_v51, %v2066_v39 }
 0xfb8   : > { %v2076_v55 = vadd.f32 %v2075_v53, %v2071_v54 }
 0xfba   : > { %v2086_v56 = vpack.c.bf16 %v2076_v55, %v2076_v55 }
 0xfbc   : > { %2789 = vmatmul.mubr.msk.bf16.vlgmr.msra.gmra.mrb[44].mxu0 %vm742_vm1, %v2086_v56 }
0x108f   : > { %v2140_v61 = vpop.f32.mrb[44].mxu0 }
0x1090   : > { %v2141_v2 = vadd.f32 %v2140_v61, %v2090_v60  ;;  %v2790_v4 = vpop.f32.mrb[45].mxu0 }
0x1091   : > { %v2143_v5 = vpop.f32.mrb[46].mxu0 }
0x1092   : > { %v2146_v6 = vmax.f32 %v2141_v2, 0.0  ;;  %v2791_v7 = vpop.f32.mrb[47].mxu0 }
0x1094   : > { %v2147_v8 = vpack.c.bf16 %v2146_v6, %v2146_v6 }
0x1096   : > { %2797 = vmatmul.mubr.msk.bf16.vlgmr.msra.gmra.mrb[44].mxu1 %vm742_vm1, %v2147_v8 }
0x1169   : > { %v2201_v0 = vpop.f32.mrb[44].mxu1 }
0x116a   : > { %v2202_v10 = vadd.f32 %v2201_v0, %v2151_v9  ;;  %v2798_v11 = vpop.f32.mrb[45].mxu1 }
0x116b   : > { %v2204_v12 = vpop.f32.mrb[46].mxu1 }
0x116c   : > { %v2799_v13 = vpop.f32.mrb[47].mxu1  ;;  %v2207_v14 = vadd.f32 %v2202_v10, %v2076_v55 }
0x116e   : > { %v2208_v63 = vsel %vm742_vm1, %v2207_v14, 0.0 }
0x116f   : > { %2209 = vadd.xlane.f32.xlu0 %v2208_v63 }
0x11fc   : > { %v2210_v15 = vpop.xlane.xlu0 %2209 }
0x11fd   : > { %v2211_v16 = vmul.f32 0.03125, %v2210_v15 }
0x11ff   : > { %v2212_v3 = vsub.f32 %v2207_v14, %v2211_v16 }
0x1201   : > { %v2213_v17 = vmul.f32 %v2212_v3, %v2212_v3 }
0x1203   : > { %v2214_v18 = vsel %vm742_vm1, %v2213_v17, 0.0 }
0x1204   : > { %2215 = vadd.xlane.f32.xlu0 %v2214_v18 }
0x1205   : > { %3312 = shalt.err (!%p3309_p11)
}
0x1206   : > { %s3313_s1 = scalar_lea.hbm %s4207_s8, 512  ;;  %s3317_s3 = scalar_lea.hbm %s4399_s16, 1024 }
0x1207   : > { %p3314_p13 = scmp.ne.s32.totalorder %s4207_s8, %s3313_s1  ;;  %p3318_p6 = scmp.lt.u32.totalorder %s4207_s8, %s4399_s16 }
0x1208   : > { %p3319_p8 = scmp.lt.u32.totalorder %s3317_s3, %s3313_s1  ;;  %p3321_p2 = scmp.lt.u32.totalorder %s3313_s1, %s4207_s8 }
0x1209   : > { %p3315_p4 = pnand %p3314_p13, %p4400_p1 }
0x120a   : > { %p3320_p5 = por %p3319_p8, %p3318_p6 }
0x120b   : > { %p3316_p7 = pneg %p3315_p4 }
0x120c   : > { %p3322_p9 = por %p3321_p2, %p3320_p5 }
0x120e   : > { %p3323_p10 = pnand %p3322_p9, %p3316_p7 }
0x1210   : > { %3326 = shalt.err (!%p3323_p10)
}
0x1211   : > { %s3460_s22 = smov 128   ;;  %v2223_v21 = vsub.s32 2, %v4040_v62  ;;  %s2572_s25 = sshll.u32 %s4397_s18, 7 }
0x1212   : > { %2835 = dma.vmem_to_hbm [thread:$0]  (%p4400_p1), %s4209_s12, 512, %s4207_s8, %s2238_s4, %s3460_s22, %s3460_s22, %s3456_s30  }
0x1213   : > { %v2224_v23 = vrot.slane %v4067_v25, %v2223_v21  ;;  %v2229_v28 = vrot.slane %v4072_v26, %v2223_v21  ;;  %s699_s27 = scalar_lea.vmem [#allocation20], %s3901_s26  ;;  %s4401_s8 = sld [smem:[#allocation49_spill]] }
0x1214   : > { %s2252_s21 = sshll.u32 %s699_s27, 4  ;;  %s2233_s17 = scalar_lea.sflag [#allocation5], %s3898_s14  ;;  %s4246_s21 = int_to_ptr.vmem [resolvable:$true] %s2252_s21 }
0x1215   : > { %s3327_s24 = scalar_lea.vmem %s4246_s21, 128  ;;  %s3461_s26 = smov [#allocation20]  }
0x1216   : > { %p3328_p0 = scmp.ne.s32.totalorder %s4246_s21, %s3327_s24  ;;  %s3331_s18 = sshll.u32 %s3461_s26, 4  ;;  %s3332_s18 = int_to_ptr.vmem [resolvable:$false] %s3331_s18 }
0x1217   : > { %s3333_s28 = scalar_lea.vmem %s3332_s18, 256  ;;  %p3334_p11 = scmp.lt.s32.totalorder %s4246_s21, %s3332_s18 }
0x1218   : > { %p3329_p3 = pnand %p3328_p0, %p4400_p1  ;;  %p3335_p13 = scmp.lt.s32.totalorder %s3333_s28, %s3327_s24 }
0x1219   : > { %s4244_s4 = scalar_lea.hbm %s4401_s8, %s2572_s25 }
0x121a   : > { %p3330_p12 = pneg %p3329_p3  ;;  %p3336_p4 = por %p3335_p13, %p3334_p11 }
0x121c   : > { %p3337_p7 = pnand %p3336_p4, %p3330_p12 }
0x1291   : > { %v2216_v19 = vpop.xlane.xlu0 %2215 }
0x1292   : > { %v2217_v20 = vmul.f32 0.03125, %v2216_v19 }
0x1294   : > { %v2218_v22 = vadd.f32 1e-05, %v2217_v20 }
0x1296   : > { %3011 = vrsqrt.f32 %v2218_v22 }
0x12a0   : > { %v3012_v24 = vpop.eup %3011 }
0x12a1   : > { %v2220_v27 = vmul.f32 %v3012_v24, %v2212_v3 }
0x12a3   : > { %v2225_v29 = vmul.f32 %v2224_v23, %v2220_v27 }
0x12a5   : > { %v2230_v30 = vadd.f32 %v2229_v28, %v2225_v29 }
0x12a7   : > { %2231 = vst.msk [vmem:[%s699_s27] sm:$0xff] %vm742_vm1, %v2230_v30 }
0x12a8   : > { %3340 = shalt.err (!%p3337_p7)
}
0x12a9   : > { %s3341_s14 = scalar_lea.hbm %s4244_s4, 128  ;;  %s3345_s29 = scalar_lea.hbm %s4401_s8, 256 }
0x12aa   : > { %p3342_p6 = scmp.ne.s32.totalorder %s4244_s4, %s3341_s14  ;;  %p3346_p2 = scmp.lt.u32.totalorder %s4244_s4, %s4401_s8 }
0x12ab   : > { %p3347_p9 = scmp.lt.u32.totalorder %s3345_s29, %s3341_s14  ;;  %p3349_p0 = scmp.lt.u32.totalorder %s3341_s14, %s4244_s4 }
0x12ac   : > { %p3343_p8 = pnand %p3342_p6, %p4400_p1 }
0x12ad   : > { %p3348_p10 = por %p3347_p9, %p3346_p2 }
0x12ae   : > { %p3344_p5 = pneg %p3343_p8 }
0x12af   : > { %p3350_p3 = por %p3349_p0, %p3348_p10 }
0x12b1   : > { %p3351_p12 = pnand %p3350_p3, %p3344_p5 }
0x12b3   : > { %3354 = shalt.err (!%p3351_p12)
}
0x12b4   : > { %2834 = dma.vmem_to_hbm [thread:$0]  (%p4400_p1), %s4246_s21, 128, %s4244_s4, %s2233_s17  }
0x12b5 PF: > { %s4402_s6 = sld [smem:[#allocation31_spill]]  ;;  %s4403_s22 = sld [smem:[#allocation39_spill]] }
0x12b6   : > { %s4404_s25 = sld [smem:[#allocation34_spill]] }
0x12bb   : > { %s2281_s27 = sand.u32 1, %s4402_s6   ;;  %p4405_p11 = scmp.ne.s32.totalorder %s4403_s22, 0 }
0x12bc   : > { %p4406_p13 = scmp.ge.s32.totalorder %s4404_s25, 2  ;;  %s2282_s30 = scalar_lea.sflag [#allocation5], %s2281_s27 }
0x12be   : > { %p2871_p4 = pnand %p4406_p13, %p4405_p11 }
0x12c0   : > { %3404 = dma.done.wait (!%p2871_p4), %s2282_s30, 128  }
0x12c1   : > { %3406 = vsyncadd (!%p2871_p4), %s2282_s30, 4294967168  ;;  %s2291_s12 = scalar_lea.sflag [#allocation22], %s2281_s27 }
0x12c2   : > { %3408 = dma.done.wait (!%p2871_p4), %s2291_s12, 512  }
0x12c3   : > { %3410 = vsyncadd (!%p2871_p4), %s2291_s12, 4294966784  ;;  %s42_s23 = sadd.s32 1, %s4404_s25   ;;  %s4407_s2 = sld [smem:[#allocation38_spill]] }
0x12c4   : > { %p39_p7 = scmp.ge.s32.totalorder %s42_s23, 4   ;;  %s4408_s21 = sld [smem:[#allocation33_spill]] }
0x12c5   : > { %s4409_s22 = sld [smem:[#allocation36_spill]]  ;;  %s4410_s18 = smov %s3417_s19 }
0x12c6   : > { %s4411_s19 = smov %s3421_s20  ;;  %41 = sbr.rel (!%p39_p7) target bundleno = 26 (0x1a), region = 193 }
0x12c9   : > { %s4412_s20 = smov %s4407_s2 }
0x12cd   :  { %2296 = vsyncpa [#allocation4], 1 }
0x12ce   :  { %2298 = vsyncpa [#allocation4 + $0x1], 1 }
0x12cf   :  { %2299 = vsyncpa [#allocation7], 1 }
0x12d0   :  { %2301 = vsyncpa [#allocation7 + $0x1], 1 }
0x12d1   :  { %2302 = vsyncpa [#allocation10], 1 }
0x12d2   :  { %2303 = vsyncpa [#allocation13], 1 }
0x12d3   :  { %2304 = vsyncpa [#allocation16], 1 }
0x12d4   :  { %2305 = vsyncpa [#allocation19], 1 }
0x12d5   :  { %2306 = vsyncpa [#allocation5], 1 }
0x12d6   :  { %2308 = vsyncpa [#allocation5 + $0x1], 1 }
0x12d7   :  { %2309 = vsyncpa [#allocation22], 1 }
0x12d8   :  { %2311 = vsyncpa [#allocation22 + $0x1], 1 }

// kernel: tpu_custom_call.1
= control target key start
LH: loop header
LB: loop body
LE: loop exit
PB: predicated region body
PF: predicated region fallthrough
CT: control target
= control target key end

     0   :  { %s4294_s0 = inlined_call_operand.hbm [shape: f32[2,8,32], index: 0, kind: input, shape index: {}]   ;;  %s4295_s1 = inlined_call_operand.hbm [shape: f32[2,8,32], index: 1, kind: input, shape index: {}]   ;;  %s4296_s2 = inlined_call_operand.hbm [shape: f32[2,8,32], index: 2, kind: input, shape index: {}]   ;;  %s4297_s3 = inlined_call_operand.hbm [shape: bf16[32,96], index: 3, kind: input, shape index: {}]   ;;  %s4298_s4 = inlined_call_operand.vmem [shape: f32[1,96], index: 4, kind: input, shape index: {}]   ;;  %s4299_s5 = inlined_call_operand.hbm [shape: bf16[32,32], index: 5, kind: input, shape index: {}]   ;;  %s4300_s6 = inlined_call_operand.hbm [shape: bf16[32,96], index: 6, kind: input, shape index: {}]   ;;  %s4301_s7 = inlined_call_operand.hbm [shape: f32[1,96], index: 7, kind: input, shape index: {}]   ;;  %s4302_s8 = inlined_call_operand.hbm [shape: bf16[32,32], index: 8, kind: input, shape index: {}]   ;;  %s4303_s9 = inlined_call_operand.hbm [shape: f32[2,32], index: 9, kind: input, shape index: {}]   ;;  %s4304_s10 = inlined_call_operand.vmem [shape: bf16[2,32,32], index: 10, kind: input, shape index: {}]   ;;  %s4305_s11 = inlined_call_operand.hbm [shape: f32[2,32], index: 11, kind: input, shape index: {}]   ;;  %s4306_s12 = inlined_call_operand.vmem [shape: f32[3,32], index: 12, kind: input, shape index: {}]   ;;  %s4307_s13 = inlined_call_operand.vmem [shape: f32[3,32], index: 13, kind: input, shape index: {}]   ;;  %s4308_s14 = inlined_call_operand.hbm [shape: f32[2,8,32], index: 14, kind: output, shape index: {0}]   ;;  %s4309_s15 = inlined_call_operand.hbm [shape: f32[2,4,8,8], index: 15, kind: output, shape index: {1}]  }
   0x1   :  { %4339 = sst [smem:[#allocation40_spill]] %s4295_s1 }
   0x2   :  { %4340 = sst [smem:[#allocation41_spill]] %s4296_s2 }
   0x3   :  { %4341 = sst [smem:[#allocation42_spill]] %s4297_s3 }
   0x4   :  { %4342 = sst [smem:[#allocation43_spill]] %s4298_s4 }
   0x5   :  { %4343 = sst [smem:[#allocation44_spill]] %s4300_s6 }
   0x6   :  { %4344 = sst [smem:[#allocation45_spill]] %s4302_s8 }
   0x7   :  { %4345 = sst [smem:[#allocation46_spill]] %s4304_s10 }
   0x8   :  { %4346 = sst [smem:[#allocation47_spill]] %s4306_s12 }
   0x9   :  { %4347 = sst [smem:[#allocation48_spill]] %s4307_s13 }
   0xa   :  { %4348 = sst [smem:[#allocation49_spill]] %s4308_s14 }
   0xb   :  { %4349 = sst [smem:[#allocation50_spill]] %s4309_s15 }
   0xc   :  { %21 = vsyncpa [#allocation4], 0 }
   0xd   :  { %23 = vsyncpa [#allocation4 + $0x1], 0 }
   0xe   :  { %24 = vsyncpa [#allocation7], 0 }
   0xf   :  { %26 = vsyncpa [#allocation7 + $0x1], 0 }
  0x10   :  { %27 = vsyncpa [#allocation10], 0 }
  0x11   :  { %28 = vsyncpa [#allocation13], 0 }
  0x12   :  { %29 = vsyncpa [#allocation16], 0 }
  0x13   :  { %30 = vsyncpa [#allocation19], 0 }
  0x14   :  { %31 = vsyncpa [#allocation5], 0 }
  0x15   :  { %33 = vsyncpa [#allocation5 + $0x1], 0 }
  0x16   :  { %34 = vsyncpa [#allocation22], 0 }
  0x17   :  { %36 = vsyncpa [#allocation22 + $0x1], 0  ;;  %s3542_s18 = smov 0   ;;  %s3544_s19 = smov 0  }
  0x18   :  { %s3546_s20 = smov 0   ;;  %s3548_s21 = smov 0  }
  0x19   :  { %s3550_s22 = smov 0   ;;  %s3552_s23 = smov 0  }
  0x1a LB: > { %4350 = sst [smem:[#allocation31_spill]] %s3413_s18  ;;  %s3573_s24 = sadd.s32 4294967295, %s3433_s23   ;;  %s3433_s23 = sphi %s3552_s23, %s42_s23   ;;  %s3429_s22 = sphi %s3550_s22, %s4409_s22   ;;  %s3425_s21 = sphi %s3548_s21, %s4408_s21   ;;  %s3421_s20 = sphi %s3546_s20, %s4412_s20   ;;  %s3417_s19 = sphi %s3544_s19, %s4411_s19   ;;  %s3413_s18 = sphi %s3542_s18, %s4410_s18  }
  0x1b   : > { %4351 = sst [smem:[#allocation32_spill]] %s3425_s21  ;;  %p2495_p0 = scmp.ge.s32.totalorder %s3433_s23, 1 }
  0x1c   : > { %4352 = sst [smem:[#allocation33_spill]] %s3429_s22  ;;  %p4316_p1 = scmp.eq.s32.totalorder %s3573_s24, 0 }
  0x1d   : > { %4353 = sst [smem:[#allocation34_spill]] %s3433_s23  ;;  %p426_p2 = scmp.lt.s32.totalorder %s3433_s23, 3 }
  0x1e   : > { %s3435_s26 = smov [#allocation9]   ;;  %s3436_s29 = smov [#allocation12]  }
  0x1f   : > { %p3578_p3 = pnand %p2495_p0, %p426_p2  ;;  %s438_s27 = sshll.u32 %s3435_s26, 4  ;;  %s3582_s27 = int_to_ptr.vmem [resolvable:$true] %s438_s27 }
  0x20   : > { %s467_s30 = sshll.u32 %s3436_s29, 4  ;;  %s3437_s16 = smov [#allocation15]   ;;  %s3593_s30 = int_to_ptr.vmem [resolvable:$true] %s467_s30 }
  0x21   : > { %s4354_s25 = scalar_select %p3578_p3, 1, 0 }
  0x22   : > { %p2838_p4 = pneg %p3578_p3  ;;  %s3595_s17 = sshll.u32 %s3437_s16, 4  ;;  %s492_s17 = int_to_ptr.vmem [resolvable:$true] %s3595_s17 }
  0x23   : > { %4355 = sst [smem:[#allocation35_spill]] %s4354_s25  ;;  %s4357_s3 = sld [smem:[#allocation42_spill]] }
  0x24   : > { %p3589_p6 = pnand %p2838_p4, %p4316_p1 }
  0x26   : > { %s4356_s28 = scalar_select %p3589_p6, 1, 0 }
  0x27   : > { %p3605_p8 = pneg %p3589_p6 }
  0x29   : > { %s3013_s15 = scalar_lea.hbm %s4357_s3, 256 }
  0x2a   : > { %p3014_p7 = scmp.ne.s32.totalorder %s4357_s3, %s3013_s15  ;;  %p3020_p11 = scmp.lt.u32.totalorder %s3013_s15, %s4357_s3 }
  0x2b   : > { %s4358_s13 = scalar_select %p3605_p8, 1, 0 }
  0x2c   : > { %p3016_p9 = pnand %p3605_p8, %p3014_p7 }
  0x2e   : > { %p3017_p10 = pneg %p3016_p9 }
  0x30   : > { %p3022_p12 = pnand %p3020_p11, %p3017_p10 }
  0x32   : > { %3025 = shalt.err (!%p3022_p12)
}
  0x33   : > { %s3026_s10 = scalar_lea.vmem %s3582_s27, 256  ;;  %p3034_p4 = scmp.lt.s32.totalorder %s3582_s27, %s3582_s27 }
  0x34   : > { %p3027_p13 = scmp.ne.s32.totalorder %s3582_s27, %s3026_s10  ;;  %p3035_p5 = scmp.lt.s32.totalorder %s3026_s10, %s3026_s10 }
  0x36   : > { %p3029_p0 = pnand %p3027_p13, %p3605_p8  ;;  %p3036_p7 = por %p3035_p5, %p3034_p4 }
  0x38   : > { %p3030_p2 = pneg %p3029_p0 }
  0x3a   : > { %p3037_p9 = pnand %p3036_p7, %p3030_p2 }
  0x3c   : > { %3040 = shalt.err (!%p3037_p9)
}
  0x3d   : > { %s4318_s14 = smov 64   ;;  %s4319_s15 = smov 4  }
  0x3e   : > { %2841 = dma.hbm_to_vmem [thread:$0]  (!%p3589_p6), %s4357_s3, 256, %s3582_s27, [#allocation10], %s4318_s14, %s4318_s14, %s4319_s15  }
  0x3f   : > { %s4359_s6 = sld [smem:[#allocation44_spill]] }
  0x45   : > { %s3041_s10 = scalar_lea.hbm %s4359_s6, 256 }
  0x46   : > { %p3042_p5 = scmp.ne.s32.totalorder %s4359_s6, %s3041_s10  ;;  %p3048_p12 = scmp.lt.u32.totalorder %s3041_s10, %s4359_s6 }
  0x48   : > { %p3044_p10 = pnand %p3042_p5, %p3605_p8 }
  0x4a   : > { %p3045_p11 = pneg %p3044_p10 }
  0x4c   : > { %p3050_p13 = pnand %p3048_p12, %p3045_p11 }
  0x4e   : > { %3053 = shalt.err (!%p3050_p13)
}
  0x4f   : > { %s3054_s27 = scalar_lea.vmem %s3593_s30, 256  ;;  %p3062_p7 = scmp.lt.s32.totalorder %s3593_s30, %s3593_s30 }
  0x50   : > { %p3055_p0 = scmp.ne.s32.totalorder %s3593_s30, %s3054_s27  ;;  %p3063_p9 = scmp.lt.s32.totalorder %s3054_s27, %s3054_s27 }
  0x52   : > { %p3057_p2 = pnand %p3055_p0, %p3605_p8  ;;  %p3064_p5 = por %p3063_p9, %p3062_p7 }
  0x54   : > { %p3058_p4 = pneg %p3057_p2 }
  0x56   : > { %p3065_p10 = pnand %p3064_p5, %p3058_p4 }
  0x58   : > { %3068 = shalt.err (!%p3065_p10)
}
  0x59   : > { %2847 = dma.hbm_to_vmem [thread:$0]  (!%p3589_p6), %s4359_s6, 256, %s3593_s30, [#allocation13], %s4318_s14, %s4318_s14, %s4319_s15  }
  0x5a   : > { %s4360_s8 = sld [smem:[#allocation45_spill]] }
  0x60   : > { %s3069_s21 = scalar_lea.hbm %s4360_s8, 256 }
  0x61   : > { %p3070_p11 = scmp.ne.s32.totalorder %s4360_s8, %s3069_s21  ;;  %p3076_p0 = scmp.lt.u32.totalorder %s3069_s21, %s4360_s8 }
  0x63   : > { %p3072_p12 = pnand %p3070_p11, %p3605_p8 }
  0x65   : > { %p3073_p13 = pneg %p3072_p12 }
  0x67   : > { %p3078_p2 = pnand %p3076_p0, %p3073_p13 }
  0x69   : > { %3081 = shalt.err (!%p3078_p2)
}
  0x6a   : > { %s3082_s27 = scalar_lea.vmem %s492_s17, 256  ;;  %p3090_p5 = scmp.lt.s32.totalorder %s492_s17, %s492_s17 }
  0x6b   : > { %p3083_p4 = scmp.ne.s32.totalorder %s492_s17, %s3082_s27  ;;  %p3091_p10 = scmp.lt.s32.totalorder %s3082_s27, %s3082_s27 }
  0x6d   : > { %p3085_p7 = pnand %p3083_p4, %p3605_p8  ;;  %p3092_p1 = por %p3091_p10, %p3090_p5 }
  0x6f   : > { %p3086_p9 = pneg %p3085_p7 }
  0x71   : > { %p3093_p3 = pnand %p3092_p1, %p3086_p9 }
  0x73   : > { %3096 = shalt.err (!%p3093_p3)
}
  0x74   : > { %2853 = dma.hbm_to_vmem [thread:$0]  (!%p3589_p6), %s4360_s8, 256, %s492_s17, [#allocation16], %s4318_s14, %s4318_s14, %s4319_s15  }
  0x75   : > { %s2494_s4 = sadd.s32 4294967294, %s3433_s23   ;;  %s54_s12 = sadd.s32 1, %s3429_s22 }
  0x76   : > { %s63_s25 = sadd.s32 1, %s3421_s20  ;;  %p56_p1 = scmp.ge.s32.totalorder %s54_s12, 2 }
  0x77   : > { %p70_p3 = scmp.ne.s32.totalorder %s3421_s20, %s3417_s19  ;;  %p71_p11 = scmp.eq.s32.totalorder %s3433_s23, 0 }
  0x78   : > { %p76_p12 = scmp.ne.s32.totalorder %s3417_s19, %s3413_s18  ;;  %s4414_s12 = smov (%p56_p1, %s54_s12), 0 }
  0x79   : > { %4361 = sst [smem:[#allocation36_spill]] %s4414_s12  ;;  %p3687_p13 = por %p71_p11, %p70_p3 }
  0x7a   : > { %p4363_p0 = scmp.eq.s32.totalorder %s3573_s24, 0  ;;  %s58_s26 = ssub.s32 %s3429_s22, %s4414_s12 }
  0x7b   : > { %p385_p4 = scmp.eq.s32.totalorder %s3573_s24, 1  ;;  %p61_p7 = scmp.eq.s32.totalorder %s58_s26, 0 }
  0x7c   : > { %p3693_p2 = por %p4363_p0, %p76_p12  ;;  %p391_p9 = scmp.eq.s32.totalorder %s2494_s4, 1 }
  0x7d   : > { %p3700_p5 = por %p385_p4, %p70_p3  ;;  %p2884_p10 = scmp.lt.s32.totalorder %s3433_s23, 2 }
  0x7e   : > { %s4364_s17 = scalar_select %p3693_p2, 1, 0 }
  0x7f   : > { %s4365_s29 = scalar_select %p3700_p5, 1, 0 }
  0x80   : > { %s3706_s16 = scalar_select %p61_p7, %s3421_s20, %s63_s25  }
  0x81   : > { %4366 = sst [smem:[#allocation37_spill]] %s4365_s29  ;;  %p3708_p1 = por %p391_p9, %p76_p12 }
  0x82   : > { %4367 = sst [smem:[#allocation38_spill]] %s3706_s16  ;;  %s4320_s27 = sand.u32 1, %s3421_s20  }
  0x83   : > { %s4368_s10 = scalar_select %p3708_p1, 1, 0 }
  0x84   : > { %s3715_s30 = sshll.u32 %s4320_s27, 3  ;;  %s3718_s2 = sshll.u32 %s3429_s22, 7 }
  0x85   : > { %4369 = sst [smem:[#allocation39_spill]] %s4368_s10  ;;  %p3722_p3 = pnand %p2884_p10, %p3687_p13 }
  0x86   : > { %s555_s25 = sand.u32 1, %s3433_s23   ;;  %s4371_s1 = sld [smem:[#allocation40_spill]] }
  0x87   : > { %s4370_s4 = scalar_select %p3722_p3, 1, 0 }
  0x88   : > { %s559_s27 = scalar_lea.vmem [#allocation6], %s3715_s30  ;;  %s3440_s21 = smov [#allocation11]  }
  0x89   : > { %s566_s3 = sshll.u32 %s559_s27, 4  ;;  %s3736_s6 = sshll.u32 %s3440_s21, 4  ;;  %s3734_s3 = int_to_ptr.vmem [resolvable:$true] %s566_s3  ;;  %s455_s6 = int_to_ptr.vmem [resolvable:$true] %s3736_s6 }
  0x8a   : > { %s3738_s8 = scalar_lea.sflag [#allocation7], %s555_s25  ;;  %p3744_p12 = pneg %p3722_p3 }
  0x8c   : > { %s3731_s15 = scalar_lea.hbm %s4371_s1, %s3718_s2  ;;  %s3102_s22 = scalar_lea.hbm %s4371_s1, 256 }
  0x8d   : > { %s3097_s12 = scalar_lea.hbm %s3731_s15, 128  ;;  %p3103_p4 = scmp.lt.u32.totalorder %s3731_s15, %s4371_s1 }
  0x8e   : > { %p3098_p11 = scmp.ne.s32.totalorder %s3731_s15, %s3097_s12  ;;  %p3104_p7 = scmp.lt.u32.totalorder %s3102_s22, %s3097_s12 }
  0x8f   : > { %s4372_s14 = scalar_select %p3744_p12, 1, 0 }
  0x90   : > { %p3100_p13 = pnand %p3744_p12, %p3098_p11  ;;  %p3105_p9 = por %p3104_p7, %p3103_p4 }
  0x91   : > { %p3106_p10 = scmp.lt.u32.totalorder %s3097_s12, %s3731_s15 }
  0x92   : > { %p3101_p0 = pneg %p3100_p13 }
  0x93   : > { %p3107_p1 = por %p3106_p10, %p3105_p9 }
  0x95   : > { %p3108_p5 = pnand %p3107_p1, %p3101_p0 }
  0x97   : > { %3111 = shalt.err (!%p3108_p5)
}
  0x98   : > { %s3112_s25 = scalar_lea.vmem %s3734_s3, 128  ;;  %s3441_s26 = smov [#allocation6]  }
  0x99   : > { %p3113_p11 = scmp.ne.s32.totalorder %s3734_s3, %s3112_s25  ;;  %s3117_s27 = sshll.u32 %s3441_s26, 4  ;;  %s3118_s27 = int_to_ptr.vmem [resolvable:$false] %s3117_s27 }
  0x9a   : > { %s3119_s16 = scalar_lea.vmem %s3118_s27, 256  ;;  %p3120_p6 = scmp.lt.s32.totalorder %s3734_s3, %s3118_s27 }
  0x9b   : > { %p3115_p13 = pnand %p3113_p11, %p3744_p12  ;;  %p3121_p8 = scmp.lt.s32.totalorder %s3119_s16, %s3112_s25 }
  0x9d   : > { %p3116_p2 = pneg %p3115_p13  ;;  %p3122_p4 = por %p3121_p8, %p3120_p6 }
  0x9f   : > { %p3123_p7 = pnand %p3122_p4, %p3116_p2 }
  0xa1   : > { %3126 = shalt.err (!%p3123_p7)
}
  0xa2   : > { %2866 = dma.hbm_to_vmem [thread:$0]  (!%p3722_p3), %s3731_s15, 128, %s3734_s3, %s3738_s8  }
  0xa3   : > { %s3127_s21 = scalar_lea.hbm %s4299_s5, 256  ;;  %p4373_p6 = scmp.ne.s32.totalorder %s4358_s13, 0 }
  0xa4   : > { %p3128_p5 = scmp.ne.s32.totalorder %s4299_s5, %s3127_s21  ;;  %p3134_p1 = scmp.lt.u32.totalorder %s3127_s21, %s4299_s5 }
  0xa6   : > { %p3130_p8 = pnand %p3128_p5, %p4373_p6 }
  0xa8   : > { %p3131_p2 = pneg %p3130_p8 }
  0xaa   : > { %p3136_p0 = pnand %p3134_p1, %p3131_p2 }
  0xac   : > { %3139 = shalt.err (!%p3136_p0)
}
  0xad   : > { %s3140_s16 = scalar_lea.vmem %s455_s6, 256  ;;  %p3148_p13 = scmp.lt.s32.totalorder %s455_s6, %s455_s6 }
  0xae   : > { %p3141_p9 = scmp.ne.s32.totalorder %s455_s6, %s3140_s16  ;;  %p3149_p4 = scmp.lt.s32.totalorder %s3140_s16, %s3140_s16 }
  0xb0   : > { %p3143_p10 = pnand %p3141_p9, %p4373_p6  ;;  %p3150_p7 = por %p3149_p4, %p3148_p13 }
  0xb2   : > { %p3144_p11 = pneg %p3143_p10 }
  0xb4   : > { %p3151_p3 = pnand %p3150_p7, %p3144_p11 }
  0xb6   : > { %3154 = shalt.err (!%p3151_p3)
}
  0xb7   : > { %p4374_p5 = scmp.ne.s32.totalorder %s4356_s28, 0  ;;  %s4375_s1 = smov 4  }
  0xb8   : > { %s4376_s3 = smov 64   ;;  %s3442_s12 = smov [#allocation14]  }
  0xb9   : > { %2844 = dma.hbm_to_vmem [thread:$0]  (!%p4374_p5), %s4299_s5, 256, %s455_s6, [#allocation10], %s4376_s3, %s4376_s3, %s4375_s1  }
  0xba   : > { %s481_s21 = sshll.u32 %s3442_s12, 4  ;;  %s3443_s26 = smov [#allocation17]   ;;  %s482_s21 = int_to_ptr.vmem [resolvable:$true] %s481_s21 }
  0xbb   : > { %s505_s25 = sshll.u32 %s3443_s26, 4  ;;  %s3155_s23 = scalar_lea.hbm %s4301_s7, 16  ;;  %s506_s25 = int_to_ptr.vmem [resolvable:$true] %s505_s25 }
  0xbc   : > { %p3156_p3 = scmp.ne.s32.totalorder %s4301_s7, %s3155_s23  ;;  %p3162_p1 = scmp.lt.u32.totalorder %s3155_s23, %s4301_s7 }
  0xbe   : > { %p3158_p8 = pnand %p3156_p3, %p4373_p6 }
  0xc0   : > { %p3159_p2 = pneg %p3158_p8 }
  0xc2   : > { %p3164_p0 = pnand %p3162_p1, %p3159_p2 }
  0xc4   : > { %3167 = shalt.err (!%p3164_p0)
}
  0xc5   : > { %s3168_s6 = scalar_lea.vmem %s482_s21, 16  ;;  %s3175_s1 = scalar_lea.vmem %s482_s21, 32 }
  0xc6   : > { %p3169_p9 = scmp.ne.s32.totalorder %s482_s21, %s3168_s6  ;;  %p3176_p13 = scmp.lt.s32.totalorder %s482_s21, %s482_s21 }
  0xc7   : > { %p3177_p4 = scmp.lt.s32.totalorder %s3175_s1, %s3168_s6 }
  0xc8   : > { %p3171_p10 = pnand %p3169_p9, %p4373_p6 }
  0xc9   : > { %p3178_p7 = por %p3177_p4, %p3176_p13 }
  0xca   : > { %p3172_p11 = pneg %p3171_p10 }
  0xcc   : > { %p3179_p12 = pnand %p3178_p7, %p3172_p11 }
  0xce   : > { %3182 = shalt.err (!%p3179_p12)
}
  0xcf   : > { %2850 = dma.hbm_to_vmem [thread:$0]  (!%p4374_p5), %s4301_s7, 16, %s482_s21, [#allocation13]  }
  0xd0   : > { %s3183_s3 = scalar_lea.hbm %s4303_s9, 32 }
  0xd1   : > { %p3184_p3 = scmp.ne.s32.totalorder %s4303_s9, %s3183_s3  ;;  %p3190_p12 = scmp.lt.u32.totalorder %s3183_s3, %s4303_s9 }
  0xd3   : > { %p3186_p8 = pnand %p3184_p3, %p4373_p6 }
  0xd5   : > { %p3187_p2 = pneg %p3186_p8 }
  0xd7   : > { %p3192_p1 = pnand %p3190_p12, %p3187_p2 }
  0xd9   : > { %3195 = shalt.err (!%p3192_p1)
}
  0xda   : > { %s3196_s16 = scalar_lea.vmem %s506_s25, 32  ;;  %p3204_p11 = scmp.lt.s32.totalorder %s506_s25, %s506_s25 }
  0xdb   : > { %p3197_p0 = scmp.ne.s32.totalorder %s506_s25, %s3196_s16  ;;  %p3205_p13 = scmp.lt.s32.totalorder %s3196_s16, %s3196_s16 }
  0xdd   : > { %p3199_p9 = pnand %p3197_p0, %p4373_p6  ;;  %p3206_p4 = por %p3205_p13, %p3204_p11 }
  0xdf   : > { %p3200_p10 = pneg %p3199_p9 }
  0xe1   : > { %p3207_p7 = pnand %p3206_p4, %p3200_p10 }
  0xe3   : > { %3210 = shalt.err (!%p3207_p7)
}
  0xe4   : > { %2856 = dma.hbm_to_vmem [thread:$0]  (!%p4374_p5), %s4303_s9, 32, %s506_s25, [#allocation16]  }
  0xe5   : > { %s3444_s6 = smov [#allocation18]   ;;  %s3211_s23 = scalar_lea.hbm %s4305_s11, 32 }
  0xe6   : > { %s519_s1 = sshll.u32 %s3444_s6, 4  ;;  %p3212_p3 = scmp.ne.s32.totalorder %s4305_s11, %s3211_s23  ;;  %s520_s1 = int_to_ptr.vmem [resolvable:$true] %s519_s1 }
  0xe7   : > { %p3218_p12 = scmp.lt.u32.totalorder %s3211_s23, %s4305_s11 }
  0xe8   : > { %p3214_p8 = pnand %p3212_p3, %p4373_p6 }
  0xea   : > { %p3215_p2 = pneg %p3214_p8 }
  0xec   : > { %p3220_p1 = pnand %p3218_p12, %p3215_p2 }
  0xee   : > { %3223 = shalt.err (!%p3220_p1)
}
  0xef   : > { %s3224_s25 = scalar_lea.vmem %s520_s1, 32  ;;  %p3232_p11 = scmp.lt.s32.totalorder %s520_s1, %s520_s1 }
  0xf0   : > { %p3225_p0 = scmp.ne.s32.totalorder %s520_s1, %s3224_s25  ;;  %p3233_p13 = scmp.lt.s32.totalorder %s3224_s25, %s3224_s25 }
  0xf2   : > { %p3227_p9 = pnand %p3225_p0, %p4373_p6  ;;  %p3234_p4 = por %p3233_p13, %p3232_p11 }
  0xf4   : > { %p3228_p10 = pneg %p3227_p9 }
  0xf6   : > { %p3235_p7 = pnand %p3234_p4, %p3228_p10 }
  0xf8   : > { %3238 = shalt.err (!%p3235_p7)
}
  0xf9   : > { %2859 = dma.hbm_to_vmem [thread:$0]  (!%p4374_p5), %s4305_s11, 32, %s520_s1, [#allocation19]  }
  0xfa   : > { %s3848_s13 = scalar_lea.hbm %s4294_s0, %s3718_s2  ;;  %s540_s15 = scalar_lea.vmem [#allocation3], %s3715_s30 }
  0xfb   : > { %s548_s6 = sshll.u32 %s540_s15, 4  ;;  %s4377_s28 = sand.u32 1, %s3421_s20   ;;  %s549_s6 = int_to_ptr.vmem [resolvable:$true] %s548_s6 }
  0xfc   : > { %s537_s18 = scalar_lea.sflag [#allocation4], %s4377_s28  ;;  %s3239_s10 = scalar_lea.hbm %s3848_s13, 128 }
  0xfd   : > { %p3240_p6 = scmp.ne.s32.totalorder %s3848_s13, %s3239_s10  ;;  %p4378_p3 = scmp.ne.s32.totalorder %s4372_s14, 0 }
  0xfe   : > { %s3244_s29 = scalar_lea.hbm %s4294_s0, 256  ;;  %p3245_p5 = scmp.lt.u32.totalorder %s3848_s13, %s4294_s0 }
  0xff   : > { %p3242_p8 = pnand %p3240_p6, %p4378_p3  ;;  %p3246_p12 = scmp.lt.u32.totalorder %s3244_s29, %s3239_s10 }
 0x100   : > { %p3248_p0 = scmp.lt.u32.totalorder %s3239_s10, %s3848_s13 }
 0x101   : > { %p3243_p2 = pneg %p3242_p8  ;;  %p3247_p1 = por %p3246_p12, %p3245_p5 }
 0x103   : > { %p3249_p9 = por %p3248_p0, %p3247_p1 }
 0x105   : > { %p3250_p10 = pnand %p3249_p9, %p3243_p2 }
 0x107   : > { %3253 = shalt.err (!%p3250_p10)
}
 0x108   : > { %s3254_s12 = scalar_lea.vmem %s549_s6, 128  ;;  %s3445_s25 = smov [#allocation3]  }
 0x109   : > { %p3255_p11 = scmp.ne.s32.totalorder %s549_s6, %s3254_s12  ;;  %s3259_s26 = sshll.u32 %s3445_s25, 4  ;;  %s3260_s26 = int_to_ptr.vmem [resolvable:$false] %s3259_s26 }
 0x10a   : > { %s3261_s27 = scalar_lea.vmem %s3260_s26, 256  ;;  %p3262_p7 = scmp.lt.s32.totalorder %s549_s6, %s3260_s26 }
 0x10b   : > { %p3257_p13 = pnand %p3255_p11, %p4378_p3  ;;  %p3263_p6 = scmp.lt.s32.totalorder %s3261_s27, %s3254_s12 }
 0x10d   : > { %p3258_p4 = pneg %p3257_p13  ;;  %p3264_p8 = por %p3263_p6, %p3262_p7 }
 0x10f   : > { %p3265_p5 = pnand %p3264_p8, %p3258_p4 }
 0x111   : > { %3268 = shalt.err (!%p3265_p5)
}
 0x112   : > { %p4379_p12 = scmp.ne.s32.totalorder %s4370_s4, 0  ;;  %s4380_s15 = sld [smem:[#allocation41_spill]] }
 0x113   : > { %s577_s10 = scalar_lea.vmem [#allocation8], %s3715_s30 }
 0x114   : > { %2863 = dma.hbm_to_vmem [thread:$0]  (!%p4379_p12), %s3848_s13, 128, %s549_s6, %s537_s18  }
 0x115   : > { %s584_s1 = sshll.u32 %s577_s10, 4  ;;  %s585_s1 = int_to_ptr.vmem [resolvable:$true] %s584_s1 }
 0x118   : > { %s3874_s28 = scalar_lea.hbm %s4380_s15, %s3718_s2  ;;  %s3274_s13 = scalar_lea.hbm %s4380_s15, 256 }
 0x119   : > { %s3269_s23 = scalar_lea.hbm %s3874_s28, 128  ;;  %p3275_p9 = scmp.lt.u32.totalorder %s3874_s28, %s4380_s15 }
 0x11a   : > { %p3270_p2 = scmp.ne.s32.totalorder %s3874_s28, %s3269_s23  ;;  %p3276_p10 = scmp.lt.u32.totalorder %s3274_s13, %s3269_s23 }
 0x11b   : > { %p3278_p13 = scmp.lt.u32.totalorder %s3269_s23, %s3874_s28 }
 0x11c   : > { %p3272_p1 = pnand %p3270_p2, %p4378_p3  ;;  %p3277_p11 = por %p3276_p10, %p3275_p9 }
 0x11e   : > { %p3273_p0 = pneg %p3272_p1  ;;  %p3279_p4 = por %p3278_p13, %p3277_p11 }
 0x120   : > { %p3280_p7 = pnand %p3279_p4, %p3273_p0 }
 0x122   : > { %3283 = shalt.err (!%p3280_p7)
}
 0x123   : > { %s3284_s30 = scalar_lea.vmem %s585_s1, 128  ;;  %s3446_s2 = smov [#allocation8]  }
 0x124   : > { %p3285_p6 = scmp.ne.s32.totalorder %s585_s1, %s3284_s30  ;;  %s3289_s22 = sshll.u32 %s3446_s2, 4  ;;  %s3290_s22 = int_to_ptr.vmem [resolvable:$false] %s3289_s22 }
 0x125   : > { %s3291_s12 = scalar_lea.vmem %s3290_s22, 256  ;;  %p3292_p2 = scmp.lt.s32.totalorder %s585_s1, %s3290_s22 }
 0x126   : > { %p3287_p8 = pnand %p3285_p6, %p4378_p3  ;;  %p3293_p1 = scmp.lt.s32.totalorder %s3291_s12, %s3284_s30 }
 0x128   : > { %p3288_p5 = pneg %p3287_p8  ;;  %p3294_p12 = por %p3293_p1, %p3292_p2 }
 0x12a   : > { %p3295_p9 = pnand %p3294_p12, %p3288_p5 }
 0x12c   : > { %3298 = shalt.err (!%p3295_p9)
}
 0x12d   : > { %p4381_p10 = scmp.ne.s32.totalorder %s4370_s4, 0  ;;  %s4382_s25 = sld [smem:[#allocation35_spill]] }
 0x12f   : > { %2869 = dma.hbm_to_vmem [thread:$0]  (!%p4381_p10), %s3874_s28, 128, %s585_s1, %s3738_s8  }
 0x133   : > { %p4383_p0 = scmp.ne.s32.totalorder %s4382_s25, 0 }
 0x134   : > { %s3898_s14 = sand.u32 (!%p4383_p0), 1, %s3417_s19   ;;  %p4384_p3 = scmp.ne.s32.totalorder (!%p4383_p0), %s4364_s17, 0 }
 0x135   : > { %593 = sbr.rel (%p4383_p0) target bundleno = 4789 (0x12b5), region = 76  ;;  %s3901_s26 = sshll.u32 (!%p4383_p0), %s3898_s14, 3 }
 0x136   : > { %s596_s27 = scalar_lea.sflag (!%p4383_p0), [#allocation4], %s3898_s14  ;;  %s599_s16 = scalar_lea.vmem (!%p4383_p0), [#allocation3], %s3901_s26 }
 0x13c   : > { %3380 = dma.done.wait (%p4384_p3), %s596_s27, 128  }
 0x13d   : > { %3382 = vsyncadd (%p4384_p3), %s596_s27, 4294967168  ;;  %s604_s8 = sand.u32 1, %s3573_s24   ;;  %s608_s21 = scalar_lea.vmem [#allocation6], %s3901_s26 }
 0x13e   : > { %s605_s4 = scalar_lea.sflag [#allocation7], %s604_s8 }
 0x13f   : > { %3384 = dma.done.wait (%p4384_p3), %s605_s4, 256  }
 0x140   : > { %3386 = vsyncadd (%p4384_p3), %s605_s4, 4294967040  ;;  %s617_s28 = scalar_lea.vmem [#allocation8], %s3901_s26  ;;  %p4385_p12 = scmp.eq.s32.totalorder %s3573_s24, 0 }
 0x142   : > { %3388 = dma.done.wait (%p4385_p12), [#allocation10], 512   ;;  %p4386_p11 = pmov %p4385_p12 }
 0x144   : > { %3390 = vsyncadd (%p4386_p11), [#allocation10], 4294966784  ;;  %p4387_p13 = pmov %p4386_p11 }
 0x145   : > { %p4388_p4 = pmov %p4386_p11 }
 0x146   : > { %3392 = dma.done.wait (%p4387_p13), [#allocation13], 272  }
 0x147   : > { %3394 = vsyncadd (%p4388_p4), [#allocation13], 4294967024  ;;  %p4389_p7 = pmov %p4388_p4 }
 0x148   : > { %p4390_p6 = pmov %p4388_p4 }
 0x149   : > { %3396 = dma.done.wait (%p4389_p7), [#allocation16], 288  }
 0x14a   : > { %3398 = vsyncadd (%p4390_p6), [#allocation16], 4294967008  ;;  %p4391_p8 = pmov %p4388_p4 }
 0x14b   : > { %p4392_p5 = pmov %p4388_p4 }
 0x14c   : > { %3400 = dma.done.wait (%p4391_p8), [#allocation19], 32  }
 0x14d   : > { %3402 = vsyncadd (%p4392_p5), [#allocation19], 4294967264  ;;  %v3447_v0 = vmov 0.0   ;;  %vm3448_vm0 = vmmov 0   ;;  %v2963_v1 = vld [vmem:[#allocation9] sm:$0xff]   ;;  %s3449_s17 = smov 96  }
 0x14e   : > { %2640 = vmatprep.subr.bf16.mxu0 %v3447_v0  ;;  %2648 = vmatprep.subr.bf16.mxu1 %v3447_v0  ;;  %v2964_v2 = vld [vmem:[#allocation9 + $0x8] sm:$0xff]   ;;  %v3939_v3 = vld [vmem:[%s599_s16] sm:$0xff]  ;;  %vm742_vm1 = vcmask 261120   ;;  %s4393_s1 = sld [smem:[#allocation43_spill]]  ;;  %s3450_s23 = smov 120   ;;  %vm841_vm2 = vcmask 64512  }
 0x14f   : > { %2644 = vmatprep.mubr.msk.bf16.mxu0 %vm3448_vm0, %v3447_v0  ;;  %2652 = vmatprep.mubr.msk.bf16.mxu1 %vm3448_vm0, %v3447_v0  ;;  %v723_v5 = vpack.c.bf16 %v3939_v3, %v3939_v3  ;;  %v709_v7 = vld [vmem:[%s608_s21] sm:$0xff]  ;;  %s3451_s29 = smov 112   ;;  %s3452_s3 = smov 104   ;;  %vm906_vm3 = vcmask 1043456   ;;  %vm951_vm4 = vcmask 60416   ;;  %vm1071_vm5 = vcmask 126016  }
 0x150   : > { %787 = vrot.lane.b32.xlu0 %v2963_v1, %s3449_s17  ;;  %2641 = vmatpush3.bf16.msra.mxu0 %v2963_v1  ;;  %v786_v9 = vpack.c.bf16 %v709_v7, %v709_v7  ;;  %s3453_s13 = smov 88   ;;  %s3454_s6 = smov 72   ;;  %vm1190_vm6 = vcmask 191616   ;;  %vm1309_vm7 = vcmask 257216  }
 0x151   : > { %2642 = vmatprep.subr.bf16.mxu0 %v3447_v0  ;;  %s3455_s18 = smov 80   ;;  %s3456_s30 = smov 8  }
 0x152   : > { %s3457_s2 = smov 16   ;;  %s3458_s22 = smov 24  }
 0x153   : > { %s4394_s27 = sld [smem:[#allocation47_spill]]  ;;  %s4395_s4 = sld [smem:[#allocation48_spill]] }
 0x154   : > { %v2523_v4 = vld [vmem:[%s4393_s1] ss:$0 sm:$0xff]  ;;  %789 = vrot.lane.b32.xlu0 %v2964_v2, %s3449_s17  ;;  %2643 = vmatpush3.bf16.msra.mxu0 %v2964_v2  ;;  %s2522_s21 = sshll.u32 %s3898_s14, 5  ;;  %s4396_s10 = sld [smem:[#allocation46_spill]] }
 0x155   : > { %793 = vrot.lane.b32.xlu1 %v2523_v4, %s3449_s17  ;;  %2656 = vmatprep.subr.bf16.mxu0 %v3447_v0  ;;  %s4399_s16 = sld [smem:[#allocation50_spill]] }
 0x157   : > { %2645 = vmatmul.mubr.msk.bf16.vlgmr.msra.gmra.mrb[0].mxu0 %vm742_vm1, %v723_v5 }
 0x158   : > { %2658 = vmatprep.mubr.msk.bf16.mxu0 %vm3448_vm0, %v3447_v0 }
 0x1c2   : > { %v788_v6 = vpop.permute.xlu0 %787 }
 0x1c3   : > { %2649 = vmatpush3.bf16.msra.mxu1 %v788_v6 }
 0x1c4   : > { %2650 = vmatprep.subr.bf16.mxu1 %v3447_v0 }
 0x1c6   : > { %v790_v8 = vpop.permute.xlu0 %789 }
 0x1c7   : > { %2651 = vmatpush3.bf16.msra.mxu1 %v790_v8  ;;  %v794_v16 = vpop.permute.xlu1 %793 }
 0x1c8   : > { %2662 = vmatprep.subr.bf16.mxu1 %v3447_v0 }
 0x1ca   : > { %2653 = vmatmul.mubr.msk.bf16.vlgmr.msra.gmra.mrb[0].mxu1 %vm742_vm1, %v786_v9 }
 0x1cb   : > { %2664 = vmatprep.mubr.msk.bf16.mxu1 %vm3448_vm0, %v3447_v0 }
 0x22a   : > { %v780_v10 = vpop.f32.mrb[0].mxu0 }
 0x22b   : > { %v781_v11 = vadd.f32 %v2523_v4, %v780_v10  ;;  %v2646_v12 = vpop.f32.mrb[1].mxu0 }
 0x22c   : > { %v783_v13 = vpop.f32.mrb[2].mxu0 }
 0x22d   : > { %v839_v14 = vpack.c.bf16 %v781_v11, %v781_v11  ;;  %v2647_v15 = vpop.f32.mrb[3].mxu0 }
 0x22f   : > { %954 = vrot.lane.b32.xlu0 %v839_v14, %s3450_s23 }
 0x233   : > { %1073 = vrot.lane.b32.xlu0 %v839_v14, %s3451_s29 }
 0x237   : > { %1192 = vrot.lane.b32.xlu0 %v839_v14, %s3452_s3 }
 0x29d   : > { %v833_v17 = vpop.f32.mrb[0].mxu1 }
 0x29e   : > { %v834_v18 = vadd.f32 %v833_v17, %v794_v16  ;;  %v2654_v19 = vpop.f32.mrb[1].mxu1 }
 0x29f   : > { %v836_v20 = vpop.f32.mrb[2].mxu1 }
 0x2a0   : > { %v3963_v21 = vpack.c.bf16 %v834_v18, %v834_v18  ;;  %v2655_v22 = vpop.f32.mrb[3].mxu1 }
 0x2a1   : > { %v955_v27 = vpop.permute.xlu0 %954 }
 0x2a2   : > { %956 = vrot.lane.b32.xlu1 %v3963_v21, %s3450_s23  ;;  %v846_v23 = vsel %vm841_vm2, %v3963_v21, 0 }
 0x2a3   : > { %2657 = vmatpush3.bf16.xpose.msra.mxu0 %v846_v23 }
 0x2a4   : > { %2668 = vmatprep.subr.bf16.mxu0 %v3447_v0 }
 0x2a5   : > { %v1074_v30 = vpop.permute.xlu0 %1073 }
 0x2a6   : > { %1075 = vrot.lane.b32.xlu1 %v3963_v21, %s3451_s29 }
 0x2a9   : > { %v1193_v32 = vpop.permute.xlu0 %1192 }
 0x2aa   : > { %1194 = vrot.lane.b32.xlu1 %v3963_v21, %s3452_s3  ;;  %2659 = vmatmul.mubr.msk.bf16.vlgmr.msra.gmra.mrb[4].mxu0 %vm841_vm2, %v839_v14 }
 0x2ab   : > { %2670 = vmatprep.mubr.msk.bf16.mxu0 %vm3448_vm0, %v3447_v0 }
 0x314   : > { %v957_v24 = vpop.permute.xlu1 %956 }
 0x315   : > { %v962_v25 = vsel %vm841_vm2, %v957_v24, 0 }
 0x316   : > { %2669 = vmatpush3.bf16.xpose.msra.mxu0 %v962_v25 }
 0x317   : > { %2680 = vmatprep.subr.bf16.mxu0 %v3447_v0 }
 0x318   : > { %v1076_v26 = vpop.permute.xlu1 %1075 }
 0x319   : > { %v1081_v28 = vsel %vm841_vm2, %v1076_v26, 0 }
 0x31c   : > { %v1195_v29 = vpop.permute.xlu1 %1194 }
 0x31d   : > { %2671 = vmatmul.mubr.msk.bf16.vlgmr.msra.gmra.mrb[8].mxu0 %vm841_vm2, %v955_v27  ;;  %v1200_v31 = vsel %vm841_vm2, %v1195_v29, 0 }
 0x31e   : > { %2681 = vmatpush3.bf16.xpose.msra.mxu0 %v1081_v28  ;;  %2682 = vmatprep.mubr.msk.bf16.mxu0 %vm3448_vm0, %v3447_v0 }
 0x31f   : > { %2692 = vmatprep.subr.bf16.mxu0 %v3447_v0 }
 0x325   : > { %2683 = vmatmul.mubr.msk.bf16.vlgmr.msra.gmra.mrb[12].mxu0 %vm841_vm2, %v1074_v30 }
 0x326   : > { %2693 = vmatpush3.bf16.xpose.msra.mxu0 %v1200_v31  ;;  %2694 = vmatprep.mubr.msk.bf16.mxu0 %vm3448_vm0, %v3447_v0 }
 0x327   : > { %2704 = vmatprep.subr.bf16.mxu0 %v3447_v0 }
 0x32d   : > { %2695 = vmatmul.mubr.msk.bf16.vlgmr.msra.gmra.mrb[16].mxu0 %vm841_vm2, %v1193_v32 }
 0x32e   : > { %2708 = vmatprep.mubr.msk.bf16.mxu0 %vm3448_vm0, %v3447_v0 }
 0x37d   : > { %v882_v33 = vpop.f32.mrb[4].mxu0 }
 0x37e   : > { %v2660_v34 = vpop.f32.mrb[5].mxu0  ;;  %v888_v35 = vsel %vm841_vm2, %v882_v33, -inf }
 0x37f   : > { %889 = vmax.xlane.f32.xlu1 %v888_v35  ;;  %v885_v36 = vpop.f32.mrb[6].mxu0 }
 0x380   : > { %v2661_v37 = vpop.f32.mrb[7].mxu0 }
 0x3f0   : > { %v998_v38 = vpop.f32.mrb[8].mxu0 }
 0x3f1   : > { %v2672_v39 = vpop.f32.mrb[9].mxu0  ;;  %v1004_v40 = vsel %vm841_vm2, %v998_v38, -inf }
 0x3f2   : > { %1005 = vmax.xlane.f32.xlu0 %v1004_v40  ;;  %v1001_v41 = vpop.f32.mrb[10].mxu0 }
 0x3f3   : > { %v2673_v42 = vpop.f32.mrb[11].mxu0 }
 0x3f8   : > { %v1117_v43 = vpop.f32.mrb[12].mxu0 }
 0x3f9   : > { %v2684_v44 = vpop.f32.mrb[13].mxu0  ;;  %v1123_v45 = vsel %vm841_vm2, %v1117_v43, -inf }
 0x3fa   : > { %1124 = vmax.xlane.f32.xlu0 %v1123_v45  ;;  %v1120_v46 = vpop.f32.mrb[14].mxu0  ;;  %v2965_v45 = vld [vmem:[#allocation11] sm:$0xff]  }
 0x3fb   : > { %v2685_v47 = vpop.f32.mrb[15].mxu0  ;;  %2705 = vmatpush3.bf16.msra.mxu0 %v2965_v45  ;;  %v2966_v46 = vld [vmem:[#allocation11 + $0x8] sm:$0xff]  }
 0x3fc   : > { %2706 = vmatprep.subr.bf16.mxu0 %v3447_v0 }
 0x3ff   : > { %2707 = vmatpush3.bf16.msra.mxu0 %v2966_v46 }
 0x400   : > { %v1236_v48 = vpop.f32.mrb[16].mxu0  ;;  %2720 = vmatprep.subr.bf16.mxu0 %v3447_v0 }
 0x401   : > { %v2696_v49 = vpop.f32.mrb[17].mxu0  ;;  %v1242_v50 = vsel %vm841_vm2, %v1236_v48, -inf }
 0x402   : > { %1243 = vmax.xlane.f32.xlu1 %v1242_v50  ;;  %v1239_v51 = vpop.f32.mrb[18].mxu0 }
 0x403   : > { %v2697_v52 = vpop.f32.mrb[19].mxu0 }
 0x40c   : > { %v890_v53 = vpop.xlane.xlu1 %889 }
 0x40d   : > { %v891_v54 = vsub.f32 %v882_v33, %v890_v53 }
 0x40f   : > { %v892_v55 = vmul.f32 1.442695, %v891_v54 }
 0x411   : > { %2975 = vpow2.f32 %v892_v55 }
 0x41b   : > { %v2976_v56 = vpop.eup %2975 }
 0x41c   : > { %v894_v57 = vsel %vm841_vm2, %v2976_v56, 0.0 }
 0x41d   : > { %895 = vadd.xlane.f32.xlu0 %v894_v57 }
 0x47f   : > { %v1006_v58 = vpop.xlane.xlu0 %1005 }
 0x480   : > { %v1007_v59 = vsub.f32 %v998_v38, %v1006_v58 }
 0x482   : > { %v1008_v60 = vmul.f32 1.442695, %v1007_v59 }
 0x484   : > { %2977 = vpow2.f32 %v1008_v60 }
 0x487   : > { %v1125_v61 = vpop.xlane.xlu0 %1124 }
 0x488   : > { %v1126_v62 = vsub.f32 %v1117_v43, %v1125_v61  ;;  %v1312_v61 = vlaneseq }
 0x48a   : > { %v1127_v63 = vmul.f32 1.442695, %v1126_v62  ;;  %v4040_v62 = vshrl.u32 %v1312_v61, 7 }
 0x48c   : > { %2979 = vpow2.f32 %v1127_v63  ;;  %v4043_v63 = vsub.s32 0, %v4040_v62 }
 0x48e   : > { %v2978_v1 = vpop.eup %2977 }
 0x48f   : > { %v1010_v2 = vsel %vm841_vm2, %v2978_v1, 0.0  ;;  %v1244_v6 = vpop.xlane.xlu1 %1243 }
 0x490   : > { %1011 = vadd.xlane.f32.xlu1 %v1010_v2  ;;  %v1245_v7 = vsub.f32 %v1236_v48, %v1244_v6 }
 0x492   : > { %v1246_v8 = vmul.f32 1.442695, %v1245_v7 }
 0x494   : > { %2981 = vpow2.f32 %v1246_v8 }
 0x496   : > { %v2980_v4 = vpop.eup %2979 }
 0x497   : > { %v1129_v5 = vsel %vm841_vm2, %v2980_v4, 0.0 }
 0x498   : > { %1130 = vadd.xlane.f32.xlu0 %v1129_v5 }
 0x49e   : > { %v2982_v9 = vpop.eup %2981 }
 0x49f   : > { %v1248_v10 = vsel %vm841_vm2, %v2982_v9, 0.0 }
 0x4a1   : > { %1016 = vrot.lane.b32.xlu1 %v3963_v21, %s3453_s13 }
 0x4aa   : > { %v896_v11 = vpop.xlane.xlu0 %895 }
 0x4ab   : > { %2983 = vrcp.f32 %v896_v11  ;;  %v2967_v11 = vld [vmem:[#allocation12] sm:$0xff]  }
 0x4ae   : > { %901 = vrot.lane.b32.xlu0 %v3963_v21, %s3449_s17 }
 0x4b2   : > { %1254 = vrot.lane.b32.xlu0 %v3963_v21, %s3454_s6 }
 0x4b5   : > { %v2984_v13 = vpop.eup %2983 }
 0x4b6   : > { %v898_v15 = vmul.f32 %v2984_v13, %v2976_v56 }
 0x4b8   : > { %v899_v19 = vpack.c.bf16 %v898_v15, %v898_v15 }
 0x4c5   : > { %1249 = vadd.xlane.f32.xlu1 %v1248_v10 }
 0x4d6   : > { %1135 = vrot.lane.b32.xlu1 %v3963_v21, %s3455_s18 }
 0x51d   : > { %v1012_v12 = vpop.xlane.xlu1 %1011 }
 0x51e   : > { %2985 = vrcp.f32 %v1012_v12  ;;  %v2968_v12 = vld [vmem:[#allocation12 + $0x8] sm:$0xff]  }
 0x521   : > { %v1017_v18 = vpop.permute.xlu1 %1016 }
 0x522   : > { %v1022_v22 = vsel %vm906_vm3, %v1017_v18, 0  ;;  %v2542_v18 = vld [vmem:[#allocation14] ss:$0 sm:$0xff] }
 0x525   : > { %v1131_v14 = vpop.xlane.xlu0 %1130 }
 0x526   : > { %2987 = vrcp.f32 %v1131_v14 }
 0x528   : > { %v2986_v20 = vpop.eup %2985 }
 0x529   : > { %v902_v16 = vpop.permute.xlu0 %901  ;;  %v1014_v21 = vmul.f32 %v2986_v20, %v2978_v1  ;;  %v4045_v1 = vld [vmem:[#allocation17] sm:$0x3] }
 0x52a   : > { %v908_v17 = vsel %vm906_vm3, %v902_v16, 0  ;;  %v1315_v2 = vrot.slane %v4045_v1, %v4043_v63 }
 0x52b   : > { %2663 = vmatpush3.bf16.msra.mxu1 %v908_v17  ;;  %v1015_v23 = vpack.c.bf16 %v1014_v21, %v1014_v21 }
 0x52c   : > { %2674 = vmatprep.subr.bf16.mxu1 %v3447_v0 }
 0x52d   : > { %v1255_v29 = vpop.permute.xlu0 %1254 }
 0x52e   : > { %2665 = vmatmul.mubr.msk.bf16.vlgmr.msra.gmra.mrb[4].mxu1 %vm841_vm2, %v899_v19  ;;  %v1260_v31 = vsel %vm906_vm3, %v1255_v29, 0 }
 0x52f   : > { %2675 = vmatpush3.bf16.msra.mxu1 %v1022_v22  ;;  %2676 = vmatprep.mubr.msk.bf16.mxu1 %vm3448_vm0, %v3447_v0  ;;  %v710_v22 = vld [vmem:[%s617_s28] sm:$0xff]  ;;  %s4131_s28 = scalar_lea.vmem [#allocation21], %s2522_s21 }
 0x530   : > { %2686 = vmatprep.subr.bf16.mxu1 %v3447_v0  ;;  %v2988_v24 = vpop.eup %2987  ;;  %s2266_s12 = sshll.u32 %s4131_s28, 4  ;;  %s4209_s12 = int_to_ptr.vmem [resolvable:$true] %s2266_s12 }
 0x531   : > { %v1133_v26 = vmul.f32 %v2988_v24, %v2980_v4  ;;  %v1467_v24 = vpack.c.bf16 %v710_v22, %v710_v22  ;;  %s3299_s21 = scalar_lea.vmem %s4209_s12, 512 }
 0x532   : > { %p3300_p2 = scmp.ne.s32.totalorder %s4209_s12, %s3299_s21 }
 0x533   : > { %v1134_v30 = vpack.c.bf16 %v1133_v26, %v1133_v26  ;;  %v4072_v26 = vld [vmem:[%s4395_s4] sm:$0x7]  ;;  %s2238_s4 = scalar_lea.sflag [#allocation22], %s3898_s14 }
 0x536   : > { %2677 = vmatmul.mubr.msk.bf16.vlgmr.msra.gmra.mrb[8].mxu1 %vm841_vm2, %v1015_v23 }
 0x537   : > { %2688 = vmatprep.mubr.msk.bf16.mxu1 %vm3448_vm0, %v3447_v0 }
 0x552   : > { %v1250_v25 = vpop.xlane.xlu1 %1249 }
 0x553   : > { %2989 = vrcp.f32 %v1250_v25  ;;  %v4067_v25 = vld [vmem:[%s4394_s27] sm:$0x7] }
 0x556   : > { %v1136_v27 = vpop.permute.xlu1 %1135 }
 0x557   : > { %v1141_v28 = vsel %vm906_vm3, %v1136_v27, 0  ;;  %v1389_v27 = vrot.slane %v4067_v25, %v4043_v63 }
 0x558   : > { %2687 = vmatpush3.bf16.msra.mxu1 %v1141_v28 }
 0x559   : > { %2698 = vmatprep.subr.bf16.mxu1 %v3447_v0 }
 0x55b   : > { %2689 = vmatmul.mubr.msk.bf16.vlgmr.msra.gmra.mrb[12].mxu1 %vm841_vm2, %v1134_v30  ;;  %v1394_v30 = vrot.slane %v4072_v26, %v4043_v63 }
 0x55c   : > { %2699 = vmatpush3.bf16.msra.mxu1 %v1260_v31  ;;  %2700 = vmatprep.mubr.msk.bf16.mxu1 %vm3448_vm0, %v3447_v0 }
 0x55d   : > { %v2990_v32 = vpop.eup %2989  ;;  %2712 = vmatprep.subr.bf16.mxu1 %v3447_v0 }
 0x55e   : > { %v1252_v33 = vmul.f32 %v2990_v32, %v2982_v9 }
 0x560   : > { %v1253_v34 = vpack.c.bf16 %v1252_v33, %v1252_v33 }
 0x563   : > { %2701 = vmatmul.mubr.msk.bf16.vlgmr.msra.gmra.mrb[16].mxu1 %vm841_vm2, %v1253_v34 }
 0x564   : > { %2716 = vmatprep.mubr.msk.bf16.mxu1 %vm3448_vm0, %v3447_v0  ;;  %2713 = vmatpush3.bf16.msra.mxu1 %v2967_v11 }
 0x565   : > { %2714 = vmatprep.subr.bf16.mxu1 %v3447_v0 }
 0x568   : > { %2715 = vmatpush3.bf16.msra.mxu1 %v2968_v12 }
 0x569   : > { %2728 = vmatprep.subr.bf16.mxu1 %v3447_v0 }
 0x601   : > { %v944_v35 = vpop.f32.mrb[4].mxu1 }
 0x602   : > { %v950_v36 = vpack.c.bf16 %v944_v35, %v944_v35  ;;  %v2666_v37 = vpop.f32.mrb[5].mxu1 }
 0x603   : > { %v947_v38 = vpop.f32.mrb[6].mxu1 }
 0x604   : > { %952 = vst.msk [vmem:[#allocation2] sm:$0xf] %vm951_vm4, %v950_v36  ;;  %v2667_v39 = vpop.f32.mrb[7].mxu1 }
 0x609   : > { %v1058_v40 = vpop.f32.mrb[8].mxu1 }
 0x60a   : > { %v2577_v41 = vpack.c.bf16 %v1058_v40, %v1058_v40  ;;  %v2678_v42 = vpop.f32.mrb[9].mxu1 }
 0x60b   : > { %v1061_v43 = vpop.f32.mrb[10].mxu1 }
 0x60c   : > { %1068 = vrot.lane.b32.xlu1 %v2577_v41, %s3456_s30  ;;  %v2679_v44 = vpop.f32.mrb[11].mxu1 }
 0x62e   : > { %v1177_v47 = vpop.f32.mrb[12].mxu1 }
 0x62f   : > { %v2578_v48 = vpack.c.bf16 %v1177_v47, %v1177_v47  ;;  %v2690_v49 = vpop.f32.mrb[13].mxu1 }
 0x630   : > { %v1180_v50 = vpop.f32.mrb[14].mxu1 }
 0x631   : > { %1187 = vrot.lane.b32.xlu0 %v2578_v48, %s3457_s2  ;;  %v2691_v51 = vpop.f32.mrb[15].mxu1 }
 0x636   : > { %v1296_v52 = vpop.f32.mrb[16].mxu1 }
 0x637   : > { %v2579_v53 = vpack.c.bf16 %v1296_v52, %v1296_v52  ;;  %v2702_v54 = vpop.f32.mrb[17].mxu1 }
 0x638   : > { %v1299_v55 = vpop.f32.mrb[18].mxu1 }
 0x639   : > { %1306 = vrot.lane.b32.xlu1 %v2579_v53, %s3458_s22  ;;  %v2703_v56 = vpop.f32.mrb[19].mxu1 }
 0x67e   : > { %v1069_v57 = vpop.permute.xlu1 %1068 }
 0x67f   : > { %1072 = vst.msk [vmem:[#allocation2] sm:$0xf] %vm1071_vm5, %v1069_v57 }
 0x6a3   : > { %v1188_v58 = vpop.permute.xlu0 %1187 }
 0x6a4   : > { %1191 = vst.msk [vmem:[#allocation2] sm:$0xf] %vm1190_vm6, %v1188_v58 }
 0x6ab   : > { %v1307_v59 = vpop.permute.xlu1 %1306 }
 0x6ac   : > { %1310 = vst.msk [vmem:[#allocation2] sm:$0xf] %vm1309_vm7, %v1307_v59 }
 0x6b3   : > { %v1311_v60 = vld [vmem:[#allocation2] sm:$0xf] }
 0x6b4   : > { %2709 = vmatmul.mubr.msk.bf16.vlgmr.msra.gmra.mrb[20].mxu0 %vm742_vm1, %v1311_v60 }
 0x6b5   : > { %2724 = vmatprep.mubr.msk.bf16.mxu0 %vm3448_vm0, %v3447_v0 }
 0x787   : > { %v1365_v4 = vpop.f32.mrb[20].mxu0 }
 0x788   : > { %v1366_v5 = vadd.f32 %v1365_v4, %v1315_v2  ;;  %v2710_v6 = vpop.f32.mrb[21].mxu0 }
 0x789   : > { %v1368_v7 = vpop.f32.mrb[22].mxu0 }
 0x78a   : > { %v2711_v8 = vpop.f32.mrb[23].mxu0  ;;  %v1371_v9 = vadd.f32 %v1366_v5, %v3939_v3 }
 0x78c   : > { %v1372_v10 = vsel %vm742_vm1, %v1371_v9, 0.0 }
 0x78d   : > { %1373 = vadd.xlane.f32.xlu0 %v1372_v10 }
 0x7a3   : > { %1468 = vrot.lane.b32.xlu0 %v2967_v11, %s3449_s17 }
 0x7a7   : > { %1474 = vrot.lane.b32.xlu0 %v2542_v18, %s3449_s17 }
 0x81a   : > { %v1374_v13 = vpop.xlane.xlu0 %1373 }
 0x81b   : > { %v1376_v14 = vmul.f32 0.03125, %v1374_v13 }
 0x81d   : > { %v1377_v15 = vsub.f32 %v1371_v9, %v1376_v14 }
 0x81e   : > { %v1469_v17 = vpop.permute.xlu0 %1468 }
 0x81f   : > { %v1378_v16 = vmul.f32 %v1377_v15, %v1377_v15  ;;  %2721 = vmatpush3.bf16.msra.mxu0 %v1469_v17 }
 0x820   : > { %2722 = vmatprep.subr.bf16.mxu0 %v3447_v0 }
 0x821   : > { %v1379_v3 = vsel %vm742_vm1, %v1378_v16, 0.0 }
 0x822   : > { %1380 = vadd.xlane.f32.xlu1 %v1379_v3  ;;  %v1475_v34 = vpop.permute.xlu0 %1474 }
 0x833   : > { %1470 = vrot.lane.b32.xlu1 %v2968_v12, %s3449_s17 }
 0x8af   : > { %v1381_v19 = vpop.xlane.xlu1 %1380 }
 0x8b0   : > { %v1382_v20 = vmul.f32 0.03125, %v1381_v19 }
 0x8b2   : > { %v1383_v21 = vadd.f32 1e-05, %v1382_v20 }
 0x8b3   : > { %v1471_v23 = vpop.permute.xlu1 %1470 }
 0x8b4   : > { %2991 = vrsqrt.f32 %v1383_v21  ;;  %2723 = vmatpush3.bf16.msra.mxu0 %v1471_v23 }
 0x8b5   : > { %2734 = vmatprep.subr.bf16.mxu0 %v3447_v0 }
 0x8b7   : > { %2725 = vmatmul.mubr.msk.bf16.vlgmr.msra.gmra.mrb[24].mxu0 %vm742_vm1, %v1467_v24 }
 0x8b8   : > { %2736 = vmatprep.mubr.msk.bf16.mxu0 %vm3448_vm0, %v3447_v0 }
 0x8be   : > { %v2992_v28 = vpop.eup %2991 }
 0x8bf   : > { %v1385_v29 = vmul.f32 %v2992_v28, %v1377_v15 }
 0x8c1   : > { %v1390_v31 = vmul.f32 %v1389_v27, %v1385_v29 }
 0x8c3   : > { %v4078_v32 = vadd.f32 %v1394_v30, %v1390_v31 }
 0x8c5   : > { %v1405_v33 = vpack.c.bf16 %v4078_v32, %v4078_v32 }
 0x8c7   : > { %2717 = vmatmul.mubr.msk.bf16.vlgmr.msra.gmra.mrb[20].mxu1 %vm742_vm1, %v1405_v33 }
 0x8c8   : > { %2730 = vmatprep.mubr.msk.bf16.mxu1 %vm3448_vm0, %v3447_v0 }
 0x98a   : > { %v1514_v35 = vpop.f32.mrb[24].mxu0 }
 0x98b   : > { %v1515_v36 = vadd.f32 %v1514_v35, %v1475_v34  ;;  %v2726_v37 = vpop.f32.mrb[25].mxu0 }
 0x98c   : > { %v1517_v38 = vpop.f32.mrb[26].mxu0 }
 0x98d   : > { %v4085_v39 = vpack.c.bf16 %v1515_v36, %v1515_v36  ;;  %v2727_v40 = vpop.f32.mrb[27].mxu0 }
 0x98f   : > { %1635 = vrot.lane.b32.xlu1 %v4085_v39, %s3450_s23  ;;  %v1526_v41 = vsel %vm841_vm2, %v4085_v39, 0 }
 0x990   : > { %2729 = vmatpush3.bf16.xpose.msra.mxu1 %v1526_v41 }
 0x991   : > { %2740 = vmatprep.subr.bf16.mxu1 %v3447_v0 }
 0x993   : > { %1755 = vrot.lane.b32.xlu1 %v4085_v39, %s3451_s29 }
 0x997   : > { %1875 = vrot.lane.b32.xlu1 %v4085_v39, %s3452_s3 }
 0x99a   : > { %v1461_v42 = vpop.f32.mrb[20].mxu1 }
 0x99b   : > { %v1462_v43 = vadd.f32 %v2542_v18, %v1461_v42  ;;  %v2718_v44 = vpop.f32.mrb[21].mxu1 }
 0x99c   : > { %v1464_v45 = vpop.f32.mrb[22].mxu1 }
 0x99d   : > { %v1520_v46 = vpack.c.bf16 %v1462_v43, %v1462_v43  ;;  %v2719_v47 = vpop.f32.mrb[23].mxu1 }
 0x99f   : > { %1633 = vrot.lane.b32.xlu0 %v1520_v46, %s3450_s23  ;;  %2731 = vmatmul.mubr.msk.bf16.vlgmr.msra.gmra.mrb[24].mxu1 %vm841_vm2, %v1520_v46 }
 0x9a0   : > { %2742 = vmatprep.mubr.msk.bf16.mxu1 %vm3448_vm0, %v3447_v0 }
 0x9a3   : > { %1753 = vrot.lane.b32.xlu0 %v1520_v46, %s3451_s29 }
 0x9a7   : > { %1873 = vrot.lane.b32.xlu0 %v1520_v46, %s3452_s3 }
 0xa01   : > { %v1636_v48 = vpop.permute.xlu1 %1635 }
 0xa02   : > { %v1641_v49 = vsel %vm841_vm2, %v1636_v48, 0 }
 0xa03   : > { %2741 = vmatpush3.bf16.xpose.msra.mxu1 %v1641_v49 }
 0xa04   : > { %2752 = vmatprep.subr.bf16.mxu1 %v3447_v0 }
 0xa05   : > { %v1756_v50 = vpop.permute.xlu1 %1755 }
 0xa06   : > { %v1761_v52 = vsel %vm841_vm2, %v1756_v50, 0 }
 0xa09   : > { %v1876_v53 = vpop.permute.xlu1 %1875 }
 0xa0a   : > { %v1881_v55 = vsel %vm841_vm2, %v1876_v53, 0 }
 0xa11   : > { %v1634_v51 = vpop.permute.xlu0 %1633 }
 0xa12   : > { %2743 = vmatmul.mubr.msk.bf16.vlgmr.msra.gmra.mrb[28].mxu1 %vm841_vm2, %v1634_v51 }
 0xa13   : > { %2753 = vmatpush3.bf16.xpose.msra.mxu1 %v1761_v52  ;;  %2754 = vmatprep.mubr.msk.bf16.mxu1 %vm3448_vm0, %v3447_v0 }
 0xa14   : > { %2764 = vmatprep.subr.bf16.mxu1 %v3447_v0 }
 0xa15   : > { %v1754_v54 = vpop.permute.xlu0 %1753 }
 0xa19   : > { %v1874_v56 = vpop.permute.xlu0 %1873 }
 0xa1a   : > { %2755 = vmatmul.mubr.msk.bf16.vlgmr.msra.gmra.mrb[32].mxu1 %vm841_vm2, %v1754_v54 }
 0xa1b   : > { %2765 = vmatpush3.bf16.xpose.msra.mxu1 %v1881_v55  ;;  %2766 = vmatprep.mubr.msk.bf16.mxu1 %vm3448_vm0, %v3447_v0 }
 0xa1c   : > { %2776 = vmatprep.subr.bf16.mxu1 %v3447_v0 }
 0xa22   : > { %2767 = vmatmul.mubr.msk.bf16.vlgmr.msra.gmra.mrb[36].mxu1 %vm841_vm2, %v1874_v56 }
 0xa23   : > { %2780 = vmatprep.mubr.msk.bf16.mxu1 %vm3448_vm0, %v3447_v0 }
 0xa72   : > { %v1562_v57 = vpop.f32.mrb[24].mxu1 }
 0xa73   : > { %v2732_v58 = vpop.f32.mrb[25].mxu1  ;;  %v1568_v59 = vsel %vm841_vm2, %v1562_v57, -inf }
 0xa74   : > { %1569 = vmax.xlane.f32.xlu1 %v1568_v59  ;;  %v1565_v60 = vpop.f32.mrb[26].mxu1 }
 0xa75   : > { %v2733_v61 = vpop.f32.mrb[27].mxu1 }
 0xae5   : > { %v1677_v2 = vpop.f32.mrb[28].mxu1 }
 0xae6   : > { %v2744_v4 = vpop.f32.mrb[29].mxu1  ;;  %v1683_v5 = vsel %vm841_vm2, %v1677_v2, -inf }
 0xae7   : > { %1684 = vmax.xlane.f32.xlu0 %v1683_v5  ;;  %v1680_v6 = vpop.f32.mrb[30].mxu1 }
 0xae8   : > { %v2745_v7 = vpop.f32.mrb[31].mxu1 }
 0xaed   : > { %v1797_v8 = vpop.f32.mrb[32].mxu1 }
 0xaee   : > { %v2756_v9 = vpop.f32.mrb[33].mxu1  ;;  %v1803_v10 = vsel %vm841_vm2, %v1797_v8, -inf }
 0xaef   : > { %1804 = vmax.xlane.f32.xlu0 %v1803_v10  ;;  %v1800_v11 = vpop.f32.mrb[34].mxu1 }
 0xaf0   : > { %v2757_v12 = vpop.f32.mrb[35].mxu1 }
 0xaf5   : > { %v1917_v13 = vpop.f32.mrb[36].mxu1 }
 0xaf6   : > { %v2768_v14 = vpop.f32.mrb[37].mxu1  ;;  %v1923_v15 = vsel %vm841_vm2, %v1917_v13, -inf }
 0xaf7   : > { %1924 = vmax.xlane.f32.xlu1 %v1923_v15  ;;  %v1920_v16 = vpop.f32.mrb[38].mxu1  ;;  %v2969_v15 = vld [vmem:[#allocation15] sm:$0xff]  }
 0xaf8   : > { %v2769_v3 = vpop.f32.mrb[39].mxu1  ;;  %2777 = vmatpush3.bf16.msra.mxu1 %v2969_v15 }
 0xaf9   : > { %v2970_v3 = vld [vmem:[#allocation15 + $0x8] sm:$0xff]   ;;  %2778 = vmatprep.subr.bf16.mxu1 %v3447_v0 }
 0xafc   : > { %2779 = vmatpush3.bf16.msra.mxu1 %v2970_v3 }
 0xafd   : > { %2792 = vmatprep.subr.bf16.mxu1 %v3447_v0 }
 0xb01   : > { %v1570_v17 = vpop.xlane.xlu1 %1569 }
 0xb02   : > { %v1571_v18 = vsub.f32 %v1562_v57, %v1570_v17 }
 0xb04   : > { %v1572_v19 = vmul.f32 1.442695, %v1571_v18 }
 0xb06   : > { %2993 = vpow2.f32 %v1572_v19 }
 0xb10   : > { %v2994_v20 = vpop.eup %2993 }
 0xb11   : > { %v1574_v22 = vsel %vm841_vm2, %v2994_v20, 0.0 }
 0xb12   : > { %1575 = vadd.xlane.f32.xlu0 %v1574_v22 }
 0xb74   : > { %v1685_v21 = vpop.xlane.xlu0 %1684 }
 0xb75   : > { %v1686_v23 = vsub.f32 %v1677_v2, %v1685_v21 }
 0xb77   : > { %v1687_v24 = vmul.f32 1.442695, %v1686_v23 }
 0xb79   : > { %2995 = vpow2.f32 %v1687_v24 }
 0xb7c   : > { %v1805_v27 = vpop.xlane.xlu0 %1804 }
 0xb7d   : > { %v1806_v28 = vsub.f32 %v1797_v8, %v1805_v27 }
 0xb7f   : > { %v1807_v29 = vmul.f32 1.442695, %v1806_v28 }
 0xb81   : > { %2997 = vpow2.f32 %v1807_v29 }
 0xb83   : > { %v2996_v30 = vpop.eup %2995 }
 0xb84   : > { %v1689_v31 = vsel %vm841_vm2, %v2996_v30, 0.0  ;;  %v1925_v36 = vpop.xlane.xlu1 %1924 }
 0xb85   : > { %1690 = vadd.xlane.f32.xlu1 %v1689_v31  ;;  %v1926_v37 = vsub.f32 %v1917_v13, %v1925_v36 }
 0xb87   : > { %v1927_v38 = vmul.f32 1.442695, %v1926_v37 }
 0xb8b   : > { %v2998_v33 = vpop.eup %2997 }
 0xb8c   : > { %v1809_v34 = vsel %vm841_vm2, %v2998_v33, 0.0 }
 0xb8d   : > { %1810 = vadd.xlane.f32.xlu0 %v1809_v34 }
 0xb96   : > { %1697 = vrot.lane.b32.xlu1 %v4085_v39, %s3453_s13 }
 0xb9f   : > { %v1576_v35 = vpop.xlane.xlu0 %1575 }
 0xba0   : > { %2999 = vrcp.f32 %v1576_v35 }
 0xba1   : > { %3001 = vpow2.f32 %v1927_v38 }
 0xba3   : > { %1582 = vrot.lane.b32.xlu0 %v4085_v39, %s3449_s17  ;;  %s3459_s17 = smov [#allocation21]  }
 0xba4   : > { %s3303_s24 = sshll.u32 %s3459_s17, 4  ;;  %s3304_s24 = int_to_ptr.vmem [resolvable:$false] %s3303_s24 }
 0xba5   : > { %p3306_p0 = scmp.lt.s32.totalorder %s4209_s12, %s3304_s24 }
 0xba7   : > { %1937 = vrot.lane.b32.xlu0 %v4085_v39, %s3454_s6 }
 0xbaa   : > { %v3000_v40 = vpop.eup %2999 }
 0xbab   : > { %v1578_v41 = vmul.f32 %v3000_v40, %v2994_v20  ;;  %v3002_v42 = vpop.eup %3001 }
 0xbac   : > { %v1929_v43 = vsel %vm841_vm2, %v3002_v42, 0.0 }
 0xbad   : > { %1579 = vst.msk [vmem:[%s4131_s28] sm:$0xff] %vm841_vm2, %v1578_v41  ;;  %v1580_v51 = vpack.c.bf16 %v1578_v41, %v1578_v41 }
 0xbba   : > { %1930 = vadd.xlane.f32.xlu1 %v1929_v43 }
 0xbcb   : > { %1817 = vrot.lane.b32.xlu1 %v4085_v39, %s3455_s18  ;;  %s4397_s18 = sld [smem:[#allocation32_spill]] }
 0xc12   : > { %v1691_v44 = vpop.xlane.xlu1 %1690 }
 0xc13   : > { %3003 = vrcp.f32 %v1691_v44 }
 0xc16   : > { %v1698_v50 = vpop.permute.xlu1 %1697 }
 0xc17   : > { %v1703_v52 = vsel %vm906_vm3, %v1698_v50, 0 }
 0xc1a   : > { %v1811_v45 = vpop.xlane.xlu0 %1810 }
 0xc1b   : > { %3005 = vrcp.f32 %v1811_v45 }
 0xc1d   : > { %v3004_v46 = vpop.eup %3003 }
 0xc1e   : > { %v1693_v47 = vmul.f32 %v3004_v46, %v2996_v30  ;;  %v1583_v48 = vpop.permute.xlu0 %1582 }
 0xc1f   : > { %v1588_v49 = vsel %vm906_vm3, %v1583_v48, 0  ;;  %v2972_v48 = vld [vmem:[%s4396_s10 + $0x8] sm:$0xff]  }
 0xc20   : > { %2550 = vst.msk [vmem:[%s4131_s28 + $0x8] sm:$0xff] %vm841_vm2, %v1693_v47  ;;  %2735 = vmatpush3.bf16.msra.mxu0 %v1588_v49  ;;  %v1696_v54 = vpack.c.bf16 %v1693_v47, %v1693_v47 }
 0xc21   : > { %2746 = vmatprep.subr.bf16.mxu0 %v3447_v0 }
 0xc22   : > { %v1938_v58 = vpop.permute.xlu0 %1937 }
 0xc23   : > { %2737 = vmatmul.mubr.msk.bf16.vlgmr.msra.gmra.mrb[28].mxu0 %vm841_vm2, %v1580_v51  ;;  %v1943_v60 = vsel %vm906_vm3, %v1938_v58, 0  ;;  %v2974_v58 = vld [vmem:[%s4396_s10 + $0x18] sm:$0xff]  }
 0xc24   : > { %2747 = vmatpush3.bf16.msra.mxu0 %v1703_v52  ;;  %2748 = vmatprep.mubr.msk.bf16.mxu0 %vm3448_vm0, %v3447_v0 }
 0xc25   : > { %v3006_v39 = vpop.eup %3005  ;;  %2758 = vmatprep.subr.bf16.mxu0 %v3447_v0 }
 0xc26   : > { %v1813_v53 = vmul.f32 %v3006_v39, %v2998_v33  ;;  %v1996_v33 = vsub.s32 1, %v4040_v62 }
 0xc28   : > { %2554 = vst.msk [vmem:[%s4131_s28 + $0x10] sm:$0xff] %vm841_vm2, %v1813_v53  ;;  %v1816_v59 = vpack.c.bf16 %v1813_v53, %v1813_v53  ;;  %v1997_v34 = vrot.slane %v4045_v1, %v1996_v33  ;;  %v2971_v1 = vld [vmem:[%s4396_s10] sm:$0xff]   ;;  %v2070_v51 = vrot.slane %v4067_v25, %v1996_v33  ;;  %v2075_v53 = vrot.slane %v4072_v26, %v1996_v33 }
 0xc2b   : > { %2749 = vmatmul.mubr.msk.bf16.vlgmr.msra.gmra.mrb[32].mxu0 %vm841_vm2, %v1696_v54 }
 0xc2c   : > { %2760 = vmatprep.mubr.msk.bf16.mxu0 %vm3448_vm0, %v3447_v0 }
 0xc47   : > { %v1931_v55 = vpop.xlane.xlu1 %1930 }
 0xc48   : > { %3007 = vrcp.f32 %v1931_v55 }
 0xc4b   : > { %v1818_v56 = vpop.permute.xlu1 %1817 }
 0xc4c   : > { %v1823_v57 = vsel %vm906_vm3, %v1818_v56, 0 }
 0xc4d   : > { %2759 = vmatpush3.bf16.msra.mxu0 %v1823_v57  ;;  %v2973_v57 = vld [vmem:[%s4396_s10 + $0x10] sm:$0xff]  }
 0xc4e   : > { %2770 = vmatprep.subr.bf16.mxu0 %v3447_v0 }
 0xc50   : > { %2761 = vmatmul.mubr.msk.bf16.vlgmr.msra.gmra.mrb[36].mxu0 %vm841_vm2, %v1816_v59  ;;  %v2085_v59 = vld [vmem:[#allocation18] sm:$0x3] }
 0xc51   : > { %2771 = vmatpush3.bf16.msra.mxu0 %v1943_v60  ;;  %2772 = vmatprep.mubr.msk.bf16.mxu0 %vm3448_vm0, %v3447_v0  ;;  %v2090_v60 = vrot.slane %v2085_v59, %v4043_v63 }
 0xc52   : > { %v3008_v61 = vpop.eup %3007  ;;  %2784 = vmatprep.subr.bf16.mxu0 %v3447_v0 }
 0xc53   : > { %v1933_v2 = vmul.f32 %v3008_v61, %v3002_v42 }
 0xc55   : > { %2558 = vst.msk [vmem:[%s4131_s28 + $0x18] sm:$0xff] %vm841_vm2, %v1933_v2  ;;  %v1936_v4 = vpack.c.bf16 %v1933_v2, %v1933_v2  ;;  %s3305_s28 = scalar_lea.vmem %s3304_s24, 1024 }
 0xc56   : > { %p3307_p3 = scmp.lt.s32.totalorder %s3305_s28, %s3299_s21 }
 0xc58   : > { %2773 = vmatmul.mubr.msk.bf16.vlgmr.msra.gmra.mrb[40].mxu0 %vm841_vm2, %v1936_v4  ;;  %p3308_p12 = por %p3307_p3, %p3306_p0 }
 0xc59   : > { %2788 = vmatprep.mubr.msk.bf16.mxu0 %vm3448_vm0, %v3447_v0  ;;  %2785 = vmatpush3.bf16.msra.mxu0 %v2971_v1 }
 0xc5a   : > { %2786 = vmatprep.subr.bf16.mxu0 %v3447_v0 }
 0xc5d   : > { %2787 = vmatpush3.bf16.msra.mxu0 %v2972_v48 }
 0xcf6   : > { %v1624_v5 = vpop.f32.mrb[28].mxu0 }
 0xcf7   : > { %v1630_v6 = vpack.c.bf16 %v1624_v5, %v1624_v5  ;;  %v2738_v7 = vpop.f32.mrb[29].mxu0 }
 0xcf8   : > { %v1627_v8 = vpop.f32.mrb[30].mxu0 }
 0xcf9   : > { %1631 = vst.msk [vmem:[#allocation2] sm:$0xf] %vm951_vm4, %v1630_v6  ;;  %v2739_v9 = vpop.f32.mrb[31].mxu0 }
 0xcfa   : > { %v2151_v9 = vrot.slane %v2085_v59, %v1996_v33 }
 0xcfe   : > { %v1739_v10 = vpop.f32.mrb[32].mxu0 }
 0xcff   : > { %v2580_v11 = vpack.c.bf16 %v1739_v10, %v1739_v10  ;;  %v2750_v12 = vpop.f32.mrb[33].mxu0 }
 0xd00   : > { %v1742_v13 = vpop.f32.mrb[34].mxu0 }
 0xd01   : > { %1749 = vrot.lane.b32.xlu1 %v2580_v11, %s3456_s30  ;;  %v2751_v14 = vpop.f32.mrb[35].mxu0 }
 0xd23   : > { %v1859_v16 = vpop.f32.mrb[36].mxu0 }
 0xd24   : > { %v2581_v17 = vpack.c.bf16 %v1859_v16, %v1859_v16  ;;  %v2762_v18 = vpop.f32.mrb[37].mxu0 }
 0xd25   : > { %v1862_v19 = vpop.f32.mrb[38].mxu0 }
 0xd26   : > { %1869 = vrot.lane.b32.xlu0 %v2581_v17, %s3457_s2  ;;  %v2763_v20 = vpop.f32.mrb[39].mxu0  ;;  %s4398_s2 = sld [smem:[#allocation37_spill]] }
 0xd2b   : > { %v1979_v22 = vpop.f32.mrb[40].mxu0 }
 0xd2c   : > { %v2582_v21 = vpack.c.bf16 %v1979_v22, %v1979_v22  ;;  %v2774_v23 = vpop.f32.mrb[41].mxu0  ;;  %p4400_p1 = scmp.ne.s32.totalorder %s4398_s2, 0 }
 0xd2d   : > { %v1982_v24 = vpop.f32.mrb[42].mxu0 }
 0xd2e   : > { %1989 = vrot.lane.b32.xlu1 %v2582_v21, %s3458_s22  ;;  %v2775_v27 = vpop.f32.mrb[43].mxu0  ;;  %s2583_s22 = sshll.u32 %s4397_s18, 9  ;;  %p3301_p9 = pnand %p3300_p2, %p4400_p1 }
 0xd2f   : > { %s4207_s8 = scalar_lea.hbm %s4399_s16, %s2583_s22 }
 0xd30   : > { %p3302_p10 = pneg %p3301_p9 }
 0xd32   : > { %p3309_p11 = pnand %p3308_p12, %p3302_p10 }
 0xd73   : > { %v1750_v28 = vpop.permute.xlu1 %1749 }
 0xd74   : > { %1752 = vst.msk [vmem:[#allocation2] sm:$0xf] %vm1071_vm5, %v1750_v28 }
 0xd98   : > { %v1870_v29 = vpop.permute.xlu0 %1869 }
 0xd99   : > { %1872 = vst.msk [vmem:[#allocation2] sm:$0xf] %vm1190_vm6, %v1870_v29 }
 0xda0   : > { %v1990_v30 = vpop.permute.xlu1 %1989 }
 0xda1   : > { %1992 = vst.msk [vmem:[#allocation2] sm:$0xf] %vm1309_vm7, %v1990_v30 }
 0xda8   : > { %v1993_v31 = vld [vmem:[#allocation2] sm:$0xf] }
 0xda9   : > { %2781 = vmatmul.mubr.msk.bf16.vlgmr.msra.gmra.mrb[40].mxu1 %vm742_vm1, %v1993_v31 }
 0xdaa   : > { %2796 = vmatprep.mubr.msk.bf16.mxu1 %vm3448_vm0, %v3447_v0  ;;  %2793 = vmatpush3.bf16.msra.mxu1 %v2973_v57 }
 0xdab   : > { %2794 = vmatprep.subr.bf16.mxu1 %v3447_v0 }
 0xdae   : > { %2795 = vmatpush3.bf16.msra.mxu1 %v2974_v58 }
 0xe7c   : > { %v2047_v35 = vpop.f32.mrb[40].mxu1 }
 0xe7d   : > { %v2048_v36 = vadd.f32 %v2047_v35, %v1997_v34  ;;  %v2782_v37 = vpop.f32.mrb[41].mxu1 }
 0xe7e   : > { %v2050_v38 = vpop.f32.mrb[42].mxu1 }
 0xe7f   : > { %v2783_v40 = vpop.f32.mrb[43].mxu1  ;;  %v2053_v41 = vadd.f32 %v2048_v36, %v4078_v32 }
 0xe81   : > { %v2054_v42 = vsel %vm742_vm1, %v2053_v41, 0.0 }
 0xe82   : > { %2055 = vadd.xlane.f32.xlu0 %v2054_v42 }
 0xf0f   : > { %v2056_v43 = vpop.xlane.xlu0 %2055 }
 0xf10   : > { %v2057_v44 = vmul.f32 0.03125, %v2056_v43 }
 0xf12   : > { %v2058_v45 = vsub.f32 %v2053_v41, %v2057_v44 }
 0xf14   : > { %v2059_v46 = vmul.f32 %v2058_v45, %v2058_v45 }
 0xf16   : > { %v2060_v47 = vsel %vm742_vm1, %v2059_v46, 0.0 }
 0xf17   : > { %2061 = vadd.xlane.f32.xlu1 %v2060_v47 }
 0xfa4   : > { %v2062_v32 = vpop.xlane.xlu1 %2061 }
 0xfa5   : > { %v2063_v49 = vmul.f32 0.03125, %v2062_v32 }
 0xfa7   : > { %v2064_v50 = vadd.f32 1e-05, %v2063_v49 }
 0xfa9   : > { %3009 = vrsqrt.f32 %v2064_v50 }
 0xfb3   : > { %v3010_v52 = vpop.eup %3009 }
 0xfb4   : > { %v2066_v39 = vmul.f32 %v3010_v52, %v2058_v45 }
 0xfb6   : > { %v2071_v54 = vmul.f32 %v2070_v51, %v2066_v39 }
 0xfb8   : > { %v2076_v55 = vadd.f32 %v2075_v53, %v2071_v54 }
 0xfba   : > { %v2086_v56 = vpack.c.bf16 %v2076_v55, %v2076_v55 }
 0xfbc   : > { %2789 = vmatmul.mubr.msk.bf16.vlgmr.msra.gmra.mrb[44].mxu0 %vm742_vm1, %v2086_v56 }
0x108f   : > { %v2140_v61 = vpop.f32.mrb[44].mxu0 }
0x1090   : > { %v2141_v2 = vadd.f32 %v2140_v61, %v2090_v60  ;;  %v2790_v4 = vpop.f32.mrb[45].mxu0 }
0x1091   : > { %v2143_v5 = vpop.f32.mrb[46].mxu0 }
0x1092   : > { %v2146_v6 = vmax.f32 %v2141_v2, 0.0  ;;  %v2791_v7 = vpop.f32.mrb[47].mxu0 }
0x1094   : > { %v2147_v8 = vpack.c.bf16 %v2146_v6, %v2146_v6 }
0x1096   : > { %2797 = vmatmul.mubr.msk.bf16.vlgmr.msra.gmra.mrb[44].mxu1 %vm742_vm1, %v2147_v8 }
0x1169   : > { %v2201_v0 = vpop.f32.mrb[44].mxu1 }
0x116a   : > { %v2202_v10 = vadd.f32 %v2201_v0, %v2151_v9  ;;  %v2798_v11 = vpop.f32.mrb[45].mxu1 }
0x116b   : > { %v2204_v12 = vpop.f32.mrb[46].mxu1 }
0x116c   : > { %v2799_v13 = vpop.f32.mrb[47].mxu1  ;;  %v2207_v14 = vadd.f32 %v2202_v10, %v2076_v55 }
0x116e   : > { %v2208_v63 = vsel %vm742_vm1, %v2207_v14, 0.0 }
0x116f   : > { %2209 = vadd.xlane.f32.xlu0 %v2208_v63 }
0x11fc   : > { %v2210_v15 = vpop.xlane.xlu0 %2209 }
0x11fd   : > { %v2211_v16 = vmul.f32 0.03125, %v2210_v15 }
0x11ff   : > { %v2212_v3 = vsub.f32 %v2207_v14, %v2211_v16 }
0x1201   : > { %v2213_v17 = vmul.f32 %v2212_v3, %v2212_v3 }
0x1203   : > { %v2214_v18 = vsel %vm742_vm1, %v2213_v17, 0.0 }
0x1204   : > { %2215 = vadd.xlane.f32.xlu0 %v2214_v18 }
0x1205   : > { %3312 = shalt.err (!%p3309_p11)
}
0x1206   : > { %s3313_s1 = scalar_lea.hbm %s4207_s8, 512  ;;  %s3317_s3 = scalar_lea.hbm %s4399_s16, 1024 }
0x1207   : > { %p3314_p13 = scmp.ne.s32.totalorder %s4207_s8, %s3313_s1  ;;  %p3318_p6 = scmp.lt.u32.totalorder %s4207_s8, %s4399_s16 }
0x1208   : > { %p3319_p8 = scmp.lt.u32.totalorder %s3317_s3, %s3313_s1  ;;  %p3321_p2 = scmp.lt.u32.totalorder %s3313_s1, %s4207_s8 }
0x1209   : > { %p3315_p4 = pnand %p3314_p13, %p4400_p1 }
0x120a   : > { %p3320_p5 = por %p3319_p8, %p3318_p6 }
0x120b   : > { %p3316_p7 = pneg %p3315_p4 }
0x120c   : > { %p3322_p9 = por %p3321_p2, %p3320_p5 }
0x120e   : > { %p3323_p10 = pnand %p3322_p9, %p3316_p7 }
0x1210   : > { %3326 = shalt.err (!%p3323_p10)
}
0x1211   : > { %s3460_s22 = smov 128   ;;  %v2223_v21 = vsub.s32 2, %v4040_v62  ;;  %s2572_s25 = sshll.u32 %s4397_s18, 7 }
0x1212   : > { %2835 = dma.vmem_to_hbm [thread:$0]  (%p4400_p1), %s4209_s12, 512, %s4207_s8, %s2238_s4, %s3460_s22, %s3460_s22, %s3456_s30  }
0x1213   : > { %v2224_v23 = vrot.slane %v4067_v25, %v2223_v21  ;;  %v2229_v28 = vrot.slane %v4072_v26, %v2223_v21  ;;  %s699_s27 = scalar_lea.vmem [#allocation20], %s3901_s26  ;;  %s4401_s8 = sld [smem:[#allocation49_spill]] }
0x1214   : > { %s2252_s21 = sshll.u32 %s699_s27, 4  ;;  %s2233_s17 = scalar_lea.sflag [#allocation5], %s3898_s14  ;;  %s4246_s21 = int_to_ptr.vmem [resolvable:$true] %s2252_s21 }
0x1215   : > { %s3327_s24 = scalar_lea.vmem %s4246_s21, 128  ;;  %s3461_s26 = smov [#allocation20]  }
0x1216   : > { %p3328_p0 = scmp.ne.s32.totalorder %s4246_s21, %s3327_s24  ;;  %s3331_s18 = sshll.u32 %s3461_s26, 4  ;;  %s3332_s18 = int_to_ptr.vmem [resolvable:$false] %s3331_s18 }
0x1217   : > { %s3333_s28 = scalar_lea.vmem %s3332_s18, 256  ;;  %p3334_p11 = scmp.lt.s32.totalorder %s4246_s21, %s3332_s18 }
0x1218   : > { %p3329_p3 = pnand %p3328_p0, %p4400_p1  ;;  %p3335_p13 = scmp.lt.s32.totalorder %s3333_s28, %s3327_s24 }
0x1219   : > { %s4244_s4 = scalar_lea.hbm %s4401_s8, %s2572_s25 }
0x121a   : > { %p3330_p12 = pneg %p3329_p3  ;;  %p3336_p4 = por %p3335_p13, %p3334_p11 }
0x121c   : > { %p3337_p7 = pnand %p3336_p4, %p3330_p12 }
0x1291   : > { %v2216_v19 = vpop.xlane.xlu0 %2215 }
0x1292   : > { %v2217_v20 = vmul.f32 0.03125, %v2216_v19 }
0x1294   : > { %v2218_v22 = vadd.f32 1e-05, %v2217_v20 }
0x1296   : > { %3011 = vrsqrt.f32 %v2218_v22 }
0x12a0   : > { %v3012_v24 = vpop.eup %3011 }
0x12a1   : > { %v2220_v27 = vmul.f32 %v3012_v24, %v2212_v3 }
0x12a3   : > { %v2225_v29 = vmul.f32 %v2224_v23, %v2220_v27 }
0x12a5   : > { %v2230_v30 = vadd.f32 %v2229_v28, %v2225_v29 }
0x12a7   : > { %2231 = vst.msk [vmem:[%s699_s27] sm:$0xff] %vm742_vm1, %v2230_v30 }
0x12a8   : > { %3340 = shalt.err (!%p3337_p7)
}
0x12a9   : > { %s3341_s14 = scalar_lea.hbm %s4244_s4, 128  ;;  %s3345_s29 = scalar_lea.hbm %s4401_s8, 256 }
0x12aa   : > { %p3342_p6 = scmp.ne.s32.totalorder %s4244_s4, %s3341_s14  ;;  %p3346_p2 = scmp.lt.u32.totalorder %s4244_s4, %s4401_s8 }
0x12ab   : > { %p3347_p9 = scmp.lt.u32.totalorder %s3345_s29, %s3341_s14  ;;  %p3349_p0 = scmp.lt.u32.totalorder %s3341_s14, %s4244_s4 }
0x12ac   : > { %p3343_p8 = pnand %p3342_p6, %p4400_p1 }
0x12ad   : > { %p3348_p10 = por %p3347_p9, %p3346_p2 }
0x12ae   : > { %p3344_p5 = pneg %p3343_p8 }
0x12af   : > { %p3350_p3 = por %p3349_p0, %p3348_p10 }
0x12b1   : > { %p3351_p12 = pnand %p3350_p3, %p3344_p5 }
0x12b3   : > { %3354 = shalt.err (!%p3351_p12)
}
0x12b4   : > { %2834 = dma.vmem_to_hbm [thread:$0]  (%p4400_p1), %s4246_s21, 128, %s4244_s4, %s2233_s17  }
0x12b5 PF: > { %s4402_s6 = sld [smem:[#allocation31_spill]]  ;;  %s4403_s22 = sld [smem:[#allocation39_spill]] }
0x12b6   : > { %s4404_s25 = sld [smem:[#allocation34_spill]] }
0x12bb   : > { %s2281_s27 = sand.u32 1, %s4402_s6   ;;  %p4405_p11 = scmp.ne.s32.totalorder %s4403_s22, 0 }
0x12bc   : > { %p4406_p13 = scmp.ge.s32.totalorder %s4404_s25, 2  ;;  %s2282_s30 = scalar_lea.sflag [#allocation5], %s2281_s27 }
0x12be   : > { %p2871_p4 = pnand %p4406_p13, %p4405_p11 }
0x12c0   : > { %3404 = dma.done.wait (!%p2871_p4), %s2282_s30, 128  }
0x12c1   : > { %3406 = vsyncadd (!%p2871_p4), %s2282_s30, 4294967168  ;;  %s2291_s12 = scalar_lea.sflag [#allocation22], %s2281_s27 }
0x12c2   : > { %3408 = dma.done.wait (!%p2871_p4), %s2291_s12, 512  }
0x12c3   : > { %3410 = vsyncadd (!%p2871_p4), %s2291_s12, 4294966784  ;;  %s42_s23 = sadd.s32 1, %s4404_s25   ;;  %s4407_s2 = sld [smem:[#allocation38_spill]] }
0x12c4   : > { %p39_p7 = scmp.ge.s32.totalorder %s42_s23, 4   ;;  %s4408_s21 = sld [smem:[#allocation33_spill]] }
0x12c5   : > { %s4409_s22 = sld [smem:[#allocation36_spill]]  ;;  %s4410_s18 = smov %s3417_s19 }
0x12c6   : > { %s4411_s19 = smov %s3421_s20  ;;  %41 = sbr.rel (!%p39_p7) target bundleno = 26 (0x1a), region = 193 }
0x12c9   : > { %s4412_s20 = smov %s4407_s2 }
0x12cd   :  { %2296 = vsyncpa [#allocation4], 1 }
0x12ce   :  { %2298 = vsyncpa [#allocation4 + $0x1], 1 }
0x12cf   :  { %2299 = vsyncpa [#allocation7], 1 }
0x12d0   :  { %2301 = vsyncpa [#allocation7 + $0x1], 1 }
0x12d1   :  { %2302 = vsyncpa [#allocation10], 1 }
0x12d2   :  { %2303 = vsyncpa [#allocation13], 1 }
0x12d3   :  { %2304 = vsyncpa [#allocation16], 1 }
0x12d4   :  { %2305 = vsyncpa [#allocation19], 1 }
0x12d5   :  { %2306 = vsyncpa [#allocation5], 1 }
0x12d6   :  { %2308 = vsyncpa [#allocation5 + $0x1], 1 }
0x12d7   :  { %2309 = vsyncpa [#allocation22], 1 }
0x12d8   :  { %2311 = vsyncpa [#allocation22 + $0x1], 1 }

</bundles_post_ra>
